<compile_context>
chip_gen: v5e
topology: v5e:2x2
jax: 0.10.0
libtpu: 0.0.40
codegen_flags: <defaults>
</compile_context>

<pallas_src>
import functools
import math

import jax
import jax.numpy as jnp
from jax.experimental import pallas as pl
from jax.experimental.pallas import tpu as pltpu

_MEAN = (0.485, 0.456, 0.406, 0.406)
_STD = (0.229, 0.224, 0.225, 0.225)
_BN_EPS = 1e-3       # EfficientNet batch_norm_epsilon
_STEM_PAD = 128      # stem output channels padded 40 -> 128 (lane-dense MXU/N)
_CLS_PAD = 128       # logit columns padded 19 -> 128 (lane-dense store)


# ------------------------------------------------------------------
# Glue: TF-style SAME padding + im2col (reshapes/pads only, no compute)
# ------------------------------------------------------------------
def same_pad_im2col(x_nhwc, kh, kw, sh, sw):
    B, H, W, C = x_nhwc.shape
    oh, ow = math.ceil(H / sh), math.ceil(W / sw)
    pad_h = max((oh - 1) * sh + kh - H, 0)
    pad_w = max((ow - 1) * sw + kw - W, 0)
    xp = jnp.pad(x_nhwc, ((0, 0),
                          (pad_h // 2, pad_h - pad_h // 2),
                          (pad_w // 2, pad_w - pad_w // 2),
                          (0, 0)))
    cols = []
    for i in range(kh):
        for j in range(kw):
            cols.append(xp[:, i:i + sh * oh:sh, j:j + sw * ow:sw, :])
    patches = jnp.stack(cols, axis=3)                  # (B, oh, ow, kh*kw, C)
    # flattened tap-major / channel-minor -> row index = tap*C + c
    return patches.reshape(B, oh * ow, kh * kw * C), (oh, ow)


def _choose_tile_hw(hw, max_tile=1024):
    """Largest HW tile that divides hw, is sublane-friendly, and fits VMEM."""
    if hw <= max_tile:
        return hw
    for t in range(max_tile, 15, -1):
        if t % 16 == 0 and hw % t == 0:      # 16: bf16 sublane packing
            return t
    # TODO(synk): ragged HW (no nice divisor) would need a masked last tile.
    return hw


# ------------------------------------------------------------------
# Fused kernel:
#   per (batch b, HW-tile t):
#     stem = swish(patches @ stem_w + bn0_bias)      (norm + BN0 scale folded into W)
#     feat = swish(stem    @ head_w + bnh_bias)      (head BN scale folded into W)
#     acc += sum_rows(feat)                          (avg-pool accumulation)
#   on last tile of each batch:
#     logits[b] = (acc / HW) @ logit_w + logit_b
# ------------------------------------------------------------------
def _fused_kernel(x_ref, stem_w_ref, bn0_b_ref,
                  head_w_ref, bnh_b_ref,
                  logit_w_ref, logit_b_ref,
                  o_ref, acc_ref, *, inv_hw):
    t = pl.program_id(1)

    @pl.when(t == 0)
    def _():
        acc_ref[...] = jnp.zeros_like(acc_ref)

    x = x_ref[0]                                                 # (TILE_HW, 9*Cin) bf16
    stem = jnp.dot(x, stem_w_ref[...], preferred_element_type=jnp.float32)
    stem = stem + bn0_b_ref[...]                                 # folded norm + BN0 bias
    stem = stem * jax.nn.sigmoid(stem)                           # swish (EUP exp path)

    feat = jnp.dot(stem.astype(jnp.bfloat16), head_w_ref[...],
                   preferred_element_type=jnp.float32)           # (TILE_HW, 1280)
    feat = feat + bnh_b_ref[...]
    feat = feat * jax.nn.sigmoid(feat)                           # swish

    acc_ref[...] += jnp.sum(feat, axis=0, keepdims=True)         # (1, 1280) XLU reduce

    @pl.when(t == pl.num_programs(1) - 1)
    def _():
        pooled = acc_ref[...] * inv_hw                           # AdaptiveAvgPool2d(1)
        logits = jnp.dot(pooled, logit_w_ref[...],
                         preferred_element_type=jnp.float32) + logit_b_ref[...]
        o_ref[...] = logits.reshape(o_ref.shape)


def efficient_fused(patches_bf16, params):
    B, HW, K = patches_bf16.shape
    tile_hw = _choose_tile_hw(HW)
    n_t = HW // tile_hw
    stem_pad = params['stem_w'].shape[1]
    feat_ch = params['head_w'].shape[1]
    cls_pad = params['logit_w'].shape[1]

    kernel = functools.partial(_fused_kernel, inv_hw=1.0 / float(HW))

    out = pl.pallas_call(
        kernel,
        out_shape=jax.ShapeDtypeStruct((B, 1, cls_pad), jnp.float32),
        grid=(B, n_t),
        in_specs=[
            pl.BlockSpec((1, tile_hw, K), lambda b, t: (b, t, 0)),     # patches tile
            pl.BlockSpec((K, stem_pad), lambda b, t: (0, 0)),          # stem_w (bf16, scale folded)
            pl.BlockSpec((1, stem_pad), lambda b, t: (0, 0)),          # bn0 bias
            pl.BlockSpec((stem_pad, feat_ch), lambda b, t: (0, 0)),    # head_w (bf16, scale folded)
            pl.BlockSpec((1, feat_ch), lambda b, t: (0, 0)),           # bn_head bias
            pl.BlockSpec((feat_ch, cls_pad), lambda b, t: (0, 0)),     # logit_w
            pl.BlockSpec((1, cls_pad), lambda b, t: (0, 0)),           # logit_b
        ],
        out_specs=pl.BlockSpec((1, 1, cls_pad), lambda b, t: (b, 0, 0)),
        scratch_shapes=[pltpu.VMEM((1, feat_ch), jnp.float32)],        # pool accumulator
        compiler_params=pltpu.CompilerParams(
            dimension_semantics=("parallel", "arbitrary"),
            vmem_limit_bytes=32 * 1024 * 1024,
        ),
    )(patches_bf16,
      params['stem_w'], params['bn0_bias'],
      params['head_w'], params['bnh_bias'],
      params['logit_w'], params['logit_b'])
    return out.reshape(B, cls_pad)


# ------------------------------------------------------------------
# Parameter construction (deterministic, synthetic) with folding + padding
# ------------------------------------------------------------------
def init_params(key, in_channels=4, stem_ch=40, feat_ch=1280, num_classes=19):
    ks = jax.random.split(key, 8)

    # ---- raw (PyTorch-equivalent) parameters ----
    stem_w_oihw = jax.random.normal(ks[0], (stem_ch, in_channels, 3, 3),
                                    jnp.float32) * 0.1
    stem_w = jnp.transpose(stem_w_oihw, (2, 3, 1, 0)).reshape(
        3 * 3 * in_channels, stem_ch)                               # (36, 40)
    bn0_gamma = 1.0 + 0.01 * jax.random.normal(ks[1], (stem_ch,), jnp.float32)
    bn0_beta = 0.01 * jax.random.normal(ks[2], (stem_ch,), jnp.float32)
    bn0_mean = 0.01 * jax.random.normal(ks[3], (stem_ch,), jnp.float32)
    bn0_var = jnp.abs(1.0 + 0.01 * jax.random.normal(ks[4], (stem_ch,), jnp.float32))
    head_w = jax.random.normal(ks[5], (stem_ch, feat_ch), jnp.float32) * (
        1.0 / math.sqrt(stem_ch))
    logit_w = jax.random.normal(ks[6], (feat_ch, num_classes), jnp.float32) * (
        1.0 / math.sqrt(feat_ch))
    logit_b = 0.01 * jax.random.normal(ks[7], (num_classes,), jnp.float32)

    # ---- fold per-channel input normalization into the stem conv ----
    # conv((x - mean)/std) == raw_patches @ (W/std) + shift
    std = jnp.array(_STD, jnp.float32)
    mean = jnp.array(_MEAN, jnp.float32)
    inv_std_rows = jnp.tile(1.0 / std, 9).reshape(-1, 1)            # (36, 1) tap-major
    mean_rows = jnp.tile(mean, 9).reshape(1, -1)                    # (1, 36)
    stem_w_norm = stem_w * inv_std_rows
    shift = -(mean_rows @ stem_w_norm)                              # (1, 40)

    # ---- fold BN0 (inference) straight into the stem weights ----
    # (y*s + b) with y = x@W  ==  x@(W*s) + b   (exact; BN precedes swish)
    bn0_scale = (bn0_gamma / jnp.sqrt(bn0_var + _BN_EPS)).reshape(1, -1)   # (1, 40)
    bn0_bias = (bn0_beta - bn0_mean * bn0_scale[0]).reshape(1, -1) + bn0_scale * shift
    stem_w_folded = stem_w_norm * bn0_scale                         # scale folded into W

    # head BN (identity stats here) — scale folded into head_w, bias kept
    bnh_scale = jnp.ones((1, feat_ch), jnp.float32)
    bnh_bias = jnp.zeros((1, feat_ch), jnp.float32)
    head_w_folded = head_w * bnh_scale

    # ---- zero-pad to lane-dense widths (40 -> 128 stem ch, 19 -> 128 classes) ----
    stem_w_p = jnp.zeros((stem_w.shape[0], _STEM_PAD), jnp.float32
                         ).at[:, :stem_ch].set(stem_w_folded)
    bn0_bias_p = jnp.zeros((1, _STEM_PAD), jnp.float32).at[:, :stem_ch].set(bn0_bias)
    head_w_p = jnp.zeros((_STEM_PAD, feat_ch), jnp.float32).at[:stem_ch, :].set(
        head_w_folded)
    logit_w_p = jnp.zeros((feat_ch, _CLS_PAD), jnp.float32).at[:, :num_classes].set(logit_w)
    logit_b_p = jnp.zeros((1, _CLS_PAD), jnp.float32).at[:, :num_classes].set(
        logit_b.reshape(1, -1))

    return dict(
        stem_w=stem_w_p.astype(jnp.bfloat16),      # MXU operands in bf16
        bn0_bias=bn0_bias_p,
        head_w=head_w_p.astype(jnp.bfloat16),
        bnh_bias=bnh_bias,
        logit_w=logit_w_p, logit_b=logit_b_p,
    )


# ------------------------------------------------------------------
# Full forward
# ------------------------------------------------------------------
def efficient_forward(x_nchw, params, num_classes=19):
    B, C, H, W = x_nchw.shape
    x = jnp.transpose(x_nchw, (0, 2, 3, 1)).astype(jnp.float32)     # NCHW -> NHWC
    # stem conv (SAME pad, stride 2) as im2col; normalization folded into weights
    patches, _ = same_pad_im2col(x, 3, 3, 2, 2)                     # (B, HW, 36)
    patches = patches.astype(jnp.bfloat16)
    # fused: stem matmul + BN0 + swish -> head matmul + BN + swish -> pool -> logit
    # TODO(synk): full EfficientNet-b1 MBConv stack not reproduced here.
    logits_padded = efficient_fused(patches, params)                # (B, 128)
    return logits_padded[:, :num_classes]


if __name__ == "__main__":
    key = jax.random.PRNGKey(0)
    k_x, k_p = jax.random.split(key)
    x = jax.random.normal(k_x, (2, 4, 16, 16), jnp.float32)         # NCHW, like PyTorch
    params = init_params(k_p)
    out = efficient_forward(x, params)
    out = jax.block_until_ready(out)
    assert out.shape == (2, 19), out.shape
    assert bool(jnp.all(jnp.isfinite(out)))
    print("KERNEL_OK")
</pallas_src>

<mosaic_0001>
module attributes {stable_mosaic.version = 11 : i64} {
  func.func @_fused_kernel(%arg0: i32, %arg1: i32, %arg2: memref<1x64x36xbf16, #tpu.memory_space<vmem>>, %arg3: memref<36x128xbf16, #tpu.memory_space<vmem>>, %arg4: memref<1x128xf32, #tpu.memory_space<vmem>>, %arg5: memref<128x1280xbf16, #tpu.memory_space<vmem>>, %arg6: memref<1x1280xf32, #tpu.memory_space<vmem>>, %arg7: memref<1280x128xf32, #tpu.memory_space<vmem>>, %arg8: memref<1x128xf32, #tpu.memory_space<vmem>>, %arg9: memref<1x1x128xf32, #tpu.memory_space<vmem>>, %arg10: memref<1x1280xf32, #tpu.memory_space<vmem>>) attributes {dimension_semantics = [#tpu.dimension_semantics<parallel>, #tpu.dimension_semantics<arbitrary>], iteration_bounds = array<i64: 2, 1>, scalar_prefetch = 0 : i64, scratch_operands = 1 : i64, tpu.core_type = #tpu.core_type<tc>, window_params = [{transform_indices = @transform_0, window_bounds = array<i64: 1, 64, 36>}, {pipeline_mode = #tpu.pipeline_mode<synchronous>, transform_indices = @transform_1, window_bounds = array<i64: 36, 128>}, {pipeline_mode = #tpu.pipeline_mode<synchronous>, transform_indices = @transform_2, window_bounds = array<i64: 1, 128>}, {pipeline_mode = #tpu.pipeline_mode<synchronous>, transform_indices = @transform_3, window_bounds = array<i64: 128, 1280>}, {pipeline_mode = #tpu.pipeline_mode<synchronous>, transform_indices = @transform_4, window_bounds = array<i64: 1, 1280>}, {pipeline_mode = #tpu.pipeline_mode<synchronous>, transform_indices = @transform_5, window_bounds = array<i64: 1280, 128>}, {pipeline_mode = #tpu.pipeline_mode<synchronous>, transform_indices = @transform_6, window_bounds = array<i64: 1, 128>}, {transform_indices = @transform_7, window_bounds = array<i64: 1, 1, 128>}]} {
    %c0_i32 = arith.constant 0 : i32
    %0 = arith.cmpi eq, %arg1, %c0_i32 : i32
    %1 = arith.extui %0 : i1 to i32
    %c0_i32_0 = arith.constant 0 : i32
    %2 = arith.cmpi ne, %1, %c0_i32_0 : i32
    scf.if %2 {
      %cst_21 = arith.constant 0.000000e+00 : f32
      %36 = vector.broadcast %cst_21 : f32 to vector<1x1280xf32>
      %c0_22 = arith.constant 0 : index
      %c0_23 = arith.constant 0 : index
      %37 = vector.load %arg10[%c0_22, %c0_23] : memref<1x1280xf32, #tpu.memory_space<vmem>>, vector<1x1280xf32>
      tpu.vector_store %arg10[%c0_22, %c0_23], %36 {strides = array<i32>} : memref<1x1280xf32, #tpu.memory_space<vmem>>, vector<1x1280xf32>,
    } else {
    }
    %c0 = arith.constant 0 : index
    %c0_1 = arith.constant 0 : index
    %c0_2 = arith.constant 0 : index
    %3 = vector.load %arg2[%c0, %c0_1, %c0_2] : memref<1x64x36xbf16, #tpu.memory_space<vmem>>, vector<1x64x36xbf16>
    %4 = vector.shape_cast %3 : vector<1x64x36xbf16> to vector<64x36xbf16>
    %c0_3 = arith.constant 0 : index
    %c0_4 = arith.constant 0 : index
    %5 = vector.load %arg3[%c0_3, %c0_4] : memref<36x128xbf16, #tpu.memory_space<vmem>>, vector<36x128xbf16>
    %cst = arith.constant dense<0.000000e+00> : vector<64x128xf32>
    %6 = tpu.matmul %4, %5, %cst {dimension_numbers = #tpu.dot_dimension_numbers<[1], [0], [0], [1], [0, 0, 1, 1], [], []>} : vector<64x36xbf16>, vector<36x128xbf16>, vector<64x128xf32> -> vector<64x128xf32>
    %c0_5 = arith.constant 0 : index
    %c0_6 = arith.constant 0 : index
    %7 = vector.load %arg4[%c0_5, %c0_6] : memref<1x128xf32, #tpu.memory_space<vmem>>, vector<1x128xf32>
    %8 = vector.broadcast %7 : vector<1x128xf32> to vector<64x128xf32>
    %9 = arith.addf %6, %8 : vector<64x128xf32>
    %10 = arith.negf %9 : vector<64x128xf32>
    %11 = math.exp %10 : vector<64x128xf32>
    %cst_7 = arith.constant 1.000000e+00 : f32
    %12 = vector.broadcast %cst_7 : f32 to vector<64x128xf32>
    %13 = arith.addf %12, %11 : vector<64x128xf32>
    %14 = arith.divf %12, %13 : vector<64x128xf32>
    %15 = arith.mulf %9, %14 : vector<64x128xf32>
    %16 = arith.truncf %15 : vector<64x128xf32> to vector<64x128xbf16>
    %c0_8 = arith.constant 0 : index
    %c0_9 = arith.constant 0 : index
    %17 = vector.load %arg5[%c0_8, %c0_9] : memref<128x1280xbf16, #tpu.memory_space<vmem>>, vector<128x1280xbf16>
    %cst_10 = arith.constant dense<0.000000e+00> : vector<64x1280xf32>
    %18 = tpu.matmul %16, %17, %cst_10 {dimension_numbers = #tpu.dot_dimension_numbers<[1], [0], [0], [1], [0, 0, 1, 1], [], []>} : vector<64x128xbf16>, vector<128x1280xbf16>, vector<64x1280xf32> -> vector<64x1280xf32>
    %c0_11 = arith.constant 0 : index
    %c0_12 = arith.constant 0 : index
    %19 = vector.load %arg6[%c0_11, %c0_12] : memref<1x1280xf32, #tpu.memory_space<vmem>>, vector<1x1280xf32>
    %20 = vector.broadcast %19 : vector<1x1280xf32> to vector<64x1280xf32>
    %21 = arith.addf %18, %20 : vector<64x1280xf32>
    %22 = arith.negf %21 : vector<64x1280xf32>
    %23 = math.exp %22 : vector<64x1280xf32>
    %cst_13 = arith.constant 1.000000e+00 : f32
    %24 = vector.broadcast %cst_13 : f32 to vector<64x1280xf32>
    %25 = arith.addf %24, %23 : vector<64x1280xf32>
    %26 = arith.divf %24, %25 : vector<64x1280xf32>
    %27 = arith.mulf %21, %26 : vector<64x1280xf32>
    %c0_14 = arith.constant 0 : index
    %c0_15 = arith.constant 0 : index
    %28 = vector.load %arg10[%c0_14, %c0_15] : memref<1x1280xf32, #tpu.memory_space<vmem>>, vector<1x1280xf32>
    %cst_16 = arith.constant dense<0.000000e+00> : vector<1280xf32>
    %29 = vector.multi_reduction <add>, %27, %cst_16 [0] : vector<64x1280xf32> to vector<1280xf32>
    %30 = vector.shape_cast %29 : vector<1280xf32> to vector<1x1280xf32>
    %31 = arith.addf %28, %30 : vector<1x1280xf32>
    %c0_17 = arith.constant 0 : index
    %c0_18 = arith.constant 0 : index
    %32 = vector.load %arg10[%c0_17, %c0_18] : memref<1x1280xf32, #tpu.memory_space<vmem>>, vector<1x1280xf32>
    tpu.vector_store %arg10[%c0_17, %c0_18], %31 {strides = array<i32>} : memref<1x1280xf32, #tpu.memory_space<vmem>>, vector<1x1280xf32>,
    %c0_i32_19 = arith.constant 0 : i32
    %33 = arith.cmpi eq, %arg1, %c0_i32_19 : i32
    %34 = arith.extui %33 : i1 to i32
    %c0_i32_20 = arith.constant 0 : i32
    %35 = arith.cmpi ne, %34, %c0_i32_20 : i32
    scf.if %35 {
      %c0_21 = arith.constant 0 : index
      %c0_22 = arith.constant 0 : index
      %36 = vector.load %arg10[%c0_21, %c0_22] : memref<1x1280xf32, #tpu.memory_space<vmem>>, vector<1x1280xf32>
      %cst_23 = arith.constant 1.562500e-02 : f32
      %37 = vector.broadcast %cst_23 : f32 to vector<1x1280xf32>
      %38 = arith.mulf %36, %37 : vector<1x1280xf32>
      %c0_24 = arith.constant 0 : index
      %c0_25 = arith.constant 0 : index
      %39 = vector.load %arg7[%c0_24, %c0_25] : memref<1280x128xf32, #tpu.memory_space<vmem>>, vector<1280x128xf32>
      %cst_26 = arith.constant dense<0.000000e+00> : vector<1x128xf32>
      %40 = tpu.matmul %38, %39, %cst_26 {dimension_numbers = #tpu.dot_dimension_numbers<[1], [0], [0], [1], [0, 0, 1, 1], [], []>} : vector<1x1280xf32>, vector<1280x128xf32>, vector<1x128xf32> -> vector<1x128xf32>
      %c0_27 = arith.constant 0 : index
      %c0_28 = arith.constant 0 : index
      %41 = vector.load %arg8[%c0_27, %c0_28] : memref<1x128xf32, #tpu.memory_space<vmem>>, vector<1x128xf32>
      %42 = arith.addf %40, %41 : vector<1x128xf32>
      %43 = vector.shape_cast %42 : vector<1x128xf32> to vector<1x1x128xf32>
      %c0_29 = arith.constant 0 : index
      %c0_30 = arith.constant 0 : index
      %c0_31 = arith.constant 0 : index
      %44 = vector.load %arg9[%c0_29, %c0_30, %c0_31] : memref<1x1x128xf32, #tpu.memory_space<vmem>>, vector<1x1x128xf32>
      tpu.vector_store %arg9[%c0_29, %c0_30, %c0_31], %43 {strides = array<i32>} : memref<1x1x128xf32, #tpu.memory_space<vmem>>, vector<1x1x128xf32>,
    } else {
    }
    return
  }
  func.func @transform_0(%arg0: i32, %arg1: i32) -> (i32, i32, i32) {
    %c0_i32 = arith.constant 0 : i32
    %c0_i32_0 = arith.constant 0 : i32
    return %arg0, %arg1, %c0_i32 : i32, i32, i32
  }
  func.func @transform_1(%arg0: i32, %arg1: i32) -> (i32, i32) {
    %c0_i32 = arith.constant 0 : i32
    %c0_i32_0 = arith.constant 0 : i32
    %c0_i32_1 = arith.constant 0 : i32
    return %c0_i32, %c0_i32_0 : i32, i32
  }
  func.func @transform_2(%arg0: i32, %arg1: i32) -> (i32, i32) {
    %c0_i32 = arith.constant 0 : i32
    %c0_i32_0 = arith.constant 0 : i32
    %c0_i32_1 = arith.constant 0 : i32
    return %c0_i32, %c0_i32_0 : i32, i32
  }
  func.func @transform_3(%arg0: i32, %arg1: i32) -> (i32, i32) {
    %c0_i32 = arith.constant 0 : i32
    %c0_i32_0 = arith.constant 0 : i32
    %c0_i32_1 = arith.constant 0 : i32
    return %c0_i32, %c0_i32_0 : i32, i32
  }
  func.func @transform_4(%arg0: i32, %arg1: i32) -> (i32, i32) {
    %c0_i32 = arith.constant 0 : i32
    %c0_i32_0 = arith.constant 0 : i32
    %c0_i32_1 = arith.constant 0 : i32
    return %c0_i32, %c0_i32_0 : i32, i32
  }
  func.func @transform_5(%arg0: i32, %arg1: i32) -> (i32, i32) {
    %c0_i32 = arith.constant 0 : i32
    %c0_i32_0 = arith.constant 0 : i32
    %c0_i32_1 = arith.constant 0 : i32
    return %c0_i32, %c0_i32_0 : i32, i32
  }
  func.func @transform_6(%arg0: i32, %arg1: i32) -> (i32, i32) {
    %c0_i32 = arith.constant 0 : i32
    %c0_i32_0 = arith.constant 0 : i32
    %c0_i32_1 = arith.constant 0 : i32
    return %c0_i32, %c0_i32_0 : i32, i32
  }
  func.func @transform_7(%arg0: i32, %arg1: i32) -> (i32, i32, i32) {
    %c0_i32 = arith.constant 0 : i32
    %c0_i32_0 = arith.constant 0 : i32
    %c0_i32_1 = arith.constant 0 : i32
    return %arg0, %c0_i32, %c0_i32_0 : i32, i32, i32
  }
}

</mosaic_0001>

<bundles_post_ra>
// kernel: tpu_custom_call.1
= control target key start
LH: loop header
LB: loop body
LE: loop exit
PB: predicated region body
PF: predicated region fallthrough
CT: control target
= control target key end

     0   :  { %s7700_s0 = inlined_call_operand.vmem [shape: bf16[2,64,36], index: 0, kind: input, shape index: {}]   ;;  %s7701_s1 = inlined_call_operand.vmem [shape: bf16[36,128], index: 1, kind: input, shape index: {}]   ;;  %s7702_s2 = inlined_call_operand.vmem [shape: f32[1,128], index: 2, kind: input, shape index: {}]   ;;  %s7703_s3 = inlined_call_operand.hbm [shape: bf16[128,1280], index: 3, kind: input, shape index: {}]   ;;  %s7704_s4 = inlined_call_operand.vmem [shape: f32[1,1280], index: 4, kind: input, shape index: {}]   ;;  %s7705_s5 = inlined_call_operand.hbm [shape: f32[1280,128], index: 5, kind: input, shape index: {}]   ;;  %s7706_s6 = inlined_call_operand.vmem [shape: f32[1,128], index: 6, kind: input, shape index: {}]   ;;  %s7707_s7 = inlined_call_operand.hbm [shape: f32[2,1,128], index: 7, kind: output, shape index: {}]  }
   0x1   :  { %7708 = sst [smem:[#allocation12_spill]] %s7703_s3 }
   0x2   :  { %12 = vsyncpa [#allocation4], 0 }
   0x3   :  { %13 = vsyncpa [#allocation7], 0 }
   0x4   :  { %14 = vsyncpa [#allocation5], 0 }
   0x5   :  { %16 = vsyncpa [#allocation5 + $0x1], 0  ;;  %s4840_s24 = smov 0   ;;  %s4842_s25 = smov 0  }
   0x6   :  { %s4844_s26 = smov 0   ;;  %s4846_s27 = smov 0  }
   0x7   :  { %s4848_s28 = smov 0   ;;  %s4850_s29 = smov 0  }
   0x8 LB: > { %s3674_s30 = sadd.s32 4294967295, %s4791_s29   ;;  %s3675_s8 = sadd.s32 4294967294, %s4791_s29   ;;  %s4791_s29 = sphi %s4850_s29, %s22_s29   ;;  %s4787_s28 = sphi %s4848_s28, %s7958_s28   ;;  %s4783_s27 = sphi %s4846_s27, %s7957_s27   ;;  %s4779_s26 = sphi %s4844_s26, %s7956_s26   ;;  %s4775_s25 = sphi %s4842_s25, %s7955_s25   ;;  %s4771_s24 = sphi %s4840_s24, %s7954_s24  }
   0x9   : > { %s34_s9 = sadd.s32 1, %s4787_s28  ;;  %s195_s10 = sadd.s32 1, %s4779_s26 }
   0xa   : > { %p36_p0 = scmp.ge.s32.totalorder %s34_s9, 2  ;;  %p205_p1 = scmp.ne.s32.totalorder %s4779_s26, %s4775_s25 }
   0xb   : > { %p206_p2 = scmp.eq.s32.totalorder %s3674_s30, 1  ;;  %p211_p3 = scmp.ne.s32.totalorder %s4775_s25, %s4771_s24 }
   0xc   : > { %s7960_s9 = smov (%p36_p0, %s34_s9), 0  ;;  %p212_p5 = scmp.eq.s32.totalorder %s3675_s8, 1 }
   0xd   : > { %p4880_p4 = por %p206_p2, %p205_p1  ;;  %s192_s12 = ssub.s32 %s4787_s28, %s7960_s9 }
   0xe   : > { %p3676_p6 = scmp.ge.s32.totalorder %s4791_s29, 1  ;;  %p193_p7 = scmp.eq.s32.totalorder %s192_s12, 0 }
   0xf   : > { %p4887_p8 = por %p212_p5, %p211_p3  ;;  %p219_p9 = scmp.lt.s32.totalorder %s4791_s29, 3 }
  0x10   : > { %s4893_s14 = scalar_select %p193_p7, %s4779_s26, %s195_s10  }
  0x11   : > { %p4895_p10 = pnand %p3676_p6, %p219_p9  ;;  %p4899_p11 = scmp.eq.s32.totalorder %s3674_s30, 0 }
  0x12   : > { %s7713_s3 = sld [smem:[#allocation12_spill]]  ;;  %s4793_s20 = smov [#allocation3]  }
  0x13   : > { %p4220_p12 = pneg %p4895_p10  ;;  %s238_s21 = sshll.u32 %s4793_s20, 4  ;;  %s239_s21 = int_to_ptr.vmem [resolvable:$true] %s238_s21 }
  0x14   : > { %s253_s30 = sshll.u32 %s7705_s5, 4  ;;  %s4794_s8 = smov 640   ;;  %s254_s30 = int_to_ptr.hbm [resolvable:$true] %s253_s30 }
  0x15   : > { %p4221_p13 = pnand %p4899_p11, %p4220_p12  ;;  %s4795_s10 = smov 40  }
  0x16   : > { %s4796_s12 = smov [#allocation6]   ;;  %s4797_s18 = smov 128  }
  0x17   : > { %s255_s17 = sshll.u32 %s4796_s12, 4  ;;  %287 = sbr.rel (%p4895_p10) target bundleno = 925 (0x39d), region = 48  ;;  %s256_s17 = int_to_ptr.vmem [resolvable:$true] %s255_s17 }
  0x18   : > { %s236_s19 = sshll.u32 %s7713_s3, 4  ;;  %s4798_s3 = smov 8   ;;  %s237_s19 = int_to_ptr.hbm [resolvable:$true] %s236_s19 }
  0x19   : > { %4223 = dma.hbm_to_vmem [thread:$0]  (!%p4221_p13), %s237_s19, 10240, %s239_s21, [#allocation4], %s4794_s8, %s4794_s8, %s4795_s10  }
  0x1a   : > { %4226 = dma.hbm_to_vmem [thread:$0]  (!%p4221_p13), %s254_s30, 20480, %s256_s17, [#allocation7], %s4797_s18, %s4797_s18, %s4798_s3  }
  0x1c   : > { %4758 = dma.done.wait (%p4899_p11), [#allocation4], 10240  }
  0x1d   : > { %4760 = vsyncadd (%p4899_p11), [#allocation4], 4294957056 }
  0x1e   : > { %4762 = dma.done.wait (%p4899_p11), [#allocation7], 20480  }
  0x1f   : > { %4764 = vsyncadd (%p4899_p11), [#allocation7], 4294946816  ;;  %p329_p0 = scmp.lt.s32.totalorder %s4783_s27, 1  ;;  %v361_v0 = vld [vmem:[%s7701_s1 + $0x10] sm:$0x3]  ;;  %vm414_vm0 = vcmask 1041408  }
  0x20   : > { %v395_v1 = vunpack.c.l.b16 %v361_v0  ;;  %v4129_v4 = vld [vmem:[%s7701_s1 + $0x8] sm:$0xff]  ;;  %v4128_v5 = vld [vmem:[%s7701_s1] sm:$0xff]  ;;  %vm401_vm1 = vcmask 293888   ;;  %v4003_v12 = vld [vmem:[#allocation3 + $0x230] sm:$0xf]  ;;  %s326_s23 = sand.u32 1, %s4775_s25  }
  0x21   : > { %s330_s15 = scalar_select %p329_p0, %s4783_s27, 1  ;;  %v4201_v10 = vld [vmem:[#allocation3 + $0x23c] sm:$0xf]  ;;  %v4013_v11 = vld [vmem:[#allocation3 + $0x260] sm:$0xf0] }
  0x22   : > { %v398_v2 = vpack.c.b16 %v395_v1, %v395_v1  ;;  %v4016_v13 = vor.u32 %v4201_v10, %v4013_v11  ;;  %v4205_v14 = vld [vmem:[#allocation3 + $0x254] sm:$0xf0]  ;;  %v4200_v15 = vld [vmem:[#allocation3 + $0x234] sm:$0xf]  ;;  %v4005_v16 = vld [vmem:[#allocation3 + $0x258] sm:$0xf0] }
  0x23   : > { %s4123_s16 = sshll.u32 %s330_s15, 5  ;;  %v4004_v17 = vor.u32 %v4205_v14, %v4003_v12  ;;  %v4008_v18 = vor.u32 %v4200_v15, %v4005_v16  ;;  %v4011_v19 = vld [vmem:[#allocation3 + $0x238] sm:$0xf]  ;;  %v4206_v20 = vld [vmem:[#allocation3 + $0x25c] sm:$0xf0]  ;;  %s327_s12 = scalar_lea.vmem [#allocation8], %s326_s23 }
  0x24   : > { %v416_v3 = vsel %vm414_vm0, %v398_v2, 0  ;;  %s336_s10 = scalar_lea.vmem %s7700_s0, %s4123_s16  ;;  %v4012_v21 = vor.u32 %v4206_v20, %v4011_v19  ;;  %v3963_v22 = vld [vmem:[#allocation3 + $0x1e0] sm:$0xf]  ;;  %v4195_v23 = vld [vmem:[#allocation3 + $0x204] sm:$0xf0]  ;;  %s3581_s17 = sshll.u32 %s327_s12, 4  ;;  %s3582_s17 = int_to_ptr.vmem [resolvable:$true] %s3581_s17 }
  0x25   : > { %423 = vmatpush.bf16.msra.mxu0 %v416_v3  ;;  %v4124_v6 = vld [vmem:[%s336_s10] sm:$0xff]  ;;  %v4125_v7 = vld [vmem:[%s336_s10 + $0x8] sm:$0xff]  ;;  %v4126_v8 = vld [vmem:[%s336_s10 + $0x10] sm:$0xff]  ;;  %1115 = vmatpush.bf16.msra.mxu1 %v4004_v17  ;;  %v3964_v25 = vor.u32 %v4195_v23, %v3963_v22  ;;  %s3571_s19 = scalar_lea.sflag [#allocation5], %s326_s23 }
  0x26   : > { %v4127_v9 = vld [vmem:[%s336_s10 + $0x18] sm:$0xff]  ;;  %1144 = vmatpush.bf16.msra.mxu2 %v4008_v18  ;;  %1173 = vmatpush.bf16.msra.mxu3 %v4012_v21  ;;  %v4190_v24 = vld [vmem:[#allocation3 + $0x1e4] sm:$0xf]  ;;  %v3971_v27 = vld [vmem:[#allocation3 + $0x1e8] sm:$0xf]  ;;  %s3579_s10 = scalar_lea.hbm %s7707_s7, %s4783_s27  ;;  %s4725_s27 = scalar_lea.hbm %s7707_s7, 2 }
  0x27   : > { %v3965_v26 = vld [vmem:[#allocation3 + $0x208] sm:$0xf0]  ;;  %v4196_v28 = vld [vmem:[#allocation3 + $0x20c] sm:$0xf0]  ;;  %v3973_v32 = vld [vmem:[#allocation3 + $0x210] sm:$0xf0] }
  0x28   : > { %v3968_v29 = vor.u32 %v4190_v24, %v3965_v26  ;;  %v3972_v30 = vor.u32 %v4196_v28, %v3971_v27  ;;  %v4191_v31 = vld [vmem:[#allocation3 + $0x1ec] sm:$0xf]  ;;  %v3923_v34 = vld [vmem:[#allocation3 + $0x190] sm:$0xf]  ;;  %v4185_v35 = vld [vmem:[#allocation3 + $0x1b4] sm:$0xf0] }
  0x29   : > { %424 = vmatpush.bf16.msra.mxu0 %v4129_v4  ;;  %1116 = vmatpush.bf16.msra.mxu1 %v3964_v25  ;;  %v3976_v33 = vor.u32 %v4191_v31, %v3973_v32  ;;  %v4180_v36 = vld [vmem:[#allocation3 + $0x194] sm:$0xf]  ;;  %v3924_v37 = vor.u32 %v4185_v35, %v3923_v34  ;;  %v3925_v38 = vld [vmem:[#allocation3 + $0x1b8] sm:$0xf0]  ;;  %v3931_v39 = vld [vmem:[#allocation3 + $0x198] sm:$0xf] }
  0x2a   : > { %1145 = vmatpush.bf16.msra.mxu2 %v3968_v29  ;;  %1174 = vmatpush.bf16.msra.mxu3 %v3972_v30  ;;  %v4186_v40 = vld [vmem:[#allocation3 + $0x1bc] sm:$0xf0]  ;;  %v3928_v41 = vor.u32 %v4180_v36, %v3925_v38  ;;  %v4181_v43 = vld [vmem:[#allocation3 + $0x19c] sm:$0xf]  ;;  %v3933_v44 = vld [vmem:[#allocation3 + $0x1c0] sm:$0xf0] }
  0x2b   : > { %v3932_v42 = vor.u32 %v4186_v40, %v3931_v39  ;;  %v3936_v45 = vor.u32 %v4181_v43, %v3933_v44  ;;  %v3883_v46 = vld [vmem:[#allocation3 + $0x140] sm:$0xf]  ;;  %v4175_v47 = vld [vmem:[#allocation3 + $0x164] sm:$0xf0]  ;;  %v4170_v48 = vld [vmem:[#allocation3 + $0x144] sm:$0xf] }
  0x2c   : > { %v3884_v49 = vor.u32 %v4175_v47, %v3883_v46  ;;  %v3885_v50 = vld [vmem:[#allocation3 + $0x168] sm:$0xf0]  ;;  %v3891_v51 = vld [vmem:[#allocation3 + $0x148] sm:$0xf]  ;;  %v4176_v52 = vld [vmem:[#allocation3 + $0x16c] sm:$0xf0] }
  0x2d   : > { %425 = vmatpush.bf16.msra.mxu0 %v4128_v5  ;;  %1117 = vmatpush.bf16.msra.mxu1 %v3924_v37  ;;  %v3888_v53 = vor.u32 %v4170_v48, %v3885_v50  ;;  %v3892_v54 = vor.u32 %v4176_v52, %v3891_v51  ;;  %v4171_v55 = vld [vmem:[#allocation3 + $0x14c] sm:$0xf]  ;;  %v3893_v56 = vld [vmem:[#allocation3 + $0x170] sm:$0xf0]  ;;  %v3843_v58 = vld [vmem:[#allocation3 + $0xf0] sm:$0xf] }
  0x2e   : > { %1146 = vmatpush.bf16.msra.mxu2 %v3928_v41  ;;  %1175 = vmatpush.bf16.msra.mxu3 %v3932_v42  ;;  %v3896_v57 = vor.u32 %v4171_v55, %v3893_v56  ;;  %v4165_v59 = vld [vmem:[#allocation3 + $0x114] sm:$0xf0]  ;;  %v4160_v60 = vld [vmem:[#allocation3 + $0xf4] sm:$0xf]  ;;  %v3845_v62 = vld [vmem:[#allocation3 + $0x118] sm:$0xf0] }
  0x2f   : > { %v3844_v61 = vor.u32 %v4165_v59, %v3843_v58  ;;  %v3851_v63 = vld [vmem:[#allocation3 + $0xf8] sm:$0xf]  ;;  %v4166_v0 = vld [vmem:[#allocation3 + $0x11c] sm:$0xf0]  ;;  %v3848_v1 = vor.u32 %v4160_v60, %v3845_v62  ;;  %v4161_v3 = vld [vmem:[#allocation3 + $0xfc] sm:$0xf] }
  0x30   : > { %3709 = vmatmul.msk.bf16.vlgmr.msra.gmra.mxu0 %vm401_vm1, %v4124_v6  ;;  %v3852_v2 = vor.u32 %v4166_v0, %v3851_v63  ;;  %v3853_v4 = vld [vmem:[#allocation3 + $0x120] sm:$0xf0]  ;;  %v4941_v5 = vld [vmem:[%s7702_s2] ss:$0 sm:$0xff]  ;;  %v3805_v11 = vld [vmem:[#allocation3 + $0xc8] sm:$0xf0] }
  0x31   : > { %1202 = vmatpush.bf16.msrb.mxu0 %v4016_v13  ;;  %1118 = vmatpush.bf16.msra.mxu1 %v3884_v49  ;;  %v3856_v6 = vor.u32 %v4161_v3, %v3853_v4  ;;  %v3811_v12 = vld [vmem:[#allocation3 + $0xa8] sm:$0xf]  ;;  %v4156_v13 = vld [vmem:[#allocation3 + $0xcc] sm:$0xf0]  ;;  %v4151_v17 = vld [vmem:[#allocation3 + $0xac] sm:$0xf] }
  0x32   : > { %1147 = vmatpush.bf16.msra.mxu2 %v3888_v53  ;;  %1176 = vmatpush.bf16.msra.mxu3 %v3892_v54  ;;  %v3812_v16 = vor.u32 %v4156_v13, %v3811_v12  ;;  %v3813_v18 = vld [vmem:[#allocation3 + $0xd0] sm:$0xf0]  ;;  %v3763_v21 = vld [vmem:[#allocation3 + $0x50] sm:$0xf]  ;;  %v4145_v22 = vld [vmem:[#allocation3 + $0x74] sm:$0xf0] }
  0x33   : > { %v3816_v20 = vor.u32 %v4151_v17, %v3813_v18  ;;  %v4140_v23 = vld [vmem:[#allocation3 + $0x54] sm:$0xf]  ;;  %v3764_v25 = vor.u32 %v4145_v22, %v3763_v21  ;;  %v3765_v26 = vld [vmem:[#allocation3 + $0x78] sm:$0xf0]  ;;  %v3771_v27 = vld [vmem:[#allocation3 + $0x58] sm:$0xf] }
  0x34   : > { %v3768_v28 = vor.u32 %v4140_v23, %v3765_v26  ;;  %v4146_v29 = vld [vmem:[#allocation3 + $0x7c] sm:$0xf0]  ;;  %v4141_v30 = vld [vmem:[#allocation3 + $0x5c] sm:$0xf]  ;;  %v3773_v31 = vld [vmem:[#allocation3 + $0x80] sm:$0xf0] }
  0x35   : > { %1203 = vmatpush.bf16.msrb.mxu0 %v3976_v33  ;;  %1119 = vmatpush.bf16.msra.mxu1 %v3844_v61  ;;  %v3772_v32 = vor.u32 %v4146_v29, %v3771_v27  ;;  %v3776_v33 = vor.u32 %v4141_v30, %v3773_v31  ;;  %v3723_v34 = vld [vmem:[#allocation3] sm:$0xf]  ;;  %v4135_v35 = vld [vmem:[#allocation3 + $0x24] sm:$0xf0]  ;;  %v4130_v36 = vld [vmem:[#allocation3 + $0x4] sm:$0xf] }
  0x36   : > { %1148 = vmatpush.bf16.msra.mxu2 %v3848_v1  ;;  %1177 = vmatpush.bf16.msra.mxu3 %v3852_v2  ;;  %v3724_v37 = vor.u32 %v4135_v35, %v3723_v34  ;;  %v3725_v38 = vld [vmem:[#allocation3 + $0x28] sm:$0xf0]  ;;  %v3731_v39 = vld [vmem:[#allocation3 + $0x8] sm:$0xf]  ;;  %v4136_v40 = vld [vmem:[#allocation3 + $0x2c] sm:$0xf0] }
  0x37   : > { %v3728_v42 = vor.u32 %v4130_v36, %v3725_v38  ;;  %v3732_v43 = vor.u32 %v4136_v40, %v3731_v39  ;;  %v4131_v44 = vld [vmem:[#allocation3 + $0xc] sm:$0xf]  ;;  %v4202_v36 = vld [vmem:[#allocation3 + $0x244] sm:$0xf]  ;;  %v4019_v39 = vld [vmem:[#allocation3 + $0x240] sm:$0xf] }
  0x38   : > { %v4027_v40 = vld [vmem:[#allocation3 + $0x248] sm:$0xf]  ;;  %s3583_s18 = sshll.u32 %s3579_s10, 4  ;;  %s3584_s18 = int_to_ptr.hbm [resolvable:$true] %s3583_s18 }
  0x39   : > { %1204 = vmatpush.bf16.msrb.mxu0 %v3936_v45  ;;  %v3733_v45 = vld [vmem:[#allocation3 + $0x30] sm:$0xf0]  ;;  %s4719_s3 = sshra.s32 %s3584_s18, 4  ;;  %s4720_s3 = int_to_ptr.hbm [resolvable:$true] %s4719_s3 }
  0x3a   : > { %1178 = vmatpush.bf16.msra.mxu3 %v3812_v16  ;;  %v3736_v47 = vor.u32 %v4131_v44, %v3733_v45  ;;  %v4208_v44 = vld [vmem:[#allocation3 + $0x26c] sm:$0xf0]  ;;  %s4721_s15 = scalar_lea.hbm %s4720_s3, 1  ;;  %p4726_p5 = scmp.lt.s32.totalorder %s4720_s3, %s7707_s7 }
  0x3b   : > { %p4722_p1 = scmp.ne.s32.totalorder %s4720_s3, %s4721_s15  ;;  %p4727_p6 = scmp.lt.s32.totalorder %s4725_s27, %s4721_s15 }
  0x3d   : > { %1205 = vmatpush.bf16.msrb.mxu0 %v3896_v57  ;;  %p4723_p2 = pnand %p4722_p1, %p4880_p4  ;;  %p4728_p7 = por %p4727_p6, %p4726_p5 }
  0x3e   : > { %1179 = vmatpush.bf16.msra.mxu3 %v3772_v32 }
  0x3f   : > { %p4724_p3 = pneg %p4723_p2 }
  0x40   : > { %3710 = vmatmul.msk.bf16.gmra.mxu0 %vm401_vm1, %v4125_v7  ;;  %v3803_v7 = vld [vmem:[#allocation3 + $0xa0] sm:$0xf] }
  0x41   : > { %1206 = vmatpush.bf16.msrb.mxu0 %v3856_v6  ;;  %p4729_p9 = pnand %p4728_p7, %p4724_p3 }
  0x42   : > { %1180 = vmatpush.bf16.msra.mxu3 %v3732_v43 }
  0x45   : > { %1207 = vmatpush.bf16.msrb.mxu0 %v3816_v20 }
  0x49   : > { %1208 = vmatpush.bf16.msrb.mxu0 %v3776_v33 }
  0x4d   : > { %1209 = vmatpush.bf16.msrb.mxu0 %v3736_v47 }
  0x50   : > { %3711 = vmatmul.msk.bf16.gmra.mxu0 %vm401_vm1, %v4126_v8  ;;  %v4155_v8 = vld [vmem:[#allocation3 + $0xc4] sm:$0xf0] }
  0x51   : > { %v3804_v10 = vor.u32 %v4155_v8, %v3803_v7  ;;  %v4198_v8 = vld [vmem:[#allocation3 + $0x21c] sm:$0xf0] }
  0x53   : > { %1120 = vmatpush.bf16.msra.mxu1 %v3804_v10 }
  0x57   : > { %1121 = vmatpush.bf16.msra.mxu1 %v3764_v25 }
  0x5b   : > { %1122 = vmatpush.bf16.msra.mxu1 %v3724_v37  ;;  %v4021_v37 = vld [vmem:[#allocation3 + $0x268] sm:$0xf0] }
  0x5c   : > { %v4024_v38 = vor.u32 %v4202_v36, %v4021_v37  ;;  %v3947_v36 = vld [vmem:[#allocation3 + $0x1a8] sm:$0xf]  ;;  %v4188_v37 = vld [vmem:[#allocation3 + $0x1cc] sm:$0xf0] }
  0x60   : > { %3712 = vmatmul.msk.bf16.gmra.mxu0 %vm401_vm1, %v4127_v9  ;;  %v4150_v9 = vld [vmem:[#allocation3 + $0xa4] sm:$0xf] }
  0x61   : > { %v3808_v15 = vor.u32 %v4150_v9, %v3805_v11 }
  0x63   : > { %1149 = vmatpush.bf16.msra.mxu2 %v3808_v15 }
  0x67   : > { %1150 = vmatpush.bf16.msra.mxu2 %v3768_v28 }
  0x6b   : > { %1151 = vmatpush.bf16.msra.mxu2 %v3728_v42 }
  0x6f   : > { %1260 = vmatpush.bf16.msrb.mxu2 %v4024_v38  ;;  %v4183_v38 = vld [vmem:[#allocation3 + $0x1ac] sm:$0xf] }
  0xad   : > { %v427_v14 = vpop.f32.mrf.mxu0 }
  0xae   : > { %v4944_v19 = vadd.f32 %v4941_v5, %v427_v14 }
  0xb0   : > { %v3713_v24 = vmul.f32 -1.442695, %v4944_v19 }
  0xb2   : > { %4292 = vpow2.f32 %v3713_v24 }
  0xb5   : > { %v429_v41 = vpop.f32.mrf.mxu0 }
  0xb6   : > { %v4948_v46 = vadd.f32 %v4941_v5, %v429_v41 }
  0xb8   : > { %v4293_v48 = vpop.eup %4292  ;;  %v3714_v49 = vmul.f32 -1.442695, %v4948_v46 }
  0xb9   : > { %v471_v50 = vadd.f32 1.0, %v4293_v48 }
  0xba   : > { %4294 = vpow2.f32 %v3714_v49  ;;  %v4028_v49 = vor.u32 %v4208_v44, %v4027_v40  ;;  %v3949_v40 = vld [vmem:[#allocation3 + $0x1d0] sm:$0xf0] }
  0xbb   : > { %4296 = vrcp.f32 %v471_v50  ;;  %v490_v4 = vand.u32 2147483648, %v471_v50  ;;  %vm484_vm3 = vweird.f32 %v471_v50  ;;  %v488_v6 = vand.u32 2147483647, %v471_v50 }
  0xbc   : > { %1289 = vmatpush.bf16.msrb.mxu3 %v4028_v49 }
  0xbd   : > { %v432_v51 = vpop.f32.mrf.mxu0  ;;  %v491_v15 = vor.u32 1.1754944e-38, %v490_v4  ;;  %vm489_vm6 = vcmp.eq.f32.partialorder %v488_v6, 8.507059e+37 }
  0xbe   : > { %v4952_v52 = vadd.f32 %v4941_v5, %v432_v51  ;;  %v4203_v51 = vld [vmem:[#allocation3 + $0x24c] sm:$0xf] }
  0xc0   : > { %v4295_v53 = vpop.eup %4294  ;;  %v3715_v54 = vmul.f32 -1.442695, %v4952_v52 }
  0xc1   : > { %v4297_v55 = vpop.eup %4296  ;;  %v472_v56 = vadd.f32 1.0, %v4295_v53  ;;  %v4029_v53 = vld [vmem:[#allocation3 + $0x270] sm:$0xf0] }
  0xc2   : > { %v480_v57 = vmul.f32 %v4297_v55, %v471_v50  ;;  %4298 = vpow2.f32 %v3715_v54  ;;  %vm485_vm2 = vweird.f32 %v4297_v55  ;;  %v4032_v6 = vor.u32 %v4203_v51, %v4029_v53  ;;  %v3907_v53 = vld [vmem:[#allocation3 + $0x158] sm:$0xf]  ;;  %v4178_v54 = vld [vmem:[#allocation3 + $0x17c] sm:$0xf0] }
  0xc3   : > { %4300 = vrcp.f32 %v472_v56  ;;  %vm4962_vm4 = vmor %vm484_vm3, %vm485_vm2  ;;  %v503_v9 = vand.u32 2147483647, %v472_v56  ;;  %v505_v10 = vand.u32 2147483648, %v472_v56  ;;  %vm499_vm7 = vweird.f32 %v472_v56 }
  0xc4   : > { %v481_v58 = vsub.f32 1.0, %v480_v57  ;;  %v3981_v57 = vld [vmem:[#allocation3 + $0x218] sm:$0xf0]  ;;  %1318 = vmatpush.bf16.msra.mxu0 %v4032_v6  ;;  %v3948_v51 = vor.u32 %v4188_v37, %v3947_v36  ;;  %v3827_v37 = vld [vmem:[#allocation3 + $0xb8] sm:$0xf] }
  0xc5   : > { %v434_v59 = vpop.f32.mrf.mxu0  ;;  %v506_v22 = vor.u32 1.1754944e-38, %v505_v10  ;;  %vm504_vm9 = vcmp.eq.f32.partialorder %v503_v9, 8.507059e+37 }
  0xc6   : > { %v482_v60 = vmul.f32 %v4297_v55, %v481_v58  ;;  %v4956_v61 = vadd.f32 %v4941_v5, %v434_v59  ;;  %v3952_v58 = vor.u32 %v4183_v38, %v3949_v40  ;;  %v4158_v38 = vld [vmem:[#allocation3 + $0xdc] sm:$0xf0]  ;;  %v4153_v40 = vld [vmem:[#allocation3 + $0xbc] sm:$0xf] }
  0xc8   : > { %v4299_v62 = vpop.eup %4298  ;;  %v3716_v63 = vmul.f32 -1.442695, %v4956_v61  ;;  %v483_v2 = vadd.f32 %v4297_v55, %v482_v60 }
  0xc9   : > { %v4301_v0 = vpop.eup %4300  ;;  %v4959_v1 = vadd.f32 1.0, %v4299_v62 }
  0xca   : > { %v495_v3 = vmul.f32 %v4301_v0, %v472_v56  ;;  %4302 = vpow2.f32 %v3716_v63  ;;  %v487_v12 = vsel %vm4962_vm4, %v4297_v55, %v483_v2  ;;  %vm500_vm5 = vweird.f32 %v4301_v0  ;;  %v4192_v56 = vld [vmem:[#allocation3 + $0x1f4] sm:$0xf]  ;;  %v3979_v63 = vld [vmem:[#allocation3 + $0x1f0] sm:$0xf] }
  0xcb   : > { %4304 = vrcp.f32 %v4959_v1  ;;  %v492_v21 = vsel %vm489_vm6, %v491_v15, %v487_v12  ;;  %vm501_vm8 = vmor %vm499_vm7, %vm500_vm5  ;;  %v518_v30 = vand.u32 2147483647, %v4959_v1  ;;  %v520_v34 = vand.u32 2147483648, %v4959_v1  ;;  %v4193_v12 = vld [vmem:[#allocation3 + $0x1fc] sm:$0xf] }
  0xcc   : > { %v496_v7 = vsub.f32 1.0, %v495_v3  ;;  %v599_v27 = vmul.f32 %v492_v21, %v4944_v19  ;;  %v4207_v19 = vld [vmem:[#allocation3 + $0x264] sm:$0xf0]  ;;  %vm514_vm11 = vweird.f32 %v4959_v1  ;;  %v3984_v62 = vor.u32 %v4192_v56, %v3981_v57  ;;  %v4182_v15 = vld [vmem:[#allocation3 + $0x1a4] sm:$0xf] }
  0xcd   : > { %v437_v11 = vpop.f32.mrf.mxu0  ;;  %v4020_v43 = vor.u32 %v4207_v19, %v4019_v39  ;;  %vm5004_vm12 = vcmp.eq.f32.partialorder %v518_v30, 8.507059e+37  ;;  %v521_v55 = vor.u32 1.1754944e-38, %v520_v34  ;;  %v3901_v19 = vld [vmem:[#allocation3 + $0x178] sm:$0xf0] }
  0xce   : > { %v497_v13 = vmul.f32 %v4301_v0, %v496_v7  ;;  %v4969_v14 = vadd.f32 %v4941_v5, %v437_v11  ;;  %v3987_v7 = vld [vmem:[#allocation3 + $0x1f8] sm:$0xf]  ;;  %1261 = vmatpush.bf16.msrb.mxu2 %v3984_v62  ;;  %v4167_v62 = vld [vmem:[#allocation3 + $0x124] sm:$0xf0] }
  0xcf   : > { %1231 = vmatpush.bf16.msrb.mxu1 %v4020_v43  ;;  %v3988_v11 = vor.u32 %v4198_v8, %v3987_v7  ;;  %v4138_v8 = vld [vmem:[#allocation3 + $0x3c] sm:$0xf0] }
  0xd0   : > { %v4303_v16 = vpop.eup %4302  ;;  %v498_v17 = vadd.f32 %v4301_v0, %v497_v13  ;;  %v3717_v18 = vmul.f32 -1.442695, %v4969_v14  ;;  %v3989_v13 = vld [vmem:[#allocation3 + $0x220] sm:$0xf0] }
  0xd1   : > { %v4972_v20 = vpop.eup %4304  ;;  %v4974_v23 = vadd.f32 1.0, %v4303_v16  ;;  %v3941_v16 = vld [vmem:[#allocation3 + $0x1c8] sm:$0xf0]  ;;  %1290 = vmatpush.bf16.msrb.mxu3 %v3988_v11  ;;  %v4173_v11 = vld [vmem:[#allocation3 + $0x15c] sm:$0xf] }
  0xd2   : > { %v502_v24 = vsel %vm501_vm8, %v4301_v0, %v498_v17  ;;  %v510_v25 = vmul.f32 %v4972_v20, %v4959_v1  ;;  %4306 = vpow2.f32 %v3717_v18  ;;  %vm515_vm10 = vweird.f32 %v4972_v20  ;;  %v4197_v0 = vld [vmem:[#allocation3 + $0x214] sm:$0xf0]  ;;  %v3939_v17 = vld [vmem:[#allocation3 + $0x1a0] sm:$0xf] }
  0xd3   : > { %v507_v26 = vsel %vm504_vm9, %v506_v22, %v502_v24  ;;  %4308 = vrcp.f32 %v4974_v23  ;;  %v533_v47 = vand.u32 2147483647, %v4974_v23  ;;  %vm5011_vm13 = vmor %vm514_vm11, %vm515_vm10  ;;  %v535_v60 = vand.u32 2147483648, %v4974_v23 }
  0xd4   : > { %v600_v28 = vmul.f32 %v507_v26, %v4948_v46  ;;  %v511_v29 = vsub.f32 1.0, %v510_v25  ;;  %v3980_v4 = vor.u32 %v4197_v0, %v3979_v63  ;;  %vm529_vm1 = vweird.f32 %v4974_v23  ;;  %v4187_v26 = vld [vmem:[#allocation3 + $0x1c4] sm:$0xf0]  ;;  %v4152_v63 = vld [vmem:[#allocation3 + $0xb4] sm:$0xf] }
  0xd5   : > { %v439_v31 = vpop.f32.mrf.mxu0  ;;  %vm5019_vm14 = vcmp.eq.f32.partialorder %v533_v47, 8.507059e+37  ;;  %v3992_v18 = vor.u32 %v4193_v12, %v3989_v13  ;;  %v536_v22 = vor.u32 1.1754944e-38, %v535_v60  ;;  %v3944_v25 = vor.u32 %v4182_v15, %v3941_v16  ;;  %v3859_v60 = vld [vmem:[#allocation3 + $0x100] sm:$0xf]  ;;  %1291 = vmatpush.bf16.msrb.mxu3 %v3948_v51  ;;  %v3909_v12 = vld [vmem:[#allocation3 + $0x180] sm:$0xf0] }
  0xd6   : > { %v4982_v32 = vpack.c.bf16 %v600_v28, %v599_v27  ;;  %v512_v33 = vmul.f32 %v4972_v20, %v511_v29  ;;  %v4987_v35 = vadd.f32 %v4941_v5, %v439_v31  ;;  %1232 = vmatpush.bf16.msrb.mxu1 %v3980_v4  ;;  %v3940_v31 = vor.u32 %v4187_v26, %v3939_v17  ;;  %v3821_v4 = vld [vmem:[#allocation3 + $0xd8] sm:$0xf0]  ;;  %v3819_v16 = vld [vmem:[#allocation3 + $0xb0] sm:$0xf]  ;;  %v4157_v17 = vld [vmem:[#allocation3 + $0xd4] sm:$0xf0] }
  0xd7   : > { %1262 = vmatpush.bf16.msrb.mxu2 %v3944_v25  ;;  %1319 = vmatpush.bf16.msra.mxu0 %v3992_v18  ;;  %v3908_v0 = vor.u32 %v4178_v54, %v3907_v53  ;;  %v3824_v15 = vor.u32 %v4152_v63, %v3821_v4  ;;  %v4142_v18 = vld [vmem:[#allocation3 + $0x64] sm:$0xf]  ;;  %v4148_v51 = vld [vmem:[#allocation3 + $0x8c] sm:$0xf0]  ;;  %v4137_v63 = vld [vmem:[#allocation3 + $0x34] sm:$0xf0] }
  0xd8   : > { %v4307_v41 = vpop.eup %4306  ;;  %v3718_v42 = vmul.f32 -1.442695, %v4987_v35  ;;  %1123 = vmatmul.bf16.vlgmr.msra.gmra.mxu1 %v4982_v32  ;;  %1152 = vmatmul.bf16.vlgmr.msra.gmra.mxu2 %v4982_v32  ;;  %v513_v46 = vadd.f32 %v4972_v20, %v512_v33 }
  0xd9   : > { %v4993_v45 = vpop.eup %4308  ;;  %v4997_v48 = vadd.f32 1.0, %v4307_v41  ;;  %1181 = vmatmul.bf16.vlgmr.msra.gmra.mxu3 %v4982_v32  ;;  %1210 = vmatmul.bf16.vlgmr.msrb.gmra.mxu0 %v4982_v32 }
  0xda   : > { %v525_v50 = vmul.f32 %v4993_v45, %v4974_v23  ;;  %4310 = vpow2.f32 %v3718_v42  ;;  %v517_v1 = vsel %vm5011_vm13, %v4972_v20, %v513_v46  ;;  %vm530_vm15 = vweird.f32 %v4993_v45  ;;  %1233 = vmatpush.bf16.msrb.mxu1 %v3940_v31  ;;  %v4172_v23 = vld [vmem:[#allocation3 + $0x154] sm:$0xf]  ;;  %v4177_v46 = vld [vmem:[#allocation3 + $0x174] sm:$0xf0]  ;;  %1292 = vmatpush.bf16.msrb.mxu3 %v3908_v0 }
  0xdb   : > { %4312 = vrcp.f32 %v4997_v48  ;;  %v522_v28 = vsel %vm5004_vm12, %v521_v55, %v517_v1  ;;  %vm531_vm2 = vmor %vm529_vm1, %vm530_vm15  ;;  %v548_v29 = vand.u32 2147483647, %v4997_v48  ;;  %v3904_v44 = vor.u32 %v4172_v23, %v3901_v19  ;;  %1320 = vmatpush.bf16.msra.mxu0 %v3952_v58  ;;  %v3869_v31 = vld [vmem:[#allocation3 + $0x130] sm:$0xf0] }
  0xdc   : > { %v526_v59 = vsub.f32 1.0, %v525_v50  ;;  %v601_v41 = vmul.f32 %v522_v28, %v4952_v52  ;;  %v550_v47 = vand.u32 2147483648, %v4997_v48  ;;  %v4162_v52 = vld [vmem:[#allocation3 + $0x104] sm:$0xf]  ;;  %vm544_vm5 = vweird.f32 %v4997_v48 }
  0xdd   : > { %v442_v3 = vpop.f32.mrf.mxu0  ;;  %1263 = vmatpush.bf16.msrb.mxu2 %v3904_v44  ;;  %vm5065_vm4 = vcmp.eq.f32.partialorder %v548_v29, 8.507059e+37  ;;  %v3912_v28 = vor.u32 %v4173_v11, %v3909_v12  ;;  %v4163_v29 = vld [vmem:[#allocation3 + $0x10c] sm:$0xf]  ;;  %v4132_v44 = vld [vmem:[#allocation3 + $0x14] sm:$0xf] }
  0xde   : > { %v527_v9 = vmul.f32 %v4993_v45, %v526_v59  ;;  %v5026_v10 = vadd.f32 %v4941_v5, %v442_v3  ;;  %v551_v25 = vor.u32 1.1754944e-38, %v550_v47  ;;  %v3872_v19 = vor.u32 %v4163_v29, %v3869_v31  ;;  %v3997_v29 = vld [vmem:[#allocation3 + $0x228] sm:$0xf0] }
  0xdf   : > { %1321 = vmatpush.bf16.msra.mxu0 %v3912_v28  ;;  %v4194_v28 = vld [vmem:[#allocation3 + $0x204] sm:$0xf] }
  0xe0   : > { %v4311_v20 = vpop.eup %4310  ;;  %v528_v21 = vadd.f32 %v4993_v45, %v527_v9  ;;  %v3719_v24 = vmul.f32 -1.442695, %v5026_v10 }
  0xe1   : > { %v5031_v27 = vpop.eup %4312  ;;  %v5040_v30 = vadd.f32 1.0, %v4311_v20  ;;  %v3781_v20 = vld [vmem:[#allocation3 + $0x88] sm:$0xf0] }
  0xe2   : > { %v532_v33 = vsel %vm531_vm2, %v4993_v45, %v528_v21  ;;  %v540_v34 = vmul.f32 %v5031_v27, %v4997_v48  ;;  %4314 = vpow2.f32 %v3719_v24  ;;  %v3899_v45 = vld [vmem:[#allocation3 + $0x150] sm:$0xf]  ;;  %vm545_vm3 = vweird.f32 %v5031_v27  ;;  %v3867_v21 = vld [vmem:[#allocation3 + $0x108] sm:$0xf] }
  0xe3   : > { %v537_v39 = vsel %vm5019_vm14, %v536_v22, %v532_v33  ;;  %4316 = vrcp.f32 %v5040_v30  ;;  %v3900_v50 = vor.u32 %v4177_v46, %v3899_v45  ;;  %v563_v2 = vand.u32 2147483647, %v5040_v30  ;;  %v4168_v22 = vld [vmem:[#allocation3 + $0x12c] sm:$0xf0]  ;;  %vm5079_vm6 = vmor %vm544_vm5, %vm545_vm3  ;;  %1322 = vmatpush.bf16.msra.mxu0 %v3872_v19 }
  0xe4   : > { %v602_v42 = vmul.f32 %v537_v39, %v4956_v61  ;;  %v541_v43 = vsub.f32 1.0, %v540_v34  ;;  %v3861_v61 = vld [vmem:[#allocation3 + $0x128] sm:$0xf0]  ;;  %v565_v33 = vand.u32 2147483648, %v5040_v30  ;;  %v3820_v34 = vor.u32 %v4157_v17, %v3819_v16  ;;  %v4133_v16 = vld [vmem:[#allocation3 + $0x1c] sm:$0xf] }
  0xe5   : > { %v444_v49 = vpop.f32.mrf.mxu0  ;;  %1234 = vmatpush.bf16.msrb.mxu1 %v3900_v50  ;;  %v3864_v59 = vor.u32 %v4162_v52, %v3861_v61  ;;  %v3868_v36 = vor.u32 %v4168_v22, %v3867_v21  ;;  %v3784_v23 = vor.u32 %v4142_v18, %v3781_v20  ;;  %vm559_vm8 = vweird.f32 %v5040_v30  ;;  %v3787_v50 = vld [vmem:[#allocation3 + $0x68] sm:$0xf]  ;;  %v3749_v17 = vld [vmem:[#allocation3 + $0x40] sm:$0xf0]  ;;  %v4037_v18 = vld [vmem:[#allocation3 + $0x278] sm:$0xf0] }
  0xe6   : > { %v5051_v55 = vpack.c.bf16 %v602_v42, %v601_v41  ;;  %v542_v56 = vmul.f32 %v5031_v27, %v541_v43  ;;  %v5055_v57 = vadd.f32 %v4941_v5, %v444_v49  ;;  %v3860_v5 = vor.u32 %v4167_v62, %v3859_v60  ;;  %v3829_v41 = vld [vmem:[#allocation3 + $0xe0] sm:$0xf0]  ;;  %v4147_v43 = vld [vmem:[#allocation3 + $0x84] sm:$0xf0]  ;;  %v3741_v49 = vld [vmem:[#allocation3 + $0x38] sm:$0xf0] }
  0xe7   : > { %1264 = vmatpush.bf16.msrb.mxu2 %v3864_v59  ;;  %1293 = vmatpush.bf16.msrb.mxu3 %v3868_v36  ;;  %v3828_v42 = vor.u32 %v4158_v38, %v3827_v37  ;;  %v3832_v61 = vor.u32 %v4153_v40, %v3829_v41  ;;  %vm564_vm10 = vcmp.eq.f32.partialorder %v563_v2, 8.507059e+37  ;;  %v3744_v60 = vor.u32 %v4132_v44, %v3741_v49  ;;  %v3739_v62 = vld [vmem:[#allocation3 + $0x10] sm:$0xf]  ;;  %v4184_v49 = vld [vmem:[#allocation3 + $0x1b4] sm:$0xf] }
  0xe8   : > { %v4315_v1 = vpop.eup %4314  ;;  %v3720_v3 = vmul.f32 -1.442695, %v5055_v57  ;;  %1128 = vmatmul.bf16.gmra.mxu1 %v5051_v55  ;;  %1157 = vmatmul.bf16.gmra.mxu2 %v5051_v55  ;;  %v543_v7 = vadd.f32 %v5031_v27, %v542_v56  ;;  %v566_v56 = vor.u32 1.1754944e-38, %v565_v33  ;;  %v4035_v20 = vld [vmem:[#allocation3 + $0x250] sm:$0xf]  ;;  %v3752_v24 = vor.u32 %v4133_v16, %v3749_v17 }
  0xe9   : > { %v5061_v6 = vpop.eup %4316  ;;  %v5069_v9 = vadd.f32 1.0, %v4315_v1  ;;  %1186 = vmatmul.bf16.gmra.mxu3 %v5051_v55  ;;  %1215 = vmatmul.bf16.gmra.mxu0 %v5051_v55  ;;  %v3788_v1 = vor.u32 %v4148_v51, %v3787_v50  ;;  %v4000_v36 = vor.u32 %v4194_v28, %v3997_v29  ;;  %v3957_v51 = vld [vmem:[#allocation3 + $0x1d8] sm:$0xf0]  ;;  %v4149_v16 = vld [vmem:[#allocation3 + $0x94] sm:$0xf0] }
  0xea   : > { %v555_v13 = vmul.f32 %v5061_v6, %v5040_v30  ;;  %4318 = vpow2.f32 %v3720_v3  ;;  %1235 = vmatpush.bf16.msrb.mxu1 %v3860_v5  ;;  %v547_v48 = vsel %vm5079_vm6, %v5031_v27, %v543_v7  ;;  %vm560_vm7 = vweird.f32 %v5061_v6  ;;  %v3779_v27 = vld [vmem:[#allocation3 + $0x60] sm:$0xf]  ;;  %v4143_v3 = vld [vmem:[#allocation3 + $0x6c] sm:$0xf]  ;;  %v3789_v5 = vld [vmem:[#allocation3 + $0x90] sm:$0xf0]  ;;  %1323 = vmatpush.bf16.msra.mxu0 %v3832_v61 }
  0xeb   : > { %4320 = vrcp.f32 %v5069_v9  ;;  %1265 = vmatpush.bf16.msrb.mxu2 %v3824_v15  ;;  %v3780_v47 = vor.u32 %v4147_v43, %v3779_v27  ;;  %v552_v54 = vsel %vm5065_vm4, %v551_v25, %v547_v48  ;;  %vm561_vm9 = vmor %vm559_vm8, %vm560_vm7  ;;  %1294 = vmatpush.bf16.msrb.mxu3 %v3828_v42  ;;  %v3747_v7 = vld [vmem:[#allocation3 + $0x18] sm:$0xf]  ;;  %v580_v31 = vand.u32 2147483648, %v5069_v9 }
  0xec   : > { %v556_v26 = vsub.f32 1.0, %v555_v13  ;;  %v603_v4 = vmul.f32 %v552_v54, %v4969_v14  ;;  %v3792_v13 = vor.u32 %v4143_v3, %v3789_v5  ;;  %v3748_v15 = vor.u32 %v4138_v8, %v3747_v7  ;;  %v4189_v54 = vld [vmem:[#allocation3 + $0x1d4] sm:$0xf0]  ;;  %v4154_v5 = vld [vmem:[#allocation3 + $0xc4] sm:$0xf] }
  0xed   : > { %vm574_vm12 = vweird.f32 %v5069_v9  ;;  %v578_v33 = vand.u32 2147483647, %v5069_v9  ;;  %v581_v19 = vor.u32 1.1754944e-38, %v580_v31  ;;  %v4159_v7 = vld [vmem:[#allocation3 + $0xe4] sm:$0xf0] }
  0xee   : > { %v557_v39 = vmul.f32 %v5061_v6, %v556_v26  ;;  %1236 = vmatpush.bf16.msrb.mxu1 %v3820_v34  ;;  %1324 = vmatpush.bf16.msra.mxu0 %v3792_v13  ;;  %v4209_v26 = vld [vmem:[#allocation3 + $0x274] sm:$0xf0]  ;;  %v4144_v8 = vld [vmem:[#allocation3 + $0x74] sm:$0xf]  ;;  %v3797_v13 = vld [vmem:[#allocation3 + $0x98] sm:$0xf0] }
  0xef   : > { %1266 = vmatpush.bf16.msrb.mxu2 %v3784_v23  ;;  %1295 = vmatpush.bf16.msrb.mxu3 %v3788_v1  ;;  %v4036_v48 = vor.u32 %v4209_v26, %v4035_v20  ;;  %vm579_vm15 = vcmp.eq.f32.partialorder %v578_v33, 8.507059e+37  ;;  %v4169_v1 = vld [vmem:[#allocation3 + $0x134] sm:$0xf0]  ;;  %v3800_v17 = vor.u32 %v4144_v8, %v3797_v13 }
  0xf0   : > { %v4319_v45 = vpop.eup %4318  ;;  %v558_v46 = vadd.f32 %v5061_v6, %v557_v39 }
  0xf1   : > { %v5091_v53 = vpop.eup %4320  ;;  %v5097_v52 = vadd.f32 1.0, %v4319_v45 }
  0xf2   : > { %v562_v58 = vsel %vm561_vm9, %v5061_v6, %v558_v46  ;;  %v570_v59 = vmul.f32 %v5091_v53, %v5069_v9  ;;  %1237 = vmatpush.bf16.msrb.mxu1 %v3780_v47  ;;  %v3740_v6 = vor.u32 %v4137_v63, %v3739_v62  ;;  %vm575_vm11 = vweird.f32 %v5091_v53  ;;  %1325 = vmatpush.bf16.msra.mxu0 %v3752_v24  ;;  %v3995_v46 = vld [vmem:[#allocation3 + $0x200] sm:$0xf]  ;;  %v4199_v47 = vld [vmem:[#allocation3 + $0x224] sm:$0xf0]  ;;  %v3877_v63 = vld [vmem:[#allocation3 + $0x138] sm:$0xf0] }
  0xf3   : > { %v567_v0 = vsel %vm564_vm10, %v566_v56, %v562_v58  ;;  %4322 = vrcp.f32 %v5097_v52  ;;  %1267 = vmatpush.bf16.msrb.mxu2 %v3744_v60  ;;  %1296 = vmatpush.bf16.msrb.mxu3 %v3748_v15  ;;  %vm576_vm13 = vmor %vm574_vm12, %vm575_vm11  ;;  %v595_v37 = vand.u32 2147483648, %v5097_v52  ;;  %v593_v23 = vand.u32 2147483647, %v5097_v52  ;;  %v4174_v56 = vld [vmem:[#allocation3 + $0x164] sm:$0xf] }
  0xf4   : > { %v604_v30 = vmul.f32 %v567_v0, %v4987_v35  ;;  %v571_v2 = vsub.f32 1.0, %v570_v59  ;;  %v4204_v35 = vld [vmem:[#allocation3 + $0x254] sm:$0xf]  ;;  %vm589_vm1 = vweird.f32 %v5097_v52  ;;  %v3996_v50 = vor.u32 %v4199_v47, %v3995_v46  ;;  %v3915_v58 = vld [vmem:[#allocation3 + $0x160] sm:$0xf] }
  0xf5   : > { %v4040_v25 = vor.u32 %v4204_v35, %v4037_v18  ;;  %v596_v41 = vor.u32 1.1754944e-38, %v595_v37  ;;  %vm594_vm3 = vcmp.eq.f32.partialorder %v593_v23, 8.507059e+37  ;;  %v4179_v59 = vld [vmem:[#allocation3 + $0x184] sm:$0xf0]  ;;  %v4164_v60 = vld [vmem:[#allocation3 + $0x114] sm:$0xf] }
  0xf6   : > { %v5107_v11 = vpack.c.bf16 %v604_v30, %v603_v4  ;;  %v572_v12 = vmul.f32 %v5091_v53, %v571_v2  ;;  %1238 = vmatpush.bf16.msrb.mxu1 %v3740_v6  ;;  %v3916_v62 = vor.u32 %v4179_v59, %v3915_v58  ;;  %v3875_v0 = vld [vmem:[#allocation3 + $0x110] sm:$0xf]  ;;  %v3880_v3 = vor.u32 %v4164_v60, %v3877_v63  ;;  %v3837_v4 = vld [vmem:[#allocation3 + $0xe8] sm:$0xf0]  ;;  %v3835_v6 = vld [vmem:[#allocation3 + $0xc0] sm:$0xf] }
  0xf7   : > { %1376 = vmatpush.bf16.msra.mxu2 %v4040_v25  ;;  %v3876_v30 = vor.u32 %v4169_v1, %v3875_v0  ;;  %v3840_v2 = vor.u32 %v4154_v5, %v3837_v4  ;;  %v3795_v15 = vld [vmem:[#allocation3 + $0x70] sm:$0xf]  ;;  %v3757_v35 = vld [vmem:[#allocation3 + $0x48] sm:$0xf0]  ;;  %v691_v25 = vld [vmem:[%s7704_s4] sm:$0xff] }
  0xf8   : > { %1133 = vmatmul.bf16.gmra.mxu1 %v5107_v11  ;;  %1162 = vmatmul.bf16.gmra.mxu2 %v5107_v11  ;;  %v573_v21 = vadd.f32 %v5091_v53, %v572_v12  ;;  %v3836_v12 = vor.u32 %v4159_v7, %v3835_v6  ;;  %v3796_v18 = vor.u32 %v4149_v16, %v3795_v15  ;;  %v5153_v26 = vperm.slane %v691_v25, 0 }
  0xf9   : > { %v4323_v14 = vpop.eup %4322  ;;  %1191 = vmatmul.bf16.gmra.mxu3 %v5107_v11  ;;  %1220 = vmatmul.bf16.gmra.mxu0 %v5107_v11  ;;  %v5155_v28 = vperm.slane %v691_v25, 3 }
  0xfa   : > { %v585_v22 = vmul.f32 %v4323_v14, %v5097_v52  ;;  %1347 = vmatpush.bf16.msra.mxu1 %v4036_v48  ;;  %v577_v38 = vsel %vm576_vm13, %v5091_v53, %v573_v21  ;;  %vm590_vm14 = vweird.f32 %v4323_v14  ;;  %v3955_v53 = vld [vmem:[#allocation3 + $0x1b0] sm:$0xf]  ;;  %v3755_v21 = vld [vmem:[#allocation3 + $0x20] sm:$0xf] }
  0xfb   : > { %1377 = vmatpush.bf16.msra.mxu2 %v4000_v36  ;;  %v582_v9 = vsel %vm579_vm15, %v581_v19, %v577_v38  ;;  %vm591_vm2 = vmor %vm589_vm1, %vm590_vm14  ;;  %v3956_v52 = vor.u32 %v4189_v54, %v3955_v53  ;;  %v5166_v36 = vperm.slane %v691_v25, 1  ;;  %v5169_v38 = vperm.slane %v691_v25, 2 }
  0xfc   : > { %v586_v34 = vsub.f32 1.0, %v585_v22  ;;  %v605_v43 = vmul.f32 %v582_v9, %v5026_v10  ;;  %v3960_v10 = vor.u32 %v4184_v49, %v3957_v51  ;;  %v4139_v22 = vld [vmem:[#allocation3 + $0x44] sm:$0xf0] }
  0xfd   : > { %v3756_v24 = vor.u32 %v4139_v22, %v3755_v21 }
  0xfe   : > { %v587_v39 = vmul.f32 %v4323_v14, %v586_v34  ;;  %1348 = vmatpush.bf16.msra.mxu1 %v3996_v50 }
  0xff   : > { %1378 = vmatpush.bf16.msra.mxu2 %v3960_v10 }
 0x100   : > { %v588_v40 = vadd.f32 %v4323_v14, %v587_v39 }
 0x102   : > { %v592_v42 = vsel %vm591_vm2, %v4323_v14, %v588_v40  ;;  %1349 = vmatpush.bf16.msra.mxu1 %v3956_v52  ;;  %v4134_v14 = vld [vmem:[#allocation3 + $0x24] sm:$0xf] }
 0x103   : > { %v597_v27 = vsel %vm594_vm3, %v596_v41, %v592_v42  ;;  %v3760_v20 = vor.u32 %v4134_v14, %v3757_v35 }
 0x104   : > { %v606_v44 = vmul.f32 %v597_v27, %v5055_v57  ;;  %v3917_v57 = vld [vmem:[#allocation3 + $0x188] sm:$0xf0] }
 0x105   : > { %v3920_v61 = vor.u32 %v4174_v56, %v3917_v57 }
 0x106   : > { %v5128_v45 = vpack.c.bf16 %v606_v44, %v605_v43  ;;  %1350 = vmatpush.bf16.msra.mxu1 %v3916_v62 }
 0x107   : > { %1379 = vmatpush.bf16.msra.mxu2 %v3920_v61 }
 0x108   : > { %1138 = vmatmul.bf16.gmra.mxu1 %v5128_v45  ;;  %1167 = vmatmul.bf16.gmra.mxu2 %v5128_v45 }
 0x109   : > { %1196 = vmatmul.bf16.gmra.mxu3 %v5128_v45  ;;  %1225 = vmatmul.bf16.gmra.mxu0 %v5128_v45 }
 0x10a   : > { %1351 = vmatpush.bf16.msra.mxu1 %v3876_v30 }
 0x10b   : > { %1380 = vmatpush.bf16.msra.mxu2 %v3880_v3 }
 0x10e   : > { %1352 = vmatpush.bf16.msra.mxu1 %v3836_v12 }
 0x10f   : > { %1381 = vmatpush.bf16.msra.mxu2 %v3840_v2 }
 0x112   : > { %1353 = vmatpush.bf16.msra.mxu1 %v3796_v18 }
 0x113   : > { %1382 = vmatpush.bf16.msra.mxu2 %v3800_v17 }
 0x116   : > { %1354 = vmatpush.bf16.msra.mxu1 %v3756_v24 }
 0x117   : > { %1383 = vmatpush.bf16.msra.mxu2 %v3760_v20 }
 0x118   : > { %1239 = vmatmul.bf16.vlgmr.msrb.gmra.mxu1 %v4982_v32  ;;  %1268 = vmatmul.bf16.vlgmr.msrb.gmra.mxu2 %v4982_v32 }
 0x119   : > { %1297 = vmatmul.bf16.vlgmr.msrb.gmra.mxu3 %v4982_v32  ;;  %1326 = vmatmul.bf16.vlgmr.msra.gmra.mxu0 %v4982_v32 }
 0x128   : > { %1244 = vmatmul.bf16.gmra.mxu1 %v5051_v55  ;;  %1273 = vmatmul.bf16.gmra.mxu2 %v5051_v55 }
 0x129   : > { %1302 = vmatmul.bf16.gmra.mxu3 %v5051_v55  ;;  %1331 = vmatmul.bf16.gmra.mxu0 %v5051_v55 }
 0x138   : > { %1249 = vmatmul.bf16.gmra.mxu1 %v5107_v11  ;;  %1278 = vmatmul.bf16.gmra.mxu2 %v5107_v11 }
 0x139   : > { %1307 = vmatmul.bf16.gmra.mxu3 %v5107_v11  ;;  %1336 = vmatmul.bf16.gmra.mxu0 %v5107_v11 }
 0x148   : > { %1254 = vmatmul.bf16.gmra.mxu1 %v5128_v45  ;;  %1283 = vmatmul.bf16.gmra.mxu2 %v5128_v45 }
 0x149   : > { %1312 = vmatmul.bf16.gmra.mxu3 %v5128_v45  ;;  %1341 = vmatmul.bf16.gmra.mxu0 %v5128_v45 }
 0x155   : > { %v1124_v29 = vpop.f32.mrf.mxu1 }
 0x156   : > { %v5158_v31 = vadd.f32 %v1124_v29, %v5153_v26  ;;  %v1211_v48 = vpop.f32.mrf.mxu0 }
 0x157   : > { %v5161_v33 = vadd.f32 %v1211_v48, %v5155_v28 }
 0x158   : > { %v4041_v34 = vmul.f32 -1.442695, %v5158_v31  ;;  %1355 = vmatmul.bf16.vlgmr.msra.gmra.mxu1 %v4982_v32  ;;  %1384 = vmatmul.bf16.vlgmr.msra.gmra.mxu2 %v4982_v32 }
 0x159   : > { %v4044_v37 = vmul.f32 -1.442695, %v5161_v33 }
 0x15a   : > { %4324 = vpow2.f32 %v4041_v34 }
 0x15b   : > { %4326 = vpow2.f32 %v4044_v37  ;;  %v1153_v39 = vpop.f32.mrf.mxu2 }
 0x15c   : > { %v5172_v23 = vadd.f32 %v1153_v39, %v5166_v36  ;;  %v1182_v19 = vpop.f32.mrf.mxu3 }
 0x15d   : > { %v5175_v40 = vadd.f32 %v1182_v19, %v5169_v38  ;;  %v1126_v9 = vpop.f32.mrf.mxu1 }
 0x15e   : > { %v4042_v41 = vmul.f32 -1.442695, %v5172_v23  ;;  %v5179_v32 = vadd.f32 %v1126_v9, %v5153_v26  ;;  %v1213_v42 = vpop.f32.mrf.mxu0 }
 0x15f   : > { %v4043_v27 = vmul.f32 -1.442695, %v5175_v40  ;;  %v5183_v43 = vadd.f32 %v1213_v42, %v5155_v28 }
 0x160   : > { %v4325_v44 = vpop.eup %4324  ;;  %4328 = vpow2.f32 %v4042_v41  ;;  %v4051_v46 = vmul.f32 -1.442695, %v5179_v32 }
 0x161   : > { %v4327_v47 = vpop.eup %4326  ;;  %v5186_v49 = vadd.f32 1.0, %v4325_v44  ;;  %4330 = vpow2.f32 %v4043_v27  ;;  %v4054_v50 = vmul.f32 -1.442695, %v5183_v43 }
 0x162   : > { %v1648_v51 = vadd.f32 1.0, %v4327_v47  ;;  %4332 = vpow2.f32 %v4051_v46 }
 0x163   : > { %4334 = vrcp.f32 %v5186_v49  ;;  %v1155_v53 = vpop.f32.mrf.mxu2  ;;  %v1736_v0 = vand.u32 2147483648, %v5186_v49  ;;  %vm1730_vm4 = vweird.f32 %v5186_v49 }
 0x164   : > { %4336 = vrcp.f32 %v1648_v51  ;;  %v5191_v54 = vadd.f32 %v1155_v53, %v5166_v36  ;;  %v1184_v60 = vpop.f32.mrf.mxu3  ;;  %v1779_v1 = vand.u32 2147483647, %v1648_v51  ;;  %v1781_v30 = vand.u32 2147483648, %v1648_v51 }
 0x165   : > { %4338 = vpow2.f32 %v4054_v50  ;;  %v1129_v3 = vpop.f32.mrf.mxu1  ;;  %vm1775_vm5 = vweird.f32 %v1648_v51  ;;  %v5215_v7 = vadd.f32 %v1184_v60, %v5169_v38  ;;  %v1737_v17 = vor.u32 1.1754944e-38, %v1736_v0 }
 0x166   : > { %v4329_v10 = vpop.eup %4328  ;;  %v4052_v59 = vmul.f32 -1.442695, %v5191_v54  ;;  %v1216_v8 = vpop.f32.mrf.mxu0  ;;  %v5220_v15 = vadd.f32 %v1129_v3, %v5153_v26  ;;  %vm5223_vm6 = vcmp.eq.f32.partialorder %v1779_v1, 8.507059e+37  ;;  %v1782_v20 = vor.u32 1.1754944e-38, %v1781_v30 }
 0x167   : > { %v4331_v56 = vpop.eup %4330  ;;  %v5193_v57 = vadd.f32 1.0, %v4329_v10  ;;  %v5233_v22 = vadd.f32 %v1216_v8, %v5155_v28  ;;  %v4053_v39 = vmul.f32 -1.442695, %v5215_v7 }
 0x168   : > { %v4333_v52 = vpop.eup %4332  ;;  %v5195_v61 = vadd.f32 1.0, %v4331_v56  ;;  %1360 = vmatmul.bf16.gmra.mxu1 %v5051_v55  ;;  %1389 = vmatmul.bf16.gmra.mxu2 %v5051_v55  ;;  %v1734_v55 = vand.u32 2147483647, %v5186_v49  ;;  %v4061_v19 = vmul.f32 -1.442695, %v5220_v15 }
 0x169   : > { %v5199_v58 = vpop.eup %4334  ;;  %4340 = vrcp.f32 %v5193_v57  ;;  %v5212_v6 = vadd.f32 1.0, %v4333_v52  ;;  %v1751_v21 = vand.u32 2147483648, %v5193_v57  ;;  %v1749_v42 = vand.u32 2147483647, %v5193_v57 }
 0x16a   : > { %v5203_v62 = vpop.eup %4336  ;;  %v1726_v63 = vmul.f32 %v5199_v58, %v5186_v49  ;;  %4342 = vrcp.f32 %v5195_v61  ;;  %vm5237_vm7 = vcmp.eq.f32.partialorder %v1734_v55, 8.507059e+37  ;;  %v1766_v48 = vand.u32 2147483648, %v5195_v61 }
 0x16b   : > { %v4339_v5 = vpop.eup %4338  ;;  %v1771_v4 = vmul.f32 %v5203_v62, %v1648_v51  ;;  %4344 = vpow2.f32 %v4052_v59  ;;  %vm1776_vm8 = vweird.f32 %v5203_v62  ;;  %vm1731_vm9 = vweird.f32 %v5199_v58 }
 0x16c   : > { %v1727_v2 = vsub.f32 1.0, %v1726_v63  ;;  %v5217_v13 = vadd.f32 1.0, %v4339_v5  ;;  %4346 = vrcp.f32 %v5212_v6  ;;  %vm5255_vm10 = vmor %vm1775_vm5, %vm1776_vm8  ;;  %vm1745_vm11 = vweird.f32 %v5193_v57 }
 0x16d   : > { %v1772_v12 = vsub.f32 1.0, %v1771_v4  ;;  %v5260_v46 = vor.u32 1.1754944e-38, %v1751_v21  ;;  %v1764_v47 = vand.u32 2147483647, %v5195_v61  ;;  %v4064_v50 = vmul.f32 -1.442695, %v5233_v22  ;;  %vm5274_vm12 = vmor %vm1730_vm4, %vm1731_vm9 }
 0x16e   : > { %v1728_v16 = vmul.f32 %v5199_v58, %v1727_v2  ;;  %4348 = vrcp.f32 %v5217_v13  ;;  %v5269_v51 = vor.u32 1.1754944e-38, %v1766_v48  ;;  %v1886_v52 = vand.u32 2147483648, %v5212_v6 }
 0x16f   : > { %v5228_v35 = vpop.eup %4340  ;;  %v1773_v18 = vmul.f32 %v5203_v62, %v1772_v12  ;;  %vm1880_vm14 = vweird.f32 %v5212_v6  ;;  %vm1760_vm15 = vweird.f32 %v5195_v61  ;;  %v1929_v1 = vand.u32 2147483647, %v5217_v13 }
 0x170   : > { %v5235_v24 = vpop.eup %4342  ;;  %v1741_v29 = vmul.f32 %v5228_v35, %v5193_v57  ;;  %v1729_v9 = vadd.f32 %v5199_v58, %v1728_v16  ;;  %vm1746_vm13 = vweird.f32 %v5228_v35  ;;  %v1887_v2 = vor.u32 1.1754944e-38, %v1886_v52 }
 0x171   : > { %v1774_v34 = vadd.f32 %v5203_v62, %v1773_v18  ;;  %v1756_v37 = vmul.f32 %v5235_v24, %v5195_v61  ;;  %v4345_v27 = vpop.eup %4344  ;;  %vm1761_vm1 = vweird.f32 %v5235_v24  ;;  %vm1925_vm2 = vweird.f32 %v5217_v13  ;;  %v1158_v18 = vpop.f32.mrf.mxu2  ;;  %vm5324_vm8 = vmor %vm1745_vm11, %vm1746_vm13 }
 0x172   : > { %v1742_v41 = vsub.f32 1.0, %v1741_v29  ;;  %v5264_v53 = vpop.eup %4346  ;;  %v1733_v0 = vsel %vm5274_vm12, %v5199_v58, %v1729_v9  ;;  %v5289_v3 = vadd.f32 1.0, %v4345_v27  ;;  %v1931_v14 = vand.u32 2147483648, %v5217_v13  ;;  %vm5367_vm12 = vmor %vm1760_vm15, %vm1761_vm1 }
 0x173   : > { %v1778_v10 = vsel %vm5255_vm10, %v5203_v62, %v1774_v34  ;;  %v1757_v56 = vsub.f32 1.0, %v1756_v37  ;;  %v1876_v60 = vmul.f32 %v5264_v53, %v5212_v6  ;;  %v1884_v62 = vand.u32 2147483647, %v5212_v6  ;;  %v1218_v37 = vpop.f32.mrf.mxu0 }
 0x174   : > { %v4349_v63 = vpop.eup %4348  ;;  %v1743_v49 = vmul.f32 %v5228_v35, %v1742_v41  ;;  %v1783_v5 = vsel %vm5223_vm6, %v1782_v20, %v1778_v10  ;;  %4350 = vrcp.f32 %v5289_v3  ;;  %v1738_v58 = vsel %vm5237_vm7, %v1737_v17, %v1733_v0  ;;  %v1187_v20 = vpop.f32.mrf.mxu3 }
 0x175   : > { %v1877_v55 = vsub.f32 1.0, %v1876_v60  ;;  %v1921_v4 = vmul.f32 %v4349_v63, %v5217_v13  ;;  %v1758_v30 = vmul.f32 %v5235_v24, %v1757_v56  ;;  %vm5303_vm3 = vcmp.eq.f32.partialorder %v1884_v62, 8.507059e+37  ;;  %v1131_v17 = vpop.f32.mrf.mxu1 }
 0x176   : > { %v2928_v21 = vmul.f32 %v1783_v5, %v5161_v33  ;;  %v1744_v29 = vadd.f32 %v5228_v35, %v1743_v49  ;;  %vm1881_vm4 = vweird.f32 %v5264_v53  ;;  %vm5311_vm5 = vcmp.eq.f32.partialorder %v1929_v1, 8.507059e+37 }
 0x177   : > { %v1878_v8 = vmul.f32 %v5264_v53, %v1877_v55  ;;  %v1922_v16 = vsub.f32 1.0, %v1921_v4  ;;  %vm5315_vm6 = vcmp.eq.f32.partialorder %v1749_v42, 8.507059e+37  ;;  %vm1926_vm7 = vweird.f32 %v4349_v63  ;;  %vm5343_vm10 = vmor %vm1880_vm14, %vm1881_vm4 }
 0x178   : > { %1365 = vmatmul.bf16.gmra.mxu1 %v5107_v11  ;;  %1394 = vmatmul.bf16.gmra.mxu2 %v5107_v11  ;;  %4352 = vpow2.f32 %v4053_v39  ;;  %v1759_v9 = vadd.f32 %v5235_v24, %v1758_v30  ;;  %vm5329_vm9 = vcmp.eq.f32.partialorder %v1764_v47, 8.507059e+37  ;;  %v5334_v42 = vadd.f32 %v1158_v18, %v5166_v36  ;;  %vm1927_vm11 = vmor %vm1925_vm2, %vm1926_vm7 }
 0x179   : > { %v1879_v48 = vadd.f32 %v5264_v53, %v1878_v8  ;;  %v1923_v34 = vmul.f32 %v4349_v63, %v1922_v16  ;;  %4354 = vpow2.f32 %v4061_v19  ;;  %v5337_v39 = vadd.f32 %v1187_v20, %v5169_v38 }
 0x17a   : > { %v1932_v44 = vor.u32 1.1754944e-38, %v1931_v14  ;;  %4356 = vpow2.f32 %v4064_v50  ;;  %v5348_v47 = vadd.f32 %v1131_v17, %v5153_v26  ;;  %v5350_v19 = vpop.eup %4350  ;;  %v1748_v10 = vsel %vm5324_vm8, %v5228_v35, %v1744_v29 }
 0x17b   : > { %v1924_v27 = vadd.f32 %v4349_v63, %v1923_v34  ;;  %v4062_v6 = vmul.f32 -1.442695, %v5334_v42  ;;  %v4063_v56 = vmul.f32 -1.442695, %v5337_v39  ;;  %v5361_v52 = vadd.f32 %v1218_v37, %v5155_v28 }
 0x17c   : > { %v1883_v13 = vsel %vm5343_vm10, %v5264_v53, %v1879_v48  ;;  %v1891_v59 = vmul.f32 %v5350_v19, %v5289_v3  ;;  %v1899_v60 = vand.u32 2147483647, %v5289_v3  ;;  %v1763_v62 = vsel %vm5367_vm12, %v5235_v24, %v1759_v9 }
 0x17d   : > { %v1928_v35 = vsel %vm1927_vm11, %v4349_v63, %v1924_v27  ;;  %4358 = vpow2.f32 %v4062_v6  ;;  %v4071_v0 = vmul.f32 -1.442695, %v5348_v47  ;;  %v1901_v63 = vand.u32 2147483648, %v5289_v3 }
 0x17e   : > { %v1933_v61 = vsel %vm5311_vm5, %v1932_v44, %v1928_v35  ;;  %v4353_v49 = vpop.eup %4352  ;;  %v1892_v53 = vsub.f32 1.0, %v1891_v59  ;;  %4360 = vpow2.f32 %v4063_v56  ;;  %v1888_v55 = vsel %vm5303_vm3, %v1887_v2, %v1883_v13 }
 0x17f   : > { %v2938_v1 = vmul.f32 %v1933_v61, %v5183_v43  ;;  %v4355_v5 = vpop.eup %4354  ;;  %vm1896_vm13 = vweird.f32 %v5350_v19  ;;  %v5388_v24 = vadd.f32 1.0, %v4353_v49  ;;  %v4074_v4 = vmul.f32 -1.442695, %v5361_v52 }
 0x180   : > { %v4357_v30 = vpop.eup %4356  ;;  %v1893_v16 = vmul.f32 %v5350_v19, %v1892_v53  ;;  %v5394_v43 = vadd.f32 1.0, %v4355_v5  ;;  %4362 = vpow2.f32 %v4071_v0  ;;  %v2925_v14 = vmul.f32 %v1738_v58, %v5158_v31  ;;  %v1160_v31 = vpop.f32.mrf.mxu2 }
 0x181   : > { %v5391_v8 = vadd.f32 %v2938_v1, %v2928_v21  ;;  %v5400_v2 = vsel %vm5315_vm6, %v5260_v46, %v1748_v10  ;;  %vm1895_vm14 = vweird.f32 %v5289_v3  ;;  %4364 = vrcp.f32 %v5388_v24 }
 0x182   : > { %v1768_v12 = vsel %vm5329_vm9, %v5269_v51, %v1763_v62  ;;  %v2935_v18 = vmul.f32 %v1888_v55, %v5179_v32  ;;  %v1894_v20 = vadd.f32 %v5350_v19, %v1893_v16  ;;  %4366 = vrcp.f32 %v5394_v43  ;;  %vm5412_vm15 = vmor %vm1895_vm14, %vm1896_vm13  ;;  %v1189_v32 = vpop.f32.mrf.mxu3 }
 0x183   : > { %v4359_v58 = vpop.eup %4358  ;;  %vm5416_vm1 = vcmp.eq.f32.partialorder %v1899_v60, 8.507059e+37  ;;  %v1902_v21 = vor.u32 1.1754944e-38, %v1901_v63  ;;  %v5420_v51 = vadd.f32 1.0, %v4357_v30  ;;  %4368 = vpow2.f32 %v4074_v4 }
 0x184   : > { %v4361_v29 = vpop.eup %4360  ;;  %v1898_v11 = vsel %vm5412_vm15, %v5350_v19, %v1894_v20  ;;  %v1914_v17 = vand.u32 2147483647, %v5388_v24  ;;  %v1916_v25 = vand.u32 2147483648, %v5388_v24  ;;  %v5427_v48 = vadd.f32 1.0, %v4359_v58 }
 0x185   : > { %v2034_v34 = vand.u32 2147483647, %v5394_v43  ;;  %v2036_v37 = vand.u32 2147483648, %v5394_v43  ;;  %4370 = vrcp.f32 %v5420_v51  ;;  %v5433_v33 = vadd.f32 %v1160_v31, %v5166_v36 }
 0x186   : > { %v4363_v9 = vpop.eup %4362  ;;  %v5438_v41 = vmul.f32 %v1768_v12, %v5175_v40  ;;  %v5440_v57 = vadd.f32 %v2935_v18, %v2925_v14  ;;  %4372 = vrcp.f32 %v5427_v48  ;;  %v5444_v27 = vadd.f32 %v1189_v32, %v5169_v38 }
 0x187   : > { %v4365_v44 = vpop.eup %4364  ;;  %v1903_v19 = vsel %vm5416_vm1, %v1902_v21, %v1898_v11  ;;  %vm1910_vm2 = vweird.f32 %v5388_v24  ;;  %vm2030_vm3 = vweird.f32 %v5394_v43  ;;  %vm5453_vm4 = vcmp.eq.f32.partialorder %v1914_v17, 8.507059e+37 }
 0x188   : > { %1370 = vmatmul.bf16.gmra.mxu1 %v5128_v45  ;;  %1399 = vmatmul.bf16.gmra.mxu2 %v5128_v45  ;;  %v5450_v45 = vadd.f32 1.0, %v4361_v29  ;;  %v4367_v10 = vpop.eup %4366  ;;  %v1906_v40 = vmul.f32 %v4365_v44, %v5388_v24  ;;  %v1917_v56 = vor.u32 1.1754944e-38, %v1916_v25  ;;  %v2079_v50 = vand.u32 2147483647, %v5420_v51 }
 0x189   : > { %v2081_v13 = vand.u32 2147483648, %v5420_v51  ;;  %v4369_v35 = vpop.eup %4368  ;;  %v2026_v59 = vmul.f32 %v4367_v10, %v5394_v43  ;;  %vm5460_vm5 = vcmp.eq.f32.partialorder %v2034_v34, 8.507059e+37  ;;  %v2037_v62 = vor.u32 1.1754944e-38, %v2036_v37 }
 0x18a   : > { %v2051_v61 = vand.u32 2147483648, %v5427_v48  ;;  %v5466_v0 = vmul.f32 -1.442695, %v5433_v33  ;;  %v5469_v49 = vmul.f32 %v1903_v19, %v5191_v54  ;;  %v1907_v1 = vsub.f32 1.0, %v1906_v40  ;;  %v1192_v21 = vpop.f32.mrf.mxu3 }
 0x18b   : > { %vm2075_vm6 = vweird.f32 %v5420_v51  ;;  %v2049_v53 = vand.u32 2147483647, %v5427_v48  ;;  %4374 = vrcp.f32 %v5450_v45  ;;  %v4371_v63 = vpop.eup %4370  ;;  %vm1911_vm7 = vweird.f32 %v4365_v44 }
 0x18c   : > { %v2027_v5 = vsub.f32 1.0, %v2026_v59  ;;  %vm2031_vm8 = vweird.f32 %v4367_v10  ;;  %vm2045_vm9 = vweird.f32 %v5427_v48  ;;  %v5475_v55 = vadd.f32 1.0, %v4363_v9  ;;  %v4373_v4 = vpop.eup %4372  ;;  %vm1912_vm12 = vmor %vm1910_vm2, %vm1911_vm7 }
 0x18d   : > { %v1908_v30 = vmul.f32 %v4365_v44, %v1907_v1  ;;  %v2071_v54 = vmul.f32 %v4371_v63, %v5420_v51  ;;  %vm5478_vm10 = vcmp.eq.f32.partialorder %v2079_v50, 8.507059e+37  ;;  %v2082_v14 = vor.u32 1.1754944e-38, %v2081_v13  ;;  %vm2032_vm1 = vmor %vm2030_vm3, %vm2031_vm8  ;;  %v1221_v51 = vpop.f32.mrf.mxu0 }
 0x18e   : > { %v5482_v12 = vadd.f32 1.0, %v4369_v35  ;;  %v2028_v18 = vmul.f32 %v4367_v10, %v2027_v5  ;;  %v2041_v20 = vmul.f32 %v4373_v4, %v5427_v48  ;;  %v2052_v31 = vor.u32 1.1754944e-38, %v2051_v61  ;;  %v1134_v35 = vpop.f32.mrf.mxu1 }
 0x18f   : > { %v2064_v58 = vand.u32 2147483647, %v5450_v45  ;;  %v1909_v46 = vadd.f32 %v4365_v44, %v1908_v30  ;;  %v2072_v3 = vsub.f32 1.0, %v2071_v54  ;;  %vm5486_vm11 = vcmp.eq.f32.partialorder %v2049_v53, 8.507059e+37 }
 0x190   : > { %v2066_v32 = vand.u32 2147483648, %v5450_v45  ;;  %4376 = vrcp.f32 %v5475_v55  ;;  %v2029_v29 = vadd.f32 %v4367_v10, %v2028_v18  ;;  %vm2076_vm13 = vweird.f32 %v4371_v63 }
 0x191   : > { %v2042_v11 = vsub.f32 1.0, %v2041_v20  ;;  %vm2046_vm14 = vweird.f32 %v4373_v4  ;;  %vm2060_vm15 = vweird.f32 %v5450_v45  ;;  %v4375_v17 = vpop.eup %4374  ;;  %v1913_v25 = vsel %vm1912_vm12, %v4365_v44, %v1909_v46  ;;  %vm2077_vm2 = vmor %vm2075_vm6, %vm2076_vm13 }
 0x192   : > { %v2073_v34 = vmul.f32 %v4371_v63, %v2072_v3  ;;  %v2184_v37 = vand.u32 2147483647, %v5475_v55  ;;  %4378 = vrcp.f32 %v5482_v12  ;;  %v1918_v24 = vsel %vm5453_vm4, %v1917_v56, %v1913_v25  ;;  %vm5520_vm4 = vmor %vm2045_vm9, %vm2046_vm14 }
 0x193   : > { %v2033_v9 = vsel %vm2032_vm1, %v4367_v10, %v2029_v29  ;;  %v2043_v19 = vmul.f32 %v4373_v4, %v2042_v11  ;;  %v2056_v40 = vmul.f32 %v4375_v17, %v5450_v45  ;;  %v2937_v50 = vmul.f32 %v1918_v24, %v5215_v7 }
 0x194   : > { %v2038_v44 = vsel %vm5460_vm5, %v2037_v62, %v2033_v9  ;;  %v2074_v13 = vadd.f32 %v4371_v63, %v2073_v34  ;;  %v2186_v43 = vand.u32 2147483648, %v5475_v55  ;;  %vm5512_vm3 = vcmp.eq.f32.partialorder %v2064_v58, 8.507059e+37 }
 0x195   : > { %v2945_v59 = vmul.f32 %v2038_v44, %v5220_v15  ;;  %v2044_v6 = vadd.f32 %v4373_v4, %v2043_v19  ;;  %v2057_v10 = vsub.f32 1.0, %v2056_v40  ;;  %v3033_v60 = vadd.f32 %v2937_v50, %v5438_v41 }
 0x196   : > { %v4377_v7 = vpop.eup %4376  ;;  %v2078_v62 = vsel %vm2077_vm2, %v4371_v63, %v2074_v13  ;;  %v2067_v15 = vor.u32 1.1754944e-38, %v2066_v32  ;;  %vm2180_vm5 = vweird.f32 %v5475_v55  ;;  %vm2061_vm6 = vweird.f32 %v4375_v17  ;;  %v1136_v9 = vpop.f32.mrf.mxu1 }
 0x197   : > { %v2083_v1 = vsel %vm5478_vm10, %v2082_v14, %v2078_v62  ;;  %v2048_v53 = vsel %vm5520_vm4, %v4373_v4, %v2044_v6  ;;  %v2058_v5 = vmul.f32 %v4375_v17, %v2057_v10  ;;  %v2176_v48 = vmul.f32 %v4377_v7, %v5475_v55  ;;  %vm2062_vm9 = vmor %vm2060_vm15, %vm2061_vm6 }
 0x198   : > { %v4379_v41 = vpop.eup %4378  ;;  %v2948_v63 = vmul.f32 %v2083_v1, %v5233_v22  ;;  %vm5531_vm7 = vcmp.eq.f32.partialorder %v2184_v37, 8.507059e+37  ;;  %v2187_v54 = vor.u32 1.1754944e-38, %v2186_v43  ;;  %vm2225_vm8 = vweird.f32 %v5482_v12 }
 0x199   : > { %v3008_v16 = vadd.f32 %v5440_v57, %v2945_v59  ;;  %v2053_v14 = vsel %vm5486_vm11, %v2052_v31, %v2048_v53  ;;  %v2059_v4 = vadd.f32 %v4375_v17, %v2058_v5  ;;  %v2221_v18 = vmul.f32 %v4379_v41, %v5482_v12  ;;  %v1163_v57 = vpop.f32.mrf.mxu2 }
 0x19a   : > { %v3047_v20 = vadd.f32 %v5391_v8, %v2948_v63  ;;  %v2177_v22 = vsub.f32 1.0, %v2176_v48  ;;  %vm2181_vm10 = vweird.f32 %v4377_v7  ;;  %v2229_v58 = vand.u32 2147483647, %v5482_v12 }
 0x19b   : > { %v2063_v46 = vsel %vm2062_vm9, %v4375_v17, %v2059_v4  ;;  %v2222_v3 = vsub.f32 1.0, %v2221_v18  ;;  %vm2226_vm12 = vweird.f32 %v4379_v41  ;;  %4380 = vpow2.f32 %v5466_v0  ;;  %vm2182_vm13 = vmor %vm2180_vm5, %vm2181_vm10 }
 0x19c   : > { %v2068_v31 = vsel %vm5512_vm3, %v2067_v15, %v2063_v46  ;;  %v2178_v32 = vmul.f32 %v4377_v7, %v2177_v22  ;;  %vm5547_vm11 = vcmp.eq.f32.partialorder %v2229_v58, 8.507059e+37  ;;  %v2231_v45 = vand.u32 2147483648, %v5482_v12  ;;  %vm2227_vm14 = vmor %vm2225_vm8, %vm2226_vm12 }
 0x19d   : > { %v2947_v29 = vmul.f32 %v2068_v31, %v5337_v39  ;;  %v2223_v11 = vmul.f32 %v4379_v41, %v2222_v3  ;;  %v4073_v17 = vmul.f32 -1.442695, %v5444_v27  ;;  %v5555_v25 = vadd.f32 %v1134_v35, %v5153_v26  ;;  %v1223_v35 = vpop.f32.mrf.mxu0 }
 0x19e   : > { %v2179_v0 = vadd.f32 %v4377_v7, %v2178_v32  ;;  %v5558_v34 = vadd.f32 %v1221_v51, %v5155_v28  ;;  %v5561_v37 = vadd.f32 %v1163_v57, %v5166_v36  ;;  %v5564_v24 = vadd.f32 %v1192_v21, %v5169_v38 }
 0x19f   : > { %v5566_v19 = vadd.f32 %v3033_v60, %v2947_v29  ;;  %v2224_v39 = vadd.f32 %v4379_v41, %v2223_v11  ;;  %4382 = vpow2.f32 %v4073_v17  ;;  %v4081_v40 = vmul.f32 -1.442695, %v5555_v25 }
 0x1a0   : > { %v2183_v50 = vsel %vm2182_vm13, %v4377_v7, %v2179_v0  ;;  %v2232_v44 = vor.u32 1.1754944e-38, %v2231_v45  ;;  %v4084_v13 = vmul.f32 -1.442695, %v5558_v34  ;;  %v4082_v43 = vmul.f32 -1.442695, %v5561_v37 }
 0x1a1   : > { %v4381_v59 = vpop.eup %4380  ;;  %v2188_v55 = vsel %vm5531_vm7, %v2187_v54, %v2183_v50  ;;  %v2228_v6 = vsel %vm2227_vm14, %v4379_v41, %v2224_v39  ;;  %4384 = vpow2.f32 %v4081_v40  ;;  %v5580_v10 = vadd.f32 %v1136_v9, %v5153_v26  ;;  %v1165_v48 = vpop.f32.mrf.mxu2 }
 0x1a2   : > { %v2955_v56 = vmul.f32 %v2188_v55, %v5348_v47  ;;  %v2233_v12 = vsel %vm5547_vm11, %v2232_v44, %v2228_v6  ;;  %v5585_v7 = vadd.f32 1.0, %v4381_v59  ;;  %4386 = vpow2.f32 %v4084_v13 }
 0x1a3   : > { %v2958_v60 = vmul.f32 %v2233_v12, %v5361_v52  ;;  %4388 = vpow2.f32 %v4082_v43  ;;  %v4083_v62 = vmul.f32 -1.442695, %v5564_v24  ;;  %v5590_v61 = vadd.f32 %v1223_v35, %v5155_v28 }
 0x1a4   : > { %v2926_v15 = vmul.f32 %v5400_v2, %v5172_v23  ;;  %v2946_v51 = vmul.f32 %v2053_v14, %v5334_v42  ;;  %v5595_v47 = vadd.f32 %v3008_v16, %v2955_v56  ;;  %4390 = vrcp.f32 %v5585_v7  ;;  %v1194_v23 = vpop.f32.mrf.mxu3 }
 0x1a5   : > { %v4383_v1 = vpop.eup %4382  ;;  %v5598_v53 = vadd.f32 %v3047_v20, %v2958_v60  ;;  %v4091_v52 = vmul.f32 -1.442695, %v5580_v10  ;;  %v4094_v63 = vmul.f32 -1.442695, %v5590_v61  ;;  %4392 = vpow2.f32 %v4083_v62  ;;  %v1139_v20 = vpop.f32.mrf.mxu1 }
 0x1a6   : > { %v3020_v5 = vadd.f32 %v5469_v49, %v2926_v15  ;;  %v5602_v41 = vadd.f32 1.0, %v4383_v1  ;;  %v2199_v54 = vand.u32 2147483647, %v5585_v7  ;;  %v2201_v16 = vand.u32 2147483648, %v5585_v7 }
 0x1a7   : > { %v4385_v30 = vpop.eup %4384  ;;  %v5615_v18 = vadd.f32 %v1165_v48, %v5166_v36  ;;  %v5621_v3 = vadd.f32 %v1194_v23, %v5169_v38  ;;  %vm2195_vm15 = vweird.f32 %v5585_v7  ;;  %v5633_v8 = vadd.f32 %v1139_v20, %v5153_v26 }
 0x1a8   : > { %v4387_v42 = vpop.eup %4386  ;;  %v5605_v2 = vadd.f32 %v3020_v5, %v2946_v51  ;;  %4394 = vrcp.f32 %v5602_v41  ;;  %v5610_v4 = vadd.f32 1.0, %v4385_v30  ;;  %v2216_v58 = vand.u32 2147483648, %v5602_v41 }
 0x1a9   : > { %v4389_v14 = vpop.eup %4388  ;;  %v5612_v49 = vadd.f32 1.0, %v4387_v42  ;;  %4396 = vpow2.f32 %v4091_v52  ;;  %v2214_v21 = vand.u32 2147483647, %v5602_v41  ;;  %vm5627_vm1 = vcmp.eq.f32.partialorder %v2199_v54, 8.507059e+37 }
 0x1aa   : > { %v4391_v22 = vpop.eup %4390  ;;  %v5618_v46 = vadd.f32 1.0, %v4389_v14  ;;  %4398 = vpow2.f32 %v4094_v63  ;;  %v2202_v32 = vor.u32 1.1754944e-38, %v2201_v16  ;;  %vm2210_vm2 = vweird.f32 %v5602_v41 }
 0x1ab   : > { %v2191_v57 = vmul.f32 %v4391_v22, %v5585_v7  ;;  %4400 = vrcp.f32 %v5610_v4  ;;  %v4393_v45 = vpop.eup %4392  ;;  %v2336_v11 = vand.u32 2147483648, %v5610_v4  ;;  %v5639_v17 = vmul.f32 -1.442695, %v5615_v18 }
 0x1ac   : > { %4402 = vrcp.f32 %v5612_v49  ;;  %v2217_v9 = vor.u32 1.1754944e-38, %v2216_v58  ;;  %v2334_v39 = vand.u32 2147483647, %v5610_v4  ;;  %v2381_v40 = vand.u32 2147483648, %v5612_v49 }
 0x1ad   : > { %v2192_v29 = vsub.f32 1.0, %v2191_v57  ;;  %4404 = vrcp.f32 %v5618_v46  ;;  %v5644_v50 = vmul.f32 -1.442695, %v5621_v3  ;;  %vm2196_vm3 = vweird.f32 %v4391_v22 }
 0x1ae   : > { %v4395_v0 = vpop.eup %4394  ;;  %vm5647_vm4 = vcmp.eq.f32.partialorder %v2214_v21, 8.507059e+37  ;;  %v2379_v59 = vand.u32 2147483647, %v5612_v49  ;;  %vm2330_vm5 = vweird.f32 %v5610_v4  ;;  %v2349_v6 = vand.u32 2147483647, %v5618_v46  ;;  %vm2197_vm7 = vmor %vm2195_vm15, %vm2196_vm3 }
 0x1af   : > { %v4397_v44 = vpop.eup %4396  ;;  %v2193_v13 = vmul.f32 %v4391_v22, %v2192_v29  ;;  %v2206_v43 = vmul.f32 %v4395_v0, %v5602_v41  ;;  %v5656_v56 = vadd.f32 1.0, %v4393_v45  ;;  %v5659_v12 = vmul.f32 -1.442695, %v5633_v8 }
 0x1b0   : > { %v5652_v55 = vpop.eup %4398  ;;  %v2337_v51 = vor.u32 1.1754944e-38, %v2336_v11  ;;  %vm2375_vm6 = vweird.f32 %v5612_v49  ;;  %vm2211_vm8 = vweird.f32 %v4395_v0  ;;  %vm5666_vm9 = vcmp.eq.f32.partialorder %v2334_v39, 8.507059e+37 }
 0x1b1   : > { %v4401_v60 = vpop.eup %4400  ;;  %v2194_v62 = vadd.f32 %v4391_v22, %v2193_v13  ;;  %v2207_v15 = vsub.f32 1.0, %v2206_v43  ;;  %v2382_v63 = vor.u32 1.1754944e-38, %v2381_v40  ;;  %vm2345_vm10 = vweird.f32 %v5618_v46  ;;  %vm2212_vm13 = vmor %vm2210_vm2, %vm2211_vm8 }
 0x1b2   : > { %v4403_v1 = vpop.eup %4402  ;;  %v2326_v52 = vmul.f32 %v4401_v60, %v5610_v4  ;;  %4406 = vrcp.f32 %v5656_v56  ;;  %vm5673_vm12 = vcmp.eq.f32.partialorder %v2379_v59, 8.507059e+37  ;;  %v5677_v54 = vadd.f32 1.0, %v4397_v44 }
 0x1b3   : > { %v4405_v48 = vpop.eup %4404  ;;  %v2198_v30 = vsel %vm2197_vm7, %v4391_v22, %v2194_v62  ;;  %v2208_v23 = vmul.f32 %v4395_v0, %v2207_v15  ;;  %v2371_v42 = vmul.f32 %v4403_v1, %v5612_v49  ;;  %vm5682_vm11 = vcmp.eq.f32.partialorder %v2349_v6, 8.507059e+37 }
 0x1b4   : > { %v2203_v16 = vsel %vm5627_vm1, %v2202_v32, %v2198_v30  ;;  %v2327_v14 = vsub.f32 1.0, %v2326_v52  ;;  %v2341_v20 = vmul.f32 %v4405_v48, %v5618_v46  ;;  %v2351_v45 = vand.u32 2147483648, %v5618_v46 }
 0x1b5   : > { %v2956_v22 = vmul.f32 %v2203_v16, %v5433_v33  ;;  %v2209_v57 = vadd.f32 %v4395_v0, %v2208_v23  ;;  %v2372_v21 = vsub.f32 1.0, %v2371_v42  ;;  %vm2331_vm14 = vweird.f32 %v4401_v60  ;;  %v1168_v42 = vpop.f32.mrf.mxu2 }
 0x1b6   : > { %v2328_v29 = vmul.f32 %v4401_v60, %v2327_v14  ;;  %vm2376_vm15 = vweird.f32 %v4403_v1  ;;  %v2342_v31 = vsub.f32 1.0, %v2341_v20  ;;  %4408 = vrcp.f32 %v5677_v54  ;;  %vm2332_vm2 = vmor %vm2330_vm5, %vm2331_vm14 }
 0x1b7   : > { %v3022_v32 = vadd.f32 %v5605_v2, %v2956_v22  ;;  %v2213_v11 = vsel %vm2212_vm13, %v4395_v0, %v2209_v57  ;;  %v2373_v39 = vmul.f32 %v4403_v1, %v2372_v21  ;;  %vm2346_vm1 = vweird.f32 %v4405_v48  ;;  %vm2377_vm3 = vmor %vm2375_vm6, %vm2376_vm15 }
 0x1b8   : > { %v4407_v40 = vpop.eup %4406  ;;  %v2218_v33 = vsel %vm5647_vm4, %v2217_v9, %v2213_v11  ;;  %v2329_v44 = vadd.f32 %v4401_v60, %v2328_v29  ;;  %v2343_v13 = vmul.f32 %v4405_v48, %v2342_v31  ;;  %v2352_v59 = vor.u32 1.1754944e-38, %v2351_v45  ;;  %vm2347_vm4 = vmor %vm2345_vm10, %vm2346_vm1 }
 0x1b9   : > { %v2957_v41 = vmul.f32 %v2218_v33, %v5444_v27  ;;  %v2374_v43 = vadd.f32 %v4403_v1, %v2373_v39  ;;  %v2356_v2 = vmul.f32 %v4407_v40, %v5656_v56  ;;  %v2364_v9 = vand.u32 2147483647, %v5656_v56 }
 0x1ba   : > { %v2333_v0 = vsel %vm2332_vm2, %v4401_v60, %v2329_v44  ;;  %v2344_v6 = vadd.f32 %v4405_v48, %v2343_v13  ;;  %v2366_v35 = vand.u32 2147483648, %v5656_v56  ;;  %v5713_v30 = vadd.f32 1.0, %v5652_v55 }
 0x1bb   : > { %v3035_v62 = vadd.f32 %v5566_v19, %v2957_v41  ;;  %v2338_v27 = vsel %vm5666_vm9, %v2337_v51, %v2333_v0  ;;  %v2378_v4 = vsel %vm2377_vm3, %v4403_v1, %v2374_v43  ;;  %v2357_v15 = vsub.f32 1.0, %v2356_v2 }
 0x1bc   : > { %v2965_v60 = vmul.f32 %v2338_v27, %v5555_v25  ;;  %v2383_v49 = vsel %vm5673_vm12, %v2382_v63, %v2378_v4  ;;  %v2348_v52 = vsel %vm2347_vm4, %v4405_v48, %v2344_v6  ;;  %v4409_v23 = vpop.eup %4408  ;;  %vm2361_vm5 = vweird.f32 %v4407_v40  ;;  %v1226_v63 = vpop.f32.mrf.mxu0 }
 0x1bd   : > { %v2968_v19 = vmul.f32 %v2383_v49, %v5558_v34  ;;  %v2353_v51 = vsel %vm5682_vm11, %v2352_v59, %v2348_v52  ;;  %v2358_v1 = vmul.f32 %v4407_v40, %v2357_v15  ;;  %vm2360_vm6 = vweird.f32 %v5656_v56  ;;  %v1170_v6 = vpop.f32.mrf.mxu2 }
 0x1be   : > { %v3010_v46 = vadd.f32 %v5595_v47, %v2965_v60  ;;  %v2966_v5 = vmul.f32 %v2353_v51, %v5561_v37  ;;  %v2476_v25 = vmul.f32 %v4409_v23, %v5677_v54  ;;  %vm2365_vm7 = vcmp.eq.f32.partialorder %v2364_v9, 8.507059e+37  ;;  %vm2362_vm8 = vmor %vm2360_vm6, %vm2361_vm5 }
 0x1bf   : > { %v5723_v55 = vadd.f32 %v5598_v53, %v2968_v19  ;;  %v2359_v48 = vadd.f32 %v4407_v40, %v2358_v1  ;;  %v2367_v34 = vor.u32 1.1754944e-38, %v2366_v35  ;;  %v2484_v47 = vand.u32 2147483647, %v5677_v54  ;;  %v1197_v53 = vpop.f32.mrf.mxu3 }
 0x1c0   : > { %v5725_v7 = vadd.f32 %v3022_v32, %v2966_v5  ;;  %v2477_v16 = vsub.f32 1.0, %v2476_v25  ;;  %4410 = vrcp.f32 %v5713_v30  ;;  %vm2481_vm9 = vweird.f32 %v4409_v23 }
 0x1c1   : > { %v2363_v37 = vsel %vm2362_vm8, %v4407_v40, %v2359_v48  ;;  %v2486_v56 = vand.u32 2147483648, %v5677_v54  ;;  %4412 = vpow2.f32 %v5639_v17  ;;  %v5733_v58 = vadd.f32 %v1226_v63, %v5155_v28 }
 0x1c2   : > { %v2368_v14 = vsel %vm2365_vm7, %v2367_v34, %v2363_v37  ;;  %v2478_v20 = vmul.f32 %v4409_v23, %v2477_v16  ;;  %4414 = vpow2.f32 %v5644_v50  ;;  %vm2480_vm10 = vweird.f32 %v5677_v54 }
 0x1c3   : > { %v2967_v22 = vmul.f32 %v2368_v14, %v5564_v24  ;;  %4416 = vpow2.f32 %v5659_v12  ;;  %v4104_v21 = vmul.f32 -1.442695, %v5733_v58  ;;  %v5740_v45 = vadd.f32 %v1168_v42, %v5166_v36  ;;  %vm2482_vm12 = vmor %vm2480_vm10, %vm2481_vm9  ;;  %v1141_v24 = vpop.f32.mrf.mxu1 }
 0x1c4   : > { %v2479_v57 = vadd.f32 %v4409_v23, %v2478_v20  ;;  %v5743_v17 = vadd.f32 %v1197_v53, %v5169_v38  ;;  %vm2485_vm11 = vcmp.eq.f32.partialorder %v2484_v47, 8.507059e+37  ;;  %v2487_v50 = vor.u32 1.1754944e-38, %v2486_v56  ;;  %v1228_v43 = vpop.f32.mrf.mxu0 }
 0x1c5   : > { %v5745_v29 = vadd.f32 %v3035_v62, %v2967_v22  ;;  %4418 = vpow2.f32 %v4104_v21  ;;  %v4102_v12 = vmul.f32 -1.442695, %v5740_v45  ;;  %v5755_v41 = vadd.f32 %v1141_v24, %v5153_v26 }
 0x1c6   : > { %v4411_v31 = vpop.eup %4410  ;;  %v2483_v54 = vsel %vm2482_vm12, %v4409_v23, %v2479_v57  ;;  %v4103_v32 = vmul.f32 -1.442695, %v5743_v17  ;;  %v2529_v35 = vand.u32 2147483647, %v5713_v30  ;;  %v2531_v62 = vand.u32 2147483648, %v5713_v30 }
 0x1c7   : > { %v4413_v11 = vpop.eup %4412  ;;  %v2488_v39 = vsel %vm2485_vm11, %v2487_v50, %v2483_v54  ;;  %v2521_v40 = vmul.f32 %v4411_v31, %v5713_v30  ;;  %4420 = vpow2.f32 %v4102_v12  ;;  %vm2526_vm13 = vweird.f32 %v4411_v31 }
 0x1c8   : > { %v4415_v33 = vpop.eup %4414  ;;  %v2975_v44 = vmul.f32 %v2488_v39, %v5580_v10  ;;  %v5752_v13 = vadd.f32 1.0, %v4413_v11  ;;  %4422 = vpow2.f32 %v4103_v32  ;;  %v5766_v26 = vadd.f32 %v1228_v43, %v5155_v28 }
 0x1c9   : > { %v4417_v59 = vpop.eup %4416  ;;  %v2522_v2 = vsub.f32 1.0, %v2521_v40  ;;  %v5757_v0 = vadd.f32 1.0, %v4415_v33  ;;  %vm2525_vm14 = vweird.f32 %v5713_v30  ;;  %v4111_v15 = vmul.f32 -1.442695, %v5755_v41 }
 0x1ca   : > { %v5759_v9 = vadd.f32 %v3010_v46, %v2975_v44  ;;  %4424 = vrcp.f32 %v5752_v13  ;;  %v5769_v4 = vadd.f32 1.0, %v4417_v59  ;;  %v5773_v60 = vadd.f32 %v1170_v6, %v5166_v36  ;;  %vm2527_vm15 = vmor %vm2525_vm14, %vm2526_vm13 }
 0x1cb   : > { %v2523_v10 = vmul.f32 %v4411_v31, %v2522_v2  ;;  %4426 = vrcp.f32 %v5757_v0  ;;  %v4419_v27 = vpop.eup %4418  ;;  %v2499_v52 = vand.u32 2147483647, %v5752_v13  ;;  %v2501_v23 = vand.u32 2147483648, %v5752_v13 }
 0x1cc   : > { %v5777_v19 = vadd.f32 1.0, %v4419_v27  ;;  %v2532_v28 = vor.u32 1.1754944e-38, %v2531_v62  ;;  %v2514_v1 = vand.u32 2147483647, %v5757_v0  ;;  %v2516_v30 = vand.u32 2147483648, %v5757_v0 }
 0x1cd   : > { %v2524_v49 = vadd.f32 %v4411_v31, %v2523_v10  ;;  %v4421_v51 = vpop.eup %4420  ;;  %4428 = vrcp.f32 %v5769_v4  ;;  %vm2530_vm1 = vcmp.eq.f32.partialorder %v2529_v35, 8.507059e+37  ;;  %v4114_v36 = vmul.f32 -1.442695, %v5766_v26 }
 0x1ce   : > { %v4423_v46 = vpop.eup %4422  ;;  %4430 = vrcp.f32 %v5777_v19  ;;  %vm2495_vm2 = vweird.f32 %v5752_v13  ;;  %vm2510_vm3 = vweird.f32 %v5757_v0  ;;  %v5787_v48 = vmul.f32 -1.442695, %v5773_v60 }
 0x1cf   : > { %v2528_v5 = vsel %vm2527_vm15, %v4411_v31, %v2524_v49  ;;  %vm5791_vm4 = vcmp.eq.f32.partialorder %v2499_v52, 8.507059e+37  ;;  %v2502_v37 = vor.u32 1.1754944e-38, %v2501_v23  ;;  %4432 = vpow2.f32 %v4111_v15 }
 0x1d0   : > { %v4425_v25 = vpop.eup %4424  ;;  %v2533_v63 = vsel %vm2530_vm1, %v2532_v28, %v2528_v5  ;;  %vm5796_vm5 = vcmp.eq.f32.partialorder %v2514_v1, 8.507059e+37  ;;  %v2517_v14 = vor.u32 1.1754944e-38, %v2516_v30  ;;  %v2634_v20 = vand.u32 2147483647, %v5769_v4 }
 0x1d1   : > { %v4427_v34 = vpop.eup %4426  ;;  %v2978_v42 = vmul.f32 %v2533_v63, %v5590_v61  ;;  %v2491_v16 = vmul.f32 %v4425_v25, %v5752_v13  ;;  %vm2630_vm6 = vweird.f32 %v5769_v4  ;;  %v2636_v57 = vand.u32 2147483648, %v5769_v4 }
 0x1d2   : > { %v2506_v56 = vmul.f32 %v4427_v34, %v5757_v0  ;;  %v5806_v21 = vadd.f32 1.0, %v4421_v51  ;;  %vm2675_vm7 = vweird.f32 %v5777_v19  ;;  %v2679_v31 = vand.u32 2147483647, %v5777_v19 }
 0x1d3   : > { %v5802_v22 = vadd.f32 %v5723_v55, %v2978_v42  ;;  %v2492_v61 = vsub.f32 1.0, %v2491_v16  ;;  %v4429_v50 = vpop.eup %4428  ;;  %v5810_v54 = vadd.f32 1.0, %v4423_v46  ;;  %vm2496_vm8 = vweird.f32 %v4425_v25 }
 0x1d4   : > { %v2507_v24 = vsub.f32 1.0, %v2506_v56  ;;  %v4431_v12 = vpop.eup %4430  ;;  %v2626_v55 = vmul.f32 %v4429_v50, %v5769_v4  ;;  %4434 = vrcp.f32 %v5806_v21  ;;  %vm2511_vm9 = vweird.f32 %v4427_v34  ;;  %vm2497_vm12 = vmor %vm2495_vm2, %vm2496_vm8 }
 0x1d5   : > { %v2493_v32 = vmul.f32 %v4425_v25, %v2492_v61  ;;  %v2671_v39 = vmul.f32 %v4431_v12, %v5777_v19  ;;  %v2681_v40 = vand.u32 2147483648, %v5777_v19  ;;  %v4433_v33 = vpop.eup %4432  ;;  %vm5816_vm10 = vcmp.eq.f32.partialorder %v2634_v20, 8.507059e+37  ;;  %vm2512_vm13 = vmor %vm2510_vm3, %vm2511_vm9 }
 0x1d6   : > { %v2508_v11 = vmul.f32 %v4427_v34, %v2507_v24  ;;  %v2627_v43 = vsub.f32 1.0, %v2626_v55  ;;  %v2637_v2 = vor.u32 1.1754944e-38, %v2636_v57  ;;  %vm5822_vm11 = vcmp.eq.f32.partialorder %v2679_v31, 8.507059e+37  ;;  %v1240_v55 = vpop.f32.mrf.mxu1 }
 0x1d7   : > { %v2494_v44 = vadd.f32 %v4425_v25, %v2493_v32  ;;  %v2672_v35 = vsub.f32 1.0, %v2671_v39  ;;  %4436 = vrcp.f32 %v5810_v54  ;;  %vm2631_vm14 = vweird.f32 %v4429_v50 }
 0x1d8   : > { %v2509_v6 = vadd.f32 %v4427_v34, %v2508_v11  ;;  %v2628_v27 = vmul.f32 %v4429_v50, %v2627_v43  ;;  %4438 = vpow2.f32 %v4114_v36  ;;  %vm2676_vm15 = vweird.f32 %v4431_v12  ;;  %vm2632_vm1 = vmor %vm2630_vm6, %vm2631_vm14 }
 0x1d9   : > { %v2498_v10 = vsel %vm2497_vm12, %v4425_v25, %v2494_v44  ;;  %v2673_v49 = vmul.f32 %v4431_v12, %v2672_v35  ;;  %v2682_v1 = vor.u32 1.1754944e-38, %v2681_v40  ;;  %v5838_v5 = vadd.f32 1.0, %v4433_v33  ;;  %vm2677_vm2 = vmor %vm2675_vm7, %vm2676_vm15 }
 0x1da   : > { %v2503_v15 = vsel %vm5791_vm4, %v2502_v37, %v2498_v10  ;;  %v2513_v13 = vsel %vm2512_vm13, %v4427_v34, %v2509_v6  ;;  %v4435_v52 = vpop.eup %4434  ;;  %v2629_v28 = vadd.f32 %v4429_v50, %v2628_v27  ;;  %vm2645_vm3 = vweird.f32 %v5806_v21 }
 0x1db   : > { %v2976_v23 = vmul.f32 %v2503_v15, %v5615_v18  ;;  %v2518_v51 = vsel %vm5796_vm5, %v2517_v14, %v2513_v13  ;;  %v2674_v30 = vadd.f32 %v4431_v12, %v2673_v49  ;;  %v2641_v46 = vmul.f32 %v4435_v52, %v5806_v21  ;;  %v1327_v13 = vpop.f32.mrf.mxu0 }
 0x1dc   : > { %v2977_v0 = vmul.f32 %v2518_v51, %v5621_v3  ;;  %v2633_v25 = vsel %vm2632_vm1, %v4429_v50, %v2629_v28  ;;  %v2651_v18 = vand.u32 2147483648, %v5806_v21  ;;  %v2649_v19 = vand.u32 2147483647, %v5806_v21 }
 0x1dd   : > { %v3024_v36 = vadd.f32 %v5725_v7, %v2976_v23  ;;  %v4437_v63 = vpop.eup %4436  ;;  %v2638_v4 = vsel %vm5816_vm10, %v2637_v2, %v2633_v25  ;;  %v2678_v34 = vsel %vm2677_vm2, %v4431_v12, %v2674_v30  ;;  %v2642_v42 = vsub.f32 1.0, %v2641_v46 }
 0x1de   : > { %v3037_v3 = vadd.f32 %v5745_v29, %v2977_v0  ;;  %v4439_v16 = vpop.eup %4438  ;;  %v2985_v47 = vmul.f32 %v2638_v4, %v5633_v8  ;;  %v2683_v7 = vsel %vm5822_vm11, %v2682_v1, %v2678_v34  ;;  %v2656_v37 = vmul.f32 %v4437_v63, %v5810_v54  ;;  %v1199_v29 = vpop.f32.mrf.mxu3 }
 0x1df   : > { %v2988_v56 = vmul.f32 %v2683_v7, %v5733_v58  ;;  %v2643_v53 = vmul.f32 %v4435_v52, %v2642_v42  ;;  %vm2646_vm4 = vweird.f32 %v4435_v52  ;;  %4440 = vrcp.f32 %v5838_v5 }
 0x1e0   : > { %v5856_v14 = vadd.f32 %v5759_v9, %v2985_v47  ;;  %v2652_v20 = vor.u32 1.1754944e-38, %v2651_v18  ;;  %v2657_v61 = vsub.f32 1.0, %v2656_v37  ;;  %v2666_v8 = vand.u32 2147483648, %v5810_v54  ;;  %vm2647_vm5 = vmor %vm2645_vm3, %vm2646_vm4 }
 0x1e1   : > { %v5860_v57 = vadd.f32 %v5802_v22, %v2988_v56  ;;  %v2644_v50 = vadd.f32 %v4435_v52, %v2643_v53  ;;  %v5862_v24 = vadd.f32 1.0, %v4439_v16  ;;  %4442 = vpow2.f32 %v5787_v48 }
 0x1e2   : > { %v2658_v58 = vmul.f32 %v4437_v63, %v2657_v61  ;;  %vm2661_vm6 = vweird.f32 %v4437_v63  ;;  %v2664_v9 = vand.u32 2147483647, %v5810_v54  ;;  %v5869_v31 = vadd.f32 %v1199_v29, %v5169_v38  ;;  %v4644_v38 = vld [vmem:[%s7704_s4] sm:$0xff] }
 0x1e3   : > { %v2648_v12 = vsel %vm2647_vm5, %v4435_v52, %v2644_v50  ;;  %vm2650_vm7 = vcmp.eq.f32.partialorder %v2649_v19, 8.507059e+37  ;;  %4444 = vrcp.f32 %v5862_v24  ;;  %vm2660_vm8 = vweird.f32 %v5810_v54 }
 0x1e4   : > { %v2653_v22 = vsel %vm2650_vm7, %v2652_v20, %v2648_v12  ;;  %v2659_v32 = vadd.f32 %v4437_v63, %v2658_v58  ;;  %v4113_v48 = vmul.f32 -1.442695, %v5869_v31  ;;  %vm2662_vm9 = vmor %vm2660_vm8, %vm2661_vm6  ;;  %v2667_v39 = vor.u32 1.1754944e-38, %v2666_v8 }
 0x1e5   : > { %v4441_v21 = vpop.eup %4440  ;;  %v2986_v11 = vmul.f32 %v2653_v22, %v5740_v45  ;;  %v5878_v40 = vperm.slane %v4644_v38, 4  ;;  %vm2665_vm10 = vcmp.eq.f32.partialorder %v2664_v9, 8.507059e+37  ;;  %v2784_v54 = vand.u32 2147483647, %v5838_v5  ;;  %v1242_v22 = vpop.f32.mrf.mxu1 }
 0x1e6   : > { %v2663_v33 = vsel %vm2662_vm9, %v4437_v63, %v2659_v32  ;;  %v2776_v44 = vmul.f32 %v4441_v21, %v5838_v5  ;;  %4446 = vpow2.f32 %v4113_v48  ;;  %v5890_v10 = vperm.slane %v4644_v38, 7  ;;  %v1298_v32 = vpop.f32.mrf.mxu3 }
 0x1e7   : > { %v4443_v43 = vpop.eup %4442  ;;  %v5882_v59 = vadd.f32 %v3024_v36, %v2986_v11  ;;  %v2668_v2 = vsel %vm2665_vm10, %v2667_v39, %v2663_v33  ;;  %v5885_v45 = vadd.f32 %v1240_v55, %v5878_v40  ;;  %v2786_v15 = vand.u32 2147483648, %v5838_v5 }
 0x1e8   : > { %v2987_v6 = vmul.f32 %v2668_v2, %v5743_v17  ;;  %v2777_v35 = vsub.f32 1.0, %v2776_v44  ;;  %v5888_v62 = vadd.f32 1.0, %v4443_v43  ;;  %vm2781_vm12 = vweird.f32 %v4441_v21 }
 0x1e9   : > { %v4445_v27 = vpop.eup %4444  ;;  %vm2780_vm11 = vweird.f32 %v5838_v5  ;;  %v4045_v17 = vmul.f32 -1.442695, %v5885_v45  ;;  %vm2785_vm13 = vcmp.eq.f32.partialorder %v2784_v54, 8.507059e+37  ;;  %v5900_v1 = vadd.f32 %v1327_v13, %v5890_v10 }
 0x1ea   : > { %v5893_v49 = vadd.f32 %v3037_v3, %v2987_v6  ;;  %v2778_v52 = vmul.f32 %v4441_v21, %v2777_v35  ;;  %v2821_v23 = vmul.f32 %v4445_v27, %v5862_v24  ;;  %4448 = vrcp.f32 %v5888_v62  ;;  %vm2782_vm14 = vmor %vm2780_vm11, %vm2781_vm12  ;;  %v1269_v3 = vpop.f32.mrf.mxu2 }
 0x1eb   : > { %v2787_v30 = vor.u32 1.1754944e-38, %v2786_v15  ;;  %v2829_v46 = vand.u32 2147483647, %v5862_v24  ;;  %v2831_v36 = vand.u32 2147483648, %v5862_v24  ;;  %v5904_v25 = vperm.slane %v4644_v38, 5 }
 0x1ec   : > { %v2779_v51 = vadd.f32 %v4441_v21, %v2778_v52  ;;  %v2822_v28 = vsub.f32 1.0, %v2821_v23  ;;  %v4447_v0 = vpop.eup %4446  ;;  %vm2826_vm15 = vweird.f32 %v4445_v27  ;;  %vm2825_vm1 = vweird.f32 %v5862_v24 }
 0x1ed   : > { %v5906_v63 = vadd.f32 1.0, %v4447_v0  ;;  %4450 = vpow2.f32 %v4045_v17  ;;  %v4048_v16 = vmul.f32 -1.442695, %v5900_v1  ;;  %vm2827_vm2 = vmor %vm2825_vm1, %vm2826_vm15  ;;  %v2832_v7 = vor.u32 1.1754944e-38, %v2831_v36 }
 0x1ee   : > { %v2783_v5 = vsel %vm2782_vm14, %v4441_v21, %v2779_v51  ;;  %v2823_v18 = vmul.f32 %v4445_v27, %v2822_v28  ;;  %v5913_v19 = vadd.f32 %v1269_v3, %v5904_v25  ;;  %vm2830_vm3 = vcmp.eq.f32.partialorder %v2829_v46, 8.507059e+37 }
 0x1ef   : > { %v2788_v4 = vsel %vm2785_vm13, %v2787_v30, %v2783_v5  ;;  %4452 = vrcp.f32 %v5906_v63  ;;  %v2801_v8 = vand.u32 2147483648, %v5888_v62  ;;  %v5920_v24 = vperm.slane %v4644_v38, 6 }
 0x1f0   : > { %v2995_v34 = vmul.f32 %v2788_v4, %v5755_v41  ;;  %v2824_v42 = vadd.f32 %v4445_v27, %v2823_v18  ;;  %v4449_v47 = vpop.eup %4448  ;;  %4454 = vpow2.f32 %v4048_v16  ;;  %v4046_v50 = vmul.f32 -1.442695, %v5913_v19 }
 0x1f1   : > { %v2791_v53 = vmul.f32 %v4449_v47, %v5888_v62  ;;  %vm2796_vm4 = vweird.f32 %v4449_v47  ;;  %v2799_v12 = vand.u32 2147483647, %v5888_v62  ;;  %vm2795_vm5 = vweird.f32 %v5888_v62 }
 0x1f2   : > { %v3013_v37 = vadd.f32 %v5856_v14, %v2995_v34  ;;  %v2828_v56 = vsel %vm2827_vm2, %v4445_v27, %v2824_v42  ;;  %vm2797_vm6 = vmor %vm2795_vm5, %vm2796_vm4  ;;  %v2802_v39 = vor.u32 1.1754944e-38, %v2801_v8  ;;  %4456 = vpow2.f32 %v4046_v50  ;;  %v1329_v34 = vpop.f32.mrf.mxu0 }
 0x1f3   : > { %v2833_v29 = vsel %vm2830_vm3, %v2832_v7, %v2828_v56  ;;  %v2792_v20 = vsub.f32 1.0, %v2791_v53  ;;  %v4451_v61 = vpop.eup %4450  ;;  %vm2800_vm7 = vcmp.eq.f32.partialorder %v2799_v12, 8.507059e+37  ;;  %v2816_v54 = vand.u32 2147483648, %v5906_v63  ;;  %v1271_v7 = vpop.f32.mrf.mxu2 }
 0x1f4   : > { %v2998_v41 = vmul.f32 %v2833_v29, %v5766_v26  ;;  %v3014_v48 = vrot.slane %v3013_v37, 4  ;;  %v5926_v11 = vadd.f32 1.0, %v4451_v61  ;;  %v5933_v43 = vadd.f32 %v1298_v32, %v5920_v24 }
 0x1f5   : > { %v4453_v58 = vpop.eup %4452  ;;  %v2793_v14 = vmul.f32 %v4449_v47, %v2792_v20  ;;  %v2814_v35 = vand.u32 2147483647, %v5906_v63  ;;  %vm2810_vm9 = vweird.f32 %v5906_v63  ;;  %v2817_v17 = vor.u32 1.1754944e-38, %v2816_v54 }
 0x1f6   : > { %v3052_v9 = vadd.f32 %v5860_v57, %v2998_v41  ;;  %v2806_v26 = vmul.f32 %v4453_v58, %v5906_v63  ;;  %v5929_v57 = vadd.f32 %v1242_v22, %v5878_v40  ;;  %v4455_v33 = vpop.eup %4454  ;;  %vm2811_vm8 = vweird.f32 %v4453_v58 }
 0x1f7   : > { %v2794_v21 = vadd.f32 %v4449_v47, %v2793_v14  ;;  %v3015_v62 = vadd.f32 %v3014_v48, %v3013_v37  ;;  %4458 = vrcp.f32 %v5926_v11  ;;  %v5939_v52 = vadd.f32 1.0, %v4455_v33  ;;  %vm2812_vm10 = vmor %vm2810_vm9, %vm2811_vm8 }
 0x1f8   : > { %v3053_v55 = vrot.slane %v3052_v9, 4  ;;  %v2807_v38 = vsub.f32 1.0, %v2806_v26  ;;  %v4047_v51 = vmul.f32 -1.442695, %v5933_v43  ;;  %v4457_v28 = vpop.eup %4456  ;;  %vm2815_vm12 = vcmp.eq.f32.partialorder %v2814_v35, 8.507059e+37 }
 0x1f9   : > { %v2798_v44 = vsel %vm2797_vm6, %v4449_v47, %v2794_v21  ;;  %v4055_v30 = vmul.f32 -1.442695, %v5929_v57  ;;  %v3016_v46 = vrot.slane %v3015_v62, 2  ;;  %4460 = vrcp.f32 %v5939_v52 }
 0x1fa   : > { %v2803_v2 = vsel %vm2800_vm7, %v2802_v39, %v2798_v44  ;;  %v2808_v6 = vmul.f32 %v4453_v58, %v2807_v38  ;;  %v3054_v27 = vadd.f32 %v3053_v55, %v3052_v9  ;;  %v5948_v3 = vadd.f32 1.0, %v4457_v28  ;;  %v1300_v9 = vpop.f32.mrf.mxu3 }
 0x1fb   : > { %v2996_v15 = vmul.f32 %v2803_v2, %v5773_v60  ;;  %4462 = vpow2.f32 %v4047_v51  ;;  %v3017_v42 = vadd.f32 %v3016_v46, %v3015_v62  ;;  %v5955_v53 = vadd.f32 %v1329_v34, %v5890_v10  ;;  %v1274_v28 = vpop.f32.mrf.mxu2 }
 0x1fc   : > { %v2809_v13 = vadd.f32 %v4453_v58, %v2808_v6  ;;  %v3055_v60 = vrot.slane %v3054_v27, 2  ;;  %4464 = vpow2.f32 %v4055_v30  ;;  %vm3155_vm11 = vcmask 1040384  }
 0x1fd   : > { %v3026_v23 = vadd.f32 %v5882_v59, %v2996_v15  ;;  %v5946_v63 = vpop.eup %4458  ;;  %4466 = vrcp.f32 %v5948_v3  ;;  %v5960_v41 = vadd.f32 %v1271_v7, %v5904_v25  ;;  %v3018_v61 = vrot.slane %v3017_v42, 1  ;;  %v1332_v15 = vpop.f32.mrf.mxu0 }
 0x1fe   : > { %v2813_v0 = vsel %vm2812_vm10, %v4453_v58, %v2809_v13  ;;  %v3056_v16 = vadd.f32 %v3055_v60, %v3054_v27  ;;  %v4058_v58 = vmul.f32 -1.442695, %v5955_v53  ;;  %v1796_v26 = vand.u32 2147483648, %v5926_v11  ;;  %v1245_v27 = vpop.f32.mrf.mxu1 }
 0x1ff   : > { %v3027_v36 = vrot.slane %v3026_v23, 4  ;;  %v2818_v5 = vsel %vm2815_vm12, %v2817_v17, %v2813_v0  ;;  %v5957_v29 = vpop.eup %4460  ;;  %v4056_v38 = vmul.f32 -1.442695, %v5960_v41  ;;  %v5973_v33 = vadd.f32 %v1300_v9, %v5920_v24 }
 0x200   : > { %v2997_v18 = vmul.f32 %v2818_v5, %v5869_v31  ;;  %v1786_v31 = vmul.f32 %v5946_v63, %v5926_v11  ;;  %v3057_v8 = vrot.slane %v3056_v16, 1  ;;  %v1831_v55 = vmul.f32 %v5957_v29, %v5939_v52 }
 0x201   : > { %v3028_v59 = vadd.f32 %v3027_v36, %v3026_v23  ;;  %v4463_v20 = vpop.eup %4462  ;;  %4468 = vpow2.f32 %v4058_v58  ;;  %v3019_v54 = vadd.f32 %v3018_v61, %v3017_v42  ;;  %vm3157_vm13 = vcmask 1042434  }
 0x202   : > { %v3039_v4 = vadd.f32 %v5893_v49, %v2997_v18  ;;  %v4465_v14 = vpop.eup %4464  ;;  %v1787_v22 = vsub.f32 1.0, %v1786_v31  ;;  %v5964_v32 = vadd.f32 1.0, %v4463_v20  ;;  %v3058_v2 = vadd.f32 %v3057_v8, %v3056_v16 }
 0x203   : > { %v3029_v47 = vrot.slane %v3028_v59, 2  ;;  %v5968_v21 = vadd.f32 1.0, %v4465_v14  ;;  %v5975_v44 = vpop.eup %4466  ;;  %vm1790_vm14 = vweird.f32 %v5926_v11  ;;  %v1794_v62 = vand.u32 2147483647, %v5926_v11 }
 0x204   : > { %v3040_v37 = vrot.slane %v3039_v4, 4  ;;  %4470 = vrcp.f32 %v5964_v32  ;;  %v1788_v23 = vmul.f32 %v5946_v63, %v1787_v22  ;;  %v1797_v17 = vor.u32 1.1754944e-38, %v1796_v26 }
 0x205   : > { %v3030_v56 = vadd.f32 %v3029_v47, %v3028_v59  ;;  %4472 = vrcp.f32 %v5968_v21  ;;  %v1832_v51 = vsub.f32 1.0, %v1831_v55  ;;  %v1801_v30 = vmul.f32 %v5975_v44, %v5948_v3 }
 0x206   : > { %v3041_v49 = vadd.f32 %v3040_v37, %v3039_v4  ;;  %4474 = vpow2.f32 %v4056_v38  ;;  %v4057_v46 = vmul.f32 -1.442695, %v5973_v33  ;;  %v3149_v36 = vrot.slane %v3058_v2, 5 }
 0x207   : > { %v3031_v50 = vrot.slane %v3030_v56, 1  ;;  %v4469_v60 = vpop.eup %4468  ;;  %vm1791_vm15 = vweird.f32 %v5946_v63  ;;  %v5987_v5 = vadd.f32 %v1245_v27, %v5878_v40  ;;  %v5990_v18 = vadd.f32 %v1332_v15, %v5890_v10 }
 0x208   : > { %v3042_v12 = vrot.slane %v3041_v49, 2  ;;  %v5994_v34 = vadd.f32 1.0, %v4469_v60  ;;  %4476 = vpow2.f32 %v4057_v46  ;;  %v5997_v42 = vadd.f32 %v1274_v28, %v5904_v25 }
 0x209   : > { %v3032_v48 = vadd.f32 %v3031_v50, %v3030_v56  ;;  %v1789_v47 = vadd.f32 %v5946_v63, %v1788_v23  ;;  %v1833_v7 = vmul.f32 %v5957_v29, %v1832_v51  ;;  %v4065_v37 = vmul.f32 -1.442695, %v5987_v5 }
 0x20a   : > { %v3043_v39 = vadd.f32 %v3042_v12, %v3041_v49  ;;  %v5992_v59 = vpop.eup %4470  ;;  %v4068_v31 = vmul.f32 -1.442695, %v5990_v18  ;;  %v1802_v49 = vsub.f32 1.0, %v1801_v30  ;;  %4478 = vrcp.f32 %v5994_v34  ;;  %v1303_v12 = vpop.f32.mrf.mxu3 }
 0x20b   : > { %v3147_v6 = vrot.slane %v3032_v48, 7  ;;  %v5999_v16 = vpop.eup %4472  ;;  %vm1835_vm1 = vweird.f32 %v5939_v52  ;;  %v1839_v8 = vand.u32 2147483647, %v5939_v52  ;;  %v1816_v50 = vmul.f32 %v5992_v59, %v5964_v32 }
 0x20c   : > { %v3044_v35 = vrot.slane %v3043_v39, 1  ;;  %v1936_v20 = vmul.f32 %v5999_v16, %v5968_v21  ;;  %v4475_v58 = vpop.eup %4474  ;;  %vm1836_vm2 = vweird.f32 %v5957_v29  ;;  %v1841_v9 = vand.u32 2147483648, %v5939_v52 }
 0x20d   : > { %v3156_v13 = vsel %vm3155_vm11, %v3019_v54, %v3147_v6  ;;  %4480 = vpow2.f32 %v4065_v37  ;;  %v4066_v14 = vmul.f32 -1.442695, %v5997_v42  ;;  %v1834_v26 = vadd.f32 %v5957_v29, %v1833_v7  ;;  %vm6046_vm4 = vmor %vm1835_vm1, %vm1836_vm2 }
 0x20e   : > { %v3045_v0 = vadd.f32 %v3044_v35, %v3043_v39  ;;  %v1937_v48 = vsub.f32 1.0, %v1936_v20  ;;  %v6028_v55 = vadd.f32 1.0, %v4475_v58  ;;  %4482 = vpow2.f32 %v4068_v31  ;;  %v4477_v39 = vpop.eup %4476 }
 0x20f   : > { %v1803_v54 = vmul.f32 %v5975_v44, %v1802_v49  ;;  %v1809_v2 = vand.u32 2147483647, %v5948_v3  ;;  %4484 = vpow2.f32 %v4066_v14  ;;  %v1811_v11 = vand.u32 2147483648, %v5948_v3  ;;  %v1276_v14 = vpop.f32.mrf.mxu2 }
 0x210   : > { %v3148_v4 = vrot.slane %v3045_v0, 6  ;;  %v1817_v6 = vsub.f32 1.0, %v1816_v50  ;;  %4486 = vrcp.f32 %v6028_v55  ;;  %v6038_v35 = vadd.f32 %v1303_v12, %v5920_v24  ;;  %v6040_v27 = vpop.eup %4478 }
 0x211   : > { %vm1795_vm3 = vcmp.eq.f32.partialorder %v1794_v62, 8.507059e+37  ;;  %vm6050_vm5 = vcmp.eq.f32.partialorder %v1839_v8, 8.507059e+37  ;;  %v1838_v51 = vsel %vm6046_vm4, %v5957_v29, %v1834_v26  ;;  %v1938_v62 = vmul.f32 %v5999_v16, %v1937_v48 }
 0x212   : > { %v3158_v56 = vsel %vm3157_vm13, %v3148_v4, %v3149_v36  ;;  %v1981_v52 = vmul.f32 %v6040_v27, %v5994_v34  ;;  %v1842_v0 = vor.u32 1.1754944e-38, %v1841_v9  ;;  %v1804_v30 = vadd.f32 %v5975_v44, %v1803_v54 }
 0x213   : > { %v6010_v61 = vsel %vm414_vm0, %v3156_v13, %v3158_v56  ;;  %vm6023_vm0 = vmor %vm1790_vm14, %vm1791_vm15  ;;  %v6054_v13 = vadd.f32 1.0, %v4477_v39  ;;  %v4481_v28 = vpop.eup %4480  ;;  %vm1805_vm6 = vweird.f32 %v5948_v3  ;;  %vm1806_vm7 = vweird.f32 %v5975_v44 }
 0x214   : > { %v1793_v38 = vsel %vm6023_vm0, %v5946_v63, %v1789_v47  ;;  %v4483_v46 = vpop.eup %4482  ;;  %vm6065_vm8 = vcmp.eq.f32.partialorder %v1809_v2, 8.507059e+37  ;;  %v1812_v60 = vor.u32 1.1754944e-38, %v1811_v11  ;;  %v1818_v29 = vmul.f32 %v5992_v59, %v1817_v6  ;;  %vm6081_vm9 = vmor %vm1805_vm6, %vm1806_vm7 }
 0x215   : > { %v1798_v23 = vsel %vm1795_vm3, %v1797_v17, %v1793_v38  ;;  %v4067_v36 = vmul.f32 -1.442695, %v6038_v35  ;;  %v4485_v4 = vpop.eup %4484  ;;  %v1843_v7 = vsel %vm6050_vm5, %v1842_v0, %v1838_v51  ;;  %4488 = vrcp.f32 %v6054_v13 }
 0x216   : > { %v6072_v47 = vmul.f32 %v1798_v23, %v5885_v45  ;;  %v6077_v3 = vadd.f32 1.0, %v4481_v28  ;;  %v6079_v37 = vpop.eup %4486  ;;  %v1939_v56 = vadd.f32 %v5999_v16, %v1938_v62  ;;  %vm1941_vm10 = vweird.f32 %v5999_v16  ;;  %v1247_v62 = vpop.f32.mrf.mxu1 }
 0x217   : > { %v1982_v49 = vsub.f32 1.0, %v1981_v52  ;;  %v6087_v45 = vadd.f32 1.0, %v4483_v46  ;;  %v1808_v20 = vsel %vm6081_vm9, %v5975_v44, %v1804_v30  ;;  %v1826_v8 = vand.u32 2147483648, %v5964_v32  ;;  %v1334_v52 = vpop.f32.mrf.mxu0 }
 0x218   : > { %vm1940_vm12 = vweird.f32 %v5968_v21  ;;  %v1946_v50 = vand.u32 2147483648, %v5968_v21  ;;  %v1819_v58 = vadd.f32 %v5992_v59, %v1818_v29  ;;  %vm1821_vm13 = vweird.f32 %v5992_v59 }
 0x219   : > { %v1944_v9 = vand.u32 2147483647, %v5968_v21  ;;  %4490 = vpow2.f32 %v4067_v36  ;;  %vm1820_vm14 = vweird.f32 %v5964_v32  ;;  %vm6099_vm15 = vmor %vm1940_vm12, %vm1941_vm10  ;;  %v1951_v44 = vmul.f32 %v6079_v37, %v6028_v55 }
 0x21a   : > { %4492 = vrcp.f32 %v6077_v3  ;;  %v6106_v12 = vadd.f32 1.0, %v4485_v4  ;;  %v1824_v22 = vand.u32 2147483647, %v5964_v32  ;;  %v1943_v21 = vsel %vm6099_vm15, %v5999_v16, %v1939_v56  ;;  %vm6123_vm1 = vmor %vm1820_vm14, %vm1821_vm13 }
 0x21b   : > { %v1983_v26 = vmul.f32 %v6040_v27, %v1982_v49  ;;  %4494 = vrcp.f32 %v6087_v45  ;;  %v6114_v48 = vpop.eup %4488  ;;  %v6117_v39 = vmul.f32 %v1843_v7, %v5900_v1  ;;  %v1813_v38 = vsel %vm6065_vm8, %v1812_v60, %v1808_v20 }
 0x21c   : > { %v1827_v54 = vor.u32 1.1754944e-38, %v1826_v8  ;;  %v1947_v16 = vor.u32 1.1754944e-38, %v1946_v50  ;;  %v1823_v2 = vsel %vm6123_vm1, %v5992_v59, %v1819_v58  ;;  %vm1945_vm2 = vcmp.eq.f32.partialorder %v1944_v9, 8.507059e+37 }
 0x21d   : > { %v1989_v11 = vand.u32 2147483647, %v5994_v34  ;;  %v1991_v1 = vand.u32 2147483648, %v5994_v34  ;;  %v1952_v63 = vsub.f32 1.0, %v1951_v44  ;;  %v1961_v15 = vand.u32 2147483648, %v6028_v55 }
 0x21e   : > { %v1948_v6 = vsel %vm1945_vm2, %v1947_v16, %v1943_v21  ;;  %4496 = vrcp.f32 %v6106_v12  ;;  %vm1825_vm0 = vcmp.eq.f32.partialorder %v1824_v22, 8.507059e+37  ;;  %v1984_v51 = vadd.f32 %v6040_v27, %v1983_v26 }
 0x21f   : > { %v4491_v23 = vpop.eup %4490  ;;  %vm1986_vm3 = vweird.f32 %v6040_v27  ;;  %v1966_v59 = vmul.f32 %v6114_v48, %v6054_v13  ;;  %v6141_v0 = vmul.f32 %v1813_v38, %v5913_v19  ;;  %v1828_v30 = vsel %vm1825_vm0, %v1827_v54, %v1823_v2 }
 0x220   : > { %v6138_v28 = vpop.eup %4492  ;;  %vm1985_vm4 = vweird.f32 %v5994_v34  ;;  %v1959_v46 = vand.u32 2147483647, %v6028_v55  ;;  %v2939_v60 = vmul.f32 %v1948_v6, %v5929_v57  ;;  %vm6148_vm5 = vcmp.eq.f32.partialorder %v1989_v11, 8.507059e+37 }
 0x221   : > { %v6145_v17 = vpop.eup %4494  ;;  %v1992_v36 = vor.u32 1.1754944e-38, %v1991_v1  ;;  %v1976_v4 = vand.u32 2147483648, %v6054_v13  ;;  %vm6153_vm6 = vmor %vm1985_vm4, %vm1986_vm3  ;;  %v1953_v19 = vmul.f32 %v6079_v37, %v1952_v63  ;;  %vm1955_vm7 = vweird.f32 %v6028_v55  ;;  %v1305_v63 = vpop.f32.mrf.mxu3 }
 0x222   : > { %v1962_v34 = vor.u32 1.1754944e-38, %v1961_v15  ;;  %v6159_v31 = vadd.f32 1.0, %v4491_v23  ;;  %v6162_v57 = vmul.f32 %v1828_v30, %v5933_v43  ;;  %v1988_v56 = vsel %vm6153_vm6, %v6040_v27, %v1984_v51  ;;  %v1337_v30 = vpop.f32.mrf.mxu0 }
 0x223   : > { %v1967_v49 = vsub.f32 1.0, %v1966_v59  ;;  %v2086_v20 = vmul.f32 %v6138_v28, %v6077_v3  ;;  %vm6171_vm8 = vcmp.eq.f32.partialorder %v1959_v46, 8.507059e+37  ;;  %v2096_v58 = vand.u32 2147483648, %v6077_v3 }
 0x224   : > { %v6169_v8 = vpop.eup %4496  ;;  %v2131_v43 = vmul.f32 %v6145_v17, %v6087_v45  ;;  %v6179_v9 = vadd.f32 %v1247_v62, %v5878_v40  ;;  %v6182_v27 = vadd.f32 %v1334_v52, %v5890_v10  ;;  %v6185_v44 = vadd.f32 %v2939_v60, %v6072_v47  ;;  %v1250_v52 = vpop.f32.mrf.mxu1 }
 0x225   : > { %vm1956_vm9 = vweird.f32 %v6079_v37  ;;  %v1974_v22 = vand.u32 2147483647, %v6054_v13  ;;  %v6189_v21 = vor.u32 1.1754944e-38, %v1976_v4  ;;  %v1993_v26 = vsel %vm6148_vm5, %v1992_v36, %v1988_v56 }
 0x226   : > { %v1954_v38 = vadd.f32 %v6079_v37, %v1953_v19  ;;  %vm1970_vm10 = vweird.f32 %v6054_v13  ;;  %v2101_v32 = vmul.f32 %v6169_v8, %v6106_v12  ;;  %4498 = vrcp.f32 %v6159_v31  ;;  %vm6210_vm13 = vmor %vm1955_vm7, %vm1956_vm9 }
 0x227   : > { %v1968_v47 = vmul.f32 %v6114_v48, %v1967_v49  ;;  %vm1971_vm12 = vweird.f32 %v6114_v48  ;;  %v2087_v54 = vsub.f32 1.0, %v2086_v20  ;;  %v2094_v16 = vand.u32 2147483647, %v6077_v3 }
 0x228   : > { %v6201_v2 = vor.u32 1.1754944e-38, %v2096_v58  ;;  %v2132_v11 = vsub.f32 1.0, %v2131_v43  ;;  %v4075_v1 = vmul.f32 -1.442695, %v6179_v9  ;;  %v4078_v6 = vmul.f32 -1.442695, %v6182_v27  ;;  %vm6264_vm4 = vmor %vm1970_vm10, %vm1971_vm12 }
 0x229   : > { %v2942_v15 = vmul.f32 %v1993_v26, %v5955_v53  ;;  %vm2090_vm14 = vweird.f32 %v6077_v3  ;;  %v2139_v51 = vand.u32 2147483647, %v6087_v45  ;;  %v2141_v59 = vand.u32 2147483648, %v6087_v45 }
 0x22a   : > { %v2109_v62 = vand.u32 2147483647, %v6106_v12  ;;  %v1958_v53 = vsel %vm6210_vm13, %v6079_v37, %v1954_v38  ;;  %vm2135_vm15 = vweird.f32 %v6087_v45  ;;  %v2102_v55 = vsub.f32 1.0, %v2101_v32  ;;  %v1279_v38 = vpop.f32.mrf.mxu2 }
 0x22b   : > { %4500 = vpow2.f32 %v4075_v1  ;;  %v6223_v46 = vadd.f32 %v1276_v14, %v5904_v25  ;;  %v1969_v60 = vadd.f32 %v6114_v48, %v1968_v47  ;;  %vm6226_vm1 = vcmp.eq.f32.partialorder %v1974_v22, 8.507059e+37 }
 0x22c   : > { %v2088_v36 = vmul.f32 %v6138_v28, %v2087_v54  ;;  %4502 = vpow2.f32 %v4078_v6  ;;  %v6232_v4 = vadd.f32 %v1305_v63, %v5920_v24  ;;  %v6234_v37 = vpop.eup %4498  ;;  %v2133_v7 = vmul.f32 %v6145_v17, %v2132_v11 }
 0x22d   : > { %vm2105_vm2 = vweird.f32 %v6106_v12  ;;  %v4076_v19 = vmul.f32 -1.442695, %v6223_v46  ;;  %v6240_v56 = vadd.f32 %v1250_v52, %v5878_v40  ;;  %v6243_v49 = vadd.f32 %v1337_v30, %v5890_v10 }
 0x22e   : > { %v6246_v20 = vadd.f32 %v2942_v15, %v6117_v39  ;;  %v1963_v58 = vsel %vm6171_vm8, %v1962_v34, %v1958_v53  ;;  %vm2091_vm0 = vweird.f32 %v6138_v28  ;;  %vm6251_vm3 = vcmp.eq.f32.partialorder %v2094_v16, 8.507059e+37 }
 0x22f   : > { %v2116_v14 = vmul.f32 %v6234_v37, %v6159_v31  ;;  %v2103_v22 = vmul.f32 %v6169_v8, %v2102_v55  ;;  %4504 = vpow2.f32 %v4076_v19  ;;  %v4077_v26 = vmul.f32 -1.442695, %v6232_v4  ;;  %vm6286_vm7 = vmor %vm2090_vm14, %vm2091_vm0  ;;  %v1308_v19 = vpop.f32.mrf.mxu3 }
 0x230   : > { %v4085_v39 = vmul.f32 -1.442695, %v6240_v56  ;;  %v2089_v50 = vadd.f32 %v6138_v28, %v2088_v36  ;;  %vm2136_vm5 = vweird.f32 %v6145_v17  ;;  %v4088_v47 = vmul.f32 -1.442695, %v6243_v49 }
 0x231   : > { %v2117_v32 = vsub.f32 1.0, %v2116_v14  ;;  %v4501_v54 = vpop.eup %4500  ;;  %v1973_v16 = vsel %vm6264_vm4, %v6114_v48, %v1969_v60  ;;  %v2134_v11 = vadd.f32 %v6145_v17, %v2133_v7  ;;  %v2111_v13 = vand.u32 2147483648, %v6106_v12  ;;  %vm6301_vm8 = vmor %vm2135_vm15, %vm2136_vm5  ;;  %v1252_v48 = vpop.f32.mrf.mxu1 }
 0x232   : > { %4506 = vpow2.f32 %v4077_v26  ;;  %v4503_v1 = vpop.eup %4502  ;;  %vm2106_vm6 = vweird.f32 %v6169_v8  ;;  %v6277_v6 = vadd.f32 1.0, %v4501_v54  ;;  %v6280_v63 = vadd.f32 %v1279_v38, %v5904_v25 }
 0x233   : > { %4508 = vpow2.f32 %v4085_v39  ;;  %v2104_v15 = vadd.f32 %v6169_v8, %v2103_v22  ;;  %v2118_v23 = vmul.f32 %v6234_v37, %v2117_v32  ;;  %v6292_v52 = vadd.f32 1.0, %v4503_v1  ;;  %vm6326_vm12 = vmor %vm2105_vm2, %vm2106_vm6 }
 0x234   : > { %4510 = vpow2.f32 %v4088_v47  ;;  %v2093_v30 = vsel %vm6286_vm7, %v6138_v28, %v2089_v50  ;;  %vm6305_vm9 = vcmp.eq.f32.partialorder %v2139_v51, 8.507059e+37  ;;  %v2142_v55 = vor.u32 1.1754944e-38, %v2141_v59 }
 0x235   : > { %4512 = vrcp.f32 %v6277_v6  ;;  %v4505_v60 = vpop.eup %4504  ;;  %v1978_v28 = vsel %vm6226_vm1, %v6189_v21, %v1973_v16  ;;  %v2138_v45 = vsel %vm6301_vm8, %v6145_v17, %v2134_v11  ;;  %vm6316_vm10 = vcmp.eq.f32.partialorder %v2109_v62, 8.507059e+37 }
 0x236   : > { %4514 = vrcp.f32 %v6292_v52  ;;  %v2940_v51 = vmul.f32 %v1963_v58, %v5960_v41  ;;  %v2112_v21 = vor.u32 1.1754944e-38, %v2111_v13  ;;  %v6330_v29 = vadd.f32 1.0, %v4505_v60 }
 0x237   : > { %v4086_v17 = vmul.f32 -1.442695, %v6280_v63  ;;  %v2098_v7 = vsel %vm6251_vm3, %v6201_v2, %v2093_v30  ;;  %v2108_v41 = vsel %vm6326_vm12, %v6169_v8, %v2104_v15  ;;  %v2119_v12 = vadd.f32 %v6234_v37, %v2118_v23 }
 0x238   : > { %v4507_v62 = vpop.eup %4506  ;;  %vm2121_vm13 = vweird.f32 %v6234_v37  ;;  %v2941_v14 = vmul.f32 %v1978_v28, %v5973_v33  ;;  %v2143_v22 = vsel %vm6305_vm9, %v2142_v55, %v2138_v45  ;;  %v2126_v26 = vand.u32 2147483648, %v6159_v31 }
 0x239   : > { %v4509_v58 = vpop.eup %4508  ;;  %4516 = vrcp.f32 %v6330_v29  ;;  %vm2120_vm14 = vweird.f32 %v6159_v31  ;;  %v2124_v8 = vand.u32 2147483647, %v6159_v31  ;;  %v6348_v43 = vadd.f32 1.0, %v4507_v62 }
 0x23a   : > { %v4511_v2 = vpop.eup %4510  ;;  %v6350_v39 = vadd.f32 1.0, %v4509_v58  ;;  %v2949_v33 = vmul.f32 %v2098_v7, %v5987_v5  ;;  %v2113_v34 = vsel %vm6316_vm10, %v2112_v21, %v2108_v41  ;;  %vm6359_vm15 = vmor %vm2120_vm14, %vm2121_vm13  ;;  %4518 = vpow2.f32 %v4086_v17 }
 0x23b   : > { %v6352_v38 = vpop.eup %4512  ;;  %v6364_v31 = vadd.f32 %v1308_v19, %v5920_v24  ;;  %v3072_v47 = vadd.f32 %v2940_v51, %v6141_v0  ;;  %v2952_v54 = vmul.f32 %v2143_v22, %v5990_v18  ;;  %v2123_v5 = vsel %vm6359_vm15, %v6234_v37, %v2119_v12  ;;  %v1339_v37 = vpop.f32.mrf.mxu0 }
 0x23c   : > { %v6366_v32 = vpop.eup %4514  ;;  %v2236_v16 = vmul.f32 %v6352_v38, %v6277_v6  ;;  %v3085_v11 = vadd.f32 %v2941_v14, %v6162_v57  ;;  %v2127_v13 = vor.u32 1.1754944e-38, %v2126_v26  ;;  %4520 = vrcp.f32 %v6348_v43 }
 0x23d   : > { %v2281_v1 = vmul.f32 %v6366_v32, %v6292_v52  ;;  %v2950_v0 = vmul.f32 %v2113_v34, %v5997_v42  ;;  %vm2125_vm1 = vcmp.eq.f32.partialorder %v2124_v8, 8.507059e+37  ;;  %4522 = vrcp.f32 %v6350_v39 }
 0x23e   : > { %v6381_v18 = vadd.f32 1.0, %v4511_v2  ;;  %v6386_v23 = vadd.f32 %v6185_v44, %v2949_v33  ;;  %v2128_v57 = vsel %vm2125_vm1, %v2127_v13, %v2123_v5  ;;  %v2237_v30 = vsub.f32 1.0, %v2236_v16 }
 0x23f   : > { %v6383_v15 = vpop.eup %4516  ;;  %v4087_v3 = vmul.f32 -1.442695, %v6364_v31  ;;  %v6390_v53 = vadd.f32 %v6246_v20, %v2952_v54  ;;  %v2282_v55 = vsub.f32 1.0, %v2281_v1  ;;  %v6395_v60 = vadd.f32 %v1252_v48, %v5878_v40 }
 0x240   : > { %v2251_v42 = vmul.f32 %v6383_v15, %v6330_v29  ;;  %v4519_v28 = vpop.eup %4518  ;;  %v2244_v45 = vand.u32 2147483647, %v6277_v6  ;;  %v2246_v44 = vand.u32 2147483648, %v6277_v6  ;;  %v2291_v36 = vand.u32 2147483648, %v6292_v52 }
 0x241   : > { %v6401_v51 = vadd.f32 %v1339_v37, %v5890_v10  ;;  %v6403_v59 = vadd.f32 %v3072_v47, %v2950_v0  ;;  %v2951_v20 = vmul.f32 %v2128_v57, %v6038_v35  ;;  %v2289_v21 = vand.u32 2147483647, %v6292_v52 }
 0x242   : > { %4524 = vrcp.f32 %v6381_v18  ;;  %v6408_v17 = vpop.eup %4520  ;;  %v2238_v62 = vmul.f32 %v6352_v38, %v2237_v30  ;;  %vm2240_vm2 = vweird.f32 %v6277_v6  ;;  %v2252_v7 = vsub.f32 1.0, %v2251_v42 }
 0x243   : > { %4526 = vpow2.f32 %v4087_v3  ;;  %v6412_v41 = vpop.eup %4522  ;;  %v2283_v12 = vmul.f32 %v6366_v32, %v2282_v55  ;;  %vm2285_vm0 = vweird.f32 %v6292_v52  ;;  %v2266_v35 = vmul.f32 %v6408_v17, %v6348_v43 }
 0x244   : > { %v6418_v19 = vadd.f32 1.0, %v4519_v28  ;;  %vm6420_vm3 = vcmp.eq.f32.partialorder %v2244_v45, 8.507059e+37  ;;  %v2247_v14 = vor.u32 1.1754944e-38, %v2246_v44  ;;  %v2292_v22 = vor.u32 1.1754944e-38, %v2291_v36 }
 0x245   : > { %v2259_v26 = vand.u32 2147483647, %v6330_v29  ;;  %v2386_v2 = vmul.f32 %v6412_v41, %v6350_v39  ;;  %v6427_v8 = vadd.f32 %v3085_v11, %v2951_v20  ;;  %vm6429_vm4 = vcmp.eq.f32.partialorder %v2289_v21, 8.507059e+37 }
 0x246   : > { %vm2255_vm5 = vweird.f32 %v6330_v29  ;;  %v2261_v34 = vand.u32 2147483648, %v6330_v29  ;;  %v4095_v50 = vmul.f32 -1.442695, %v6395_v60  ;;  %v2239_v47 = vadd.f32 %v6352_v38, %v2238_v62 }
 0x247   : > { %vm2241_vm6 = vweird.f32 %v6352_v38  ;;  %v2253_v54 = vmul.f32 %v6383_v15, %v2252_v7  ;;  %v2267_v5 = vsub.f32 1.0, %v2266_v35  ;;  %v2284_v11 = vadd.f32 %v6366_v32, %v2283_v12  ;;  %v1281_v7 = vpop.f32.mrf.mxu2 }
 0x248   : > { %v6439_v16 = vpop.eup %4524  ;;  %vm2286_vm7 = vweird.f32 %v6366_v32  ;;  %v2387_v13 = vsub.f32 1.0, %v2386_v2  ;;  %4528 = vrcp.f32 %v6418_v19  ;;  %vm6444_vm8 = vcmp.eq.f32.partialorder %v2259_v26, 8.507059e+37  ;;  %vm6454_vm9 = vmor %vm2240_vm2, %vm2241_vm6 }
 0x249   : > { %v4527_v1 = vpop.eup %4526  ;;  %v2276_v0 = vand.u32 2147483648, %v6348_v43  ;;  %v2396_v37 = vand.u32 2147483648, %v6350_v39  ;;  %v2431_v57 = vmul.f32 %v6439_v16, %v6381_v18  ;;  %v2262_v3 = vor.u32 1.1754944e-38, %v2261_v34  ;;  %vm6466_vm12 = vmor %vm2285_vm0, %vm2286_vm7 }
 0x24a   : > { %vm2270_vm10 = vweird.f32 %v6348_v43  ;;  %v2274_v55 = vand.u32 2147483647, %v6348_v43  ;;  %v2394_v42 = vand.u32 2147483647, %v6350_v39  ;;  %v2243_v28 = vsel %vm6454_vm9, %v6352_v38, %v2239_v47 }
 0x24b   : > { %v2254_v6 = vadd.f32 %v6383_v15, %v2253_v54  ;;  %vm2256_vm13 = vweird.f32 %v6383_v15  ;;  %v2268_v44 = vmul.f32 %v6408_v17, %v2267_v5  ;;  %v2288_v36 = vsel %vm6466_vm12, %v6366_v32, %v2284_v11  ;;  %v1310_v11 = vpop.f32.mrf.mxu3 }
 0x24c   : > { %v2388_v20 = vmul.f32 %v6412_v41, %v2387_v13  ;;  %v6477_v21 = vadd.f32 1.0, %v4527_v1  ;;  %4530 = vpow2.f32 %v4095_v50  ;;  %v2277_v52 = vor.u32 1.1754944e-38, %v2276_v0  ;;  %vm6486_vm15 = vmor %vm2255_vm5, %vm2256_vm13  ;;  %v1255_v13 = vpop.f32.mrf.mxu1 }
 0x24d   : > { %vm2390_vm14 = vweird.f32 %v6350_v39  ;;  %v2397_v38 = vor.u32 1.1754944e-38, %v2396_v37  ;;  %v2432_v62 = vsub.f32 1.0, %v2431_v57  ;;  %v2248_v35 = vsel %vm6420_vm3, %v2247_v14, %v2243_v28 }
 0x24e   : > { %v6480_v12 = vpop.eup %4528  ;;  %vm2271_vm1 = vweird.f32 %v6408_v17  ;;  %v2441_v26 = vand.u32 2147483648, %v6381_v18  ;;  %4532 = vrcp.f32 %v6477_v21  ;;  %v2293_v2 = vsel %vm6429_vm4, %v2292_v22, %v2288_v36 }
 0x24f   : > { %v2258_v58 = vsel %vm6486_vm15, %v6383_v15, %v2254_v6  ;;  %v2269_v14 = vadd.f32 %v6408_v17, %v2268_v44  ;;  %vm6499_vm2 = vcmp.eq.f32.partialorder %v2274_v55, 8.507059e+37  ;;  %vm6503_vm0 = vcmp.eq.f32.partialorder %v2394_v42, 8.507059e+37  ;;  %vm6523_vm5 = vmor %vm2270_vm10, %vm2271_vm1  ;;  %v1342_v55 = vpop.f32.mrf.mxu0 }
 0x250   : > { %v2401_v50 = vmul.f32 %v6480_v12, %v6418_v19  ;;  %v2389_v33 = vadd.f32 %v6412_v41, %v2388_v20  ;;  %vm2391_vm3 = vweird.f32 %v6412_v41  ;;  %vm2435_vm4 = vweird.f32 %v6381_v18 }
 0x251   : > { %v2439_v15 = vand.u32 2147483647, %v6381_v18  ;;  %v2959_v22 = vmul.f32 %v2248_v35, %v6179_v9  ;;  %v2433_v47 = vmul.f32 %v6439_v16, %v2432_v62  ;;  %v4098_v5 = vmul.f32 -1.442695, %v6401_v51  ;;  %vm6537_vm6 = vmor %vm2390_vm14, %vm2391_vm3 }
 0x252   : > { %v2402_v54 = vsub.f32 1.0, %v2401_v50  ;;  %v4531_v1 = vpop.eup %4530  ;;  %v2962_v0 = vmul.f32 %v2293_v2, %v6182_v27  ;;  %v2263_v37 = vsel %vm6444_vm8, %v2262_v3, %v2258_v58  ;;  %v2442_v9 = vor.u32 1.1754944e-38, %v2441_v26  ;;  %v1284_v2 = vpop.f32.mrf.mxu2 }
 0x253   : > { %v6528_v30 = vadd.f32 %v1281_v7, %v5904_v25  ;;  %v2273_v27 = vsel %vm6523_vm5, %v6408_v17, %v2269_v14  ;;  %vm2436_vm7 = vweird.f32 %v6439_v16  ;;  %v6542_v43 = vadd.f32 1.0, %v4531_v1 }
 0x254   : > { %4534 = vpow2.f32 %v4098_v5  ;;  %v6544_v3 = vpop.eup %4532  ;;  %v2393_v42 = vsel %vm6537_vm6, %v6412_v41, %v2389_v33  ;;  %vm6549_vm8 = vcmp.eq.f32.partialorder %v2439_v15, 8.507059e+37  ;;  %v6555_v28 = vadd.f32 %v1310_v11, %v5920_v24  ;;  %vm6583_vm9 = vmor %vm2435_vm4, %vm2436_vm7 }
 0x255   : > { %v4096_v39 = vmul.f32 -1.442695, %v6528_v30  ;;  %v6558_v45 = vadd.f32 %v1255_v13, %v5878_v40  ;;  %v2434_v6 = vadd.f32 %v6439_v16, %v2433_v47  ;;  %v2403_v44 = vmul.f32 %v6480_v12, %v2402_v54 }
 0x256   : > { %v2416_v36 = vmul.f32 %v6544_v3, %v6477_v21  ;;  %v6565_v41 = vadd.f32 %v1342_v55, %v5890_v10  ;;  %v3061_v20 = vadd.f32 %v6386_v23, %v2959_v22  ;;  %v6569_v62 = vadd.f32 %v6390_v53, %v2962_v0 }
 0x257   : > { %v2960_v7 = vmul.f32 %v2263_v37, %v6223_v46  ;;  %4536 = vrcp.f32 %v6542_v43  ;;  %v2411_v35 = vand.u32 2147483648, %v6418_v19  ;;  %v4097_v26 = vmul.f32 -1.442695, %v6555_v28  ;;  %v1313_v37 = vpop.f32.mrf.mxu3 }
 0x258   : > { %v2417_v32 = vsub.f32 1.0, %v2416_v36  ;;  %4538 = vpow2.f32 %v4096_v39  ;;  %v2278_v58 = vsel %vm6499_vm2, %v2277_v52, %v2273_v27  ;;  %v2398_v23 = vsel %vm6503_vm0, %v2397_v38, %v2393_v42 }
 0x259   : > { %vm2406_vm10 = vweird.f32 %v6480_v12  ;;  %v4105_v53 = vmul.f32 -1.442695, %v6558_v45  ;;  %v2438_v52 = vsel %vm6583_vm9, %v6439_v16, %v2434_v6  ;;  %v2404_v29 = vadd.f32 %v6480_v12, %v2403_v44 }
 0x25a   : > { %v4535_v14 = vpop.eup %4534  ;;  %4540 = vpow2.f32 %v4097_v26  ;;  %v4108_v38 = vmul.f32 -1.442695, %v6565_v41  ;;  %v2418_v18 = vmul.f32 %v6544_v3, %v2417_v32  ;;  %v6598_v50 = vadd.f32 %v1284_v2, %v5904_v25 }
 0x25b   : > { %v6595_v34 = vadd.f32 1.0, %v4535_v14  ;;  %4542 = vpow2.f32 %v4105_v53  ;;  %v2961_v33 = vmul.f32 %v2278_v58, %v6232_v4  ;;  %vm2405_vm12 = vweird.f32 %v6418_v19  ;;  %v3201_v58 = vld [vmem:[#allocation6 + $0x78] sm:$0xff] }
 0x25c   : > { %v2409_v15 = vand.u32 2147483647, %v6418_v19  ;;  %4544 = vpow2.f32 %v4108_v38  ;;  %v6606_v22 = vadd.f32 %v6403_v59, %v2960_v7  ;;  %v2969_v47 = vmul.f32 %v2398_v23, %v6240_v56  ;;  %vm6611_vm13 = vmor %vm2405_vm12, %vm2406_vm10  ;;  %3369 = vmatpush.msra.mxu3 %v3201_v58 }
 0x25d   : > { %v6603_v16 = vpop.eup %4536  ;;  %v2412_v5 = vor.u32 1.1754944e-38, %v2411_v35  ;;  %4546 = vrcp.f32 %v6595_v34  ;;  %v2443_v19 = vsel %vm6549_vm8, %v2442_v9, %v2438_v52  ;;  %v2408_v59 = vsel %vm6611_vm13, %v6480_v12, %v2404_v29  ;;  %v3200_v52 = vld [vmem:[#allocation6 + $0x70] sm:$0xff] }
 0x25e   : > { %v4539_v4 = vpop.eup %4538  ;;  %v2536_v56 = vmul.f32 %v6603_v16, %v6542_v43  ;;  %v4106_v11 = vmul.f32 -1.442695, %v6598_v50  ;;  %v2419_v13 = vadd.f32 %v6544_v3, %v2418_v18  ;;  %vm2421_vm14 = vweird.f32 %v6544_v3  ;;  %3370 = vmatpush.msra.mxu3 %v3200_v52 }
 0x25f   : > { %v2426_v1 = vand.u32 2147483648, %v6477_v21  ;;  %v6627_v0 = vadd.f32 1.0, %v4539_v4  ;;  %v6630_v9 = vadd.f32 %v6427_v8, %v2961_v33  ;;  %vm2410_vm15 = vcmp.eq.f32.partialorder %v2409_v15, 8.507059e+37  ;;  %v1257_v33 = vpop.f32.mrf.mxu1 }
 0x260   : > { %v4541_v57 = vpop.eup %4540  ;;  %vm2420_vm1 = vweird.f32 %v6477_v21  ;;  %v2537_v12 = vsub.f32 1.0, %v2536_v56  ;;  %v2972_v27 = vmul.f32 %v2443_v19, %v6243_v49  ;;  %v2413_v48 = vsel %vm2410_vm15, %v2412_v5, %v2408_v59 }
 0x261   : > { %v4543_v55 = vpop.eup %4542  ;;  %v2424_v42 = vand.u32 2147483647, %v6477_v21  ;;  %4548 = vrcp.f32 %v6627_v0  ;;  %vm6638_vm2 = vmor %vm2420_vm1, %vm2421_vm14  ;;  %v6642_v8 = vadd.f32 1.0, %v4541_v57  ;;  %v6647_v44 = vadd.f32 %v1313_v37, %v5920_v24 }
 0x262   : > { %v4545_v17 = vpop.eup %4544  ;;  %v6644_v6 = vadd.f32 1.0, %v4543_v55  ;;  %4550 = vpow2.f32 %v4106_v11  ;;  %v6651_v21 = vadd.f32 %v3061_v20, %v2969_v47  ;;  %v2423_v36 = vsel %vm6638_vm2, %v6544_v3, %v2419_v13  ;;  %v3199_v13 = vld [vmem:[#allocation6 + $0x68] sm:$0xff] }
 0x263   : > { %v6649_v49 = vpop.eup %4546  ;;  %v2427_v7 = vor.u32 1.1754944e-38, %v2426_v1  ;;  %v2544_v35 = vand.u32 2147483647, %v6542_v43  ;;  %v2538_v32 = vmul.f32 %v6603_v16, %v2537_v12  ;;  %v2546_v26 = vand.u32 2147483648, %v6542_v43  ;;  %3371 = vmatpush.msra.mxu3 %v3199_v13 }
 0x264   : > { %v2581_v2 = vmul.f32 %v6649_v49, %v6595_v34  ;;  %4552 = vrcp.f32 %v6642_v8  ;;  %v2970_v20 = vmul.f32 %v2413_v48, %v6280_v63  ;;  %vm2425_vm0 = vcmp.eq.f32.partialorder %v2424_v42, 8.507059e+37  ;;  %v1344_v63 = vpop.f32.mrf.mxu0 }
 0x265   : > { %4554 = vrcp.f32 %v6644_v6  ;;  %v6664_v23 = vadd.f32 1.0, %v4545_v17  ;;  %v6667_v3 = vadd.f32 %v6569_v62, %v2972_v27  ;;  %v2428_v46 = vsel %vm2425_vm0, %v2427_v7, %v2423_v36 }
 0x266   : > { %v2582_v53 = vsub.f32 1.0, %v2581_v2  ;;  %v4107_v14 = vmul.f32 -1.442695, %v6647_v44  ;;  %vm2540_vm3 = vweird.f32 %v6542_v43  ;;  %vm6673_vm4 = vcmp.eq.f32.partialorder %v2544_v35, 8.507059e+37 }
 0x267   : > { %v6670_v29 = vpop.eup %4548  ;;  %v2589_v38 = vand.u32 2147483647, %v6595_v34  ;;  %v2591_v18 = vand.u32 2147483648, %v6595_v34  ;;  %v2539_v15 = vadd.f32 %v6603_v16, %v2538_v32  ;;  %vm2541_vm5 = vweird.f32 %v6603_v16 }
 0x268   : > { %v4551_v62 = vpop.eup %4550  ;;  %v2547_v47 = vor.u32 1.1754944e-38, %v2546_v26  ;;  %v2551_v54 = vmul.f32 %v6670_v29, %v6627_v0  ;;  %v6684_v5 = vadd.f32 %v6606_v22, %v2970_v20  ;;  %v2971_v4 = vmul.f32 %v2428_v46, %v6364_v31  ;;  %vm6700_vm7 = vmor %vm2540_vm3, %vm2541_vm5 }
 0x269   : > { %v2583_v19 = vmul.f32 %v6649_v49, %v2582_v53  ;;  %4556 = vrcp.f32 %v6664_v23  ;;  %vm2585_vm6 = vweird.f32 %v6595_v34  ;;  %v2561_v56 = vand.u32 2147483648, %v6627_v0  ;;  %v6746_v53 = vpop.f32.mrf.mxu2 }
 0x26a   : > { %v6689_v59 = vpop.eup %4552  ;;  %4558 = vpow2.f32 %v4107_v14  ;;  %v6694_v11 = vadd.f32 %v1257_v33, %v5878_v40  ;;  %vm6704_vm8 = vcmp.eq.f32.partialorder %v2589_v38, 8.507059e+37  ;;  %v2592_v37 = vor.u32 1.1754944e-38, %v2591_v18  ;;  %v3198_v38 = vld [vmem:[#allocation6 + $0x60] sm:$0xff] }
 0x26b   : > { %v6696_v1 = vpop.eup %4554  ;;  %vm2555_vm9 = vweird.f32 %v6627_v0  ;;  %v2566_v40 = vmul.f32 %v6689_v59, %v6642_v8  ;;  %v6711_v57 = vadd.f32 1.0, %v4551_v62  ;;  %v2543_v43 = vsel %vm6700_vm7, %v6603_v16, %v2539_v15  ;;  %3372 = vmatpush.msra.mxu3 %v3198_v38 }
 0x26c   : > { %v2552_v12 = vsub.f32 1.0, %v2551_v54  ;;  %v2559_v55 = vand.u32 2147483647, %v6627_v0  ;;  %v2686_v27 = vmul.f32 %v6696_v1, %v6644_v6  ;;  %v6720_v48 = vadd.f32 %v6630_v9, %v2971_v4  ;;  %v3197_v4 = vld [vmem:[#allocation6 + $0x58] sm:$0xff] }
 0x26d   : > { %v2584_v42 = vadd.f32 %v6649_v49, %v2583_v19  ;;  %vm2586_vm10 = vweird.f32 %v6649_v49  ;;  %v2567_v17 = vsub.f32 1.0, %v2566_v40  ;;  %v6724_v39 = vor.u32 1.1754944e-38, %v2561_v56  ;;  %v3249_v19 = vld [vmem:[#allocation6 + $0x1f8] sm:$0xff]  ;;  %3373 = vmatpush.msra.mxu3 %v3197_v4 }
 0x26e   : > { %v2576_v36 = vand.u32 2147483648, %v6642_v8  ;;  %v2687_v7 = vsub.f32 1.0, %v2686_v27  ;;  %4560 = vrcp.f32 %v6711_v57  ;;  %v2548_v35 = vsel %vm6673_vm4, %v2547_v47, %v2543_v43  ;;  %vm6737_vm14 = vmor %vm2585_vm6, %vm2586_vm10  ;;  %3429 = vmatpush.msrb.mxu1 %v3249_v19 }
 0x26f   : > { %v6728_v16 = vpop.eup %4556  ;;  %vm2570_vm12 = vweird.f32 %v6642_v8  ;;  %v2574_v9 = vand.u32 2147483647, %v6642_v8  ;;  %vm2690_vm13 = vweird.f32 %v6644_v6  ;;  %v2553_v2 = vmul.f32 %v6670_v29, %v2552_v12 }
 0x270   : > { %v4559_v32 = vpop.eup %4558  ;;  %v2694_v58 = vand.u32 2147483647, %v6644_v6  ;;  %v2696_v20 = vand.u32 2147483648, %v6644_v6  ;;  %v2731_v46 = vmul.f32 %v6728_v16, %v6664_v23  ;;  %v2588_v14 = vsel %vm6737_vm14, %v6649_v49, %v2584_v42 }
 0x271   : > { %vm2556_vm15 = vweird.f32 %v6670_v29  ;;  %v2568_v34 = vmul.f32 %v6689_v59, %v2567_v17  ;;  %v2688_v52 = vmul.f32 %v6696_v1, %v2687_v7  ;;  %v2979_v18 = vmul.f32 %v2548_v35, %v6395_v60  ;;  %v3233_v60 = vld [vmem:[#allocation6 + $0x178] sm:$0xff]  ;;  %v3196_v17 = vld [vmem:[#allocation6 + $0x50] sm:$0xff] }
 0x272   : > { %vm6755_vm1 = vcmp.eq.f32.partialorder %v2559_v55, 8.507059e+37  ;;  %v6759_v62 = vor.u32 1.1754944e-38, %v2576_v36  ;;  %v2732_v15 = vsub.f32 1.0, %v2731_v46  ;;  %v2739_v47 = vand.u32 2147483647, %v6664_v23  ;;  %vm6776_vm3 = vmor %vm2555_vm9, %vm2556_vm15  ;;  %3409 = vmatpush.msrb.mxu0 %v3233_v60  ;;  %v3232_v36 = vld [vmem:[#allocation6 + $0x170] sm:$0xff]  ;;  %3374 = vmatpush.msra.mxu3 %v3196_v17 }
 0x273   : > { %vm2571_vm2 = vweird.f32 %v6689_v59  ;;  %vm2691_vm0 = vweird.f32 %v6696_v1  ;;  %v2741_v49 = vand.u32 2147483648, %v6664_v23  ;;  %v6765_v54 = vadd.f32 1.0, %v4559_v32  ;;  %v3248_v7 = vld [vmem:[#allocation6 + $0x1f0] sm:$0xff] }
 0x274   : > { %v6767_v56 = vpop.eup %4560  ;;  %v2593_v13 = vsel %vm6704_vm8, %v2592_v37, %v2588_v14  ;;  %v2554_v31 = vadd.f32 %v6670_v29, %v2553_v2  ;;  %vm6780_vm4 = vcmp.eq.f32.partialorder %v2574_v9, 8.507059e+37  ;;  %vm6784_vm5 = vcmp.eq.f32.partialorder %v2694_v58, 8.507059e+37  ;;  %vm6803_vm6 = vmor %vm2570_vm12, %vm2571_vm2  ;;  %v1315_v58 = vpop.f32.mrf.mxu3  ;;  %3410 = vmatpush.msrb.mxu0 %v3232_v36  ;;  %3430 = vmatpush.msrb.mxu1 %v3248_v7  ;;  %v3195_v14 = vld [vmem:[#allocation6 + $0x48] sm:$0xff] }
 0x275   : > { %v4115_v22 = vmul.f32 -1.442695, %v6694_v11  ;;  %v6790_v37 = vadd.f32 %v1344_v63, %v5890_v10  ;;  %v2569_v0 = vadd.f32 %v6689_v59, %v2568_v34  ;;  %v2689_v55 = vadd.f32 %v6696_v1, %v2688_v52  ;;  %vm6815_vm8 = vmor %vm2690_vm13, %vm2691_vm0  ;;  %v3231_v34 = vld [vmem:[#allocation6 + $0x168] sm:$0xff]  ;;  %3375 = vmatpush.msra.mxu3 %v3195_v14  ;;  %v3228_v14 = vld [vmem:[#allocation6 + $0x150] sm:$0xff] }
 0x276   : > { %v2697_v27 = vor.u32 1.1754944e-38, %v2696_v20  ;;  %v2701_v42 = vmul.f32 %v6767_v56, %v6711_v57  ;;  %v6797_v35 = vadd.f32 %v6651_v21, %v2979_v18  ;;  %v2733_v9 = vmul.f32 %v6728_v16, %v2732_v15  ;;  %v1356_v20 = vpop.f32.mrf.mxu1  ;;  %v3247_v52 = vld [vmem:[#allocation6 + $0x1e8] sm:$0xff]  ;;  %v692_v18 = vld [vmem:[%s7704_s4 + $0x8] sm:$0x3]  ;;  %3411 = vmatpush.msrb.mxu0 %v3231_v34  ;;  %v3244_v34 = vld [vmem:[#allocation6 + $0x1d0] sm:$0xff] }
 0x277   : > { %vm2735_vm7 = vweird.f32 %v6664_v23  ;;  %4562 = vrcp.f32 %v6765_v54  ;;  %v2982_v32 = vmul.f32 %v2593_v13, %v6401_v51  ;;  %v6819_v8 = vor.u32 1.1754944e-38, %v2741_v49  ;;  %3431 = vmatpush.msrb.mxu1 %v3247_v52 }
 0x278   : > { %v2702_v26 = vsub.f32 1.0, %v2701_v42  ;;  %v2709_v2 = vand.u32 2147483647, %v6711_v57  ;;  %v2558_v51 = vsel %vm6776_vm3, %v6670_v29, %v2554_v31  ;;  %vm6825_vm9 = vcmp.eq.f32.partialorder %v2739_v47, 8.507059e+37  ;;  %v3246_v42 = vld [vmem:[#allocation6 + $0x1e0] sm:$0xff] }
 0x279   : > { %vm2705_vm10 = vweird.f32 %v6711_v57  ;;  %4564 = vpow2.f32 %v4115_v22  ;;  %v4118_v6 = vmul.f32 -1.442695, %v6790_v37  ;;  %v2573_v63 = vsel %vm6803_vm6, %v6689_v59, %v2569_v0  ;;  %3432 = vmatpush.msrb.mxu1 %v3246_v42  ;;  %v3242_v42 = vld [vmem:[#allocation6 + $0x1c0] sm:$0xff] }
 0x27a   : > { %v2693_v29 = vsel %vm6815_vm8, %v6696_v1, %v2689_v55  ;;  %vm2736_vm12 = vweird.f32 %v6728_v16  ;;  %v2703_v38 = vmul.f32 %v6767_v56, %v2702_v26  ;;  %v2734_v15 = vadd.f32 %v6728_v16, %v2733_v9  ;;  %v1385_v1 = vpop.f32.mrf.mxu2  ;;  %v3245_v26 = vld [vmem:[#allocation6 + $0x1d8] sm:$0xff] }
 0x27b   : > { %4566 = vpow2.f32 %v4118_v6  ;;  %v6845_v59 = vadd.f32 %v6746_v53, %v5904_v25  ;;  %v6848_v47 = vadd.f32 %v1315_v58, %v5920_v24  ;;  %v2563_v49 = vsel %vm6755_vm1, %v6724_v39, %v2558_v51  ;;  %vm6874_vm14 = vmor %vm2735_vm7, %vm2736_vm12  ;;  %3433 = vmatpush.msrb.mxu1 %v3245_v26  ;;  %v3192_v6 = vld [vmem:[#allocation6 + $0x30] sm:$0xff] }
 0x27c   : > { %v2704_v4 = vadd.f32 %v6767_v56, %v2703_v38  ;;  %vm2706_vm13 = vweird.f32 %v6767_v56  ;;  %v2711_v60 = vand.u32 2147483648, %v6711_v57  ;;  %v6859_v25 = vadd.f32 %v6667_v3, %v2982_v32 }
 0x27d   : > { %v6856_v19 = vpop.eup %4562  ;;  %v4116_v24 = vmul.f32 -1.442695, %v6845_v59  ;;  %v4117_v53 = vmul.f32 -1.442695, %v6848_v47  ;;  %v6863_v13 = vperm.slane %v692_v18, 0  ;;  %v2578_v39 = vsel %vm6780_vm4, %v6759_v62, %v2573_v63  ;;  %vm6892_vm1 = vmor %vm2705_vm10, %vm2706_vm13  ;;  %3434 = vmatpush.msrb.mxu1 %v3244_v34  ;;  %v3224_v34 = vld [vmem:[#allocation6 + $0x130] sm:$0xff] }
 0x27e   : > { %v2698_v33 = vsel %vm6784_vm5, %v2697_v27, %v2693_v29  ;;  %vm6878_vm15 = vcmp.eq.f32.partialorder %v2709_v2, 8.507059e+37  ;;  %v2716_v40 = vmul.f32 %v6856_v19, %v6765_v54  ;;  %v2980_v62 = vmul.f32 %v2563_v49, %v6528_v30  ;;  %v3230_v27 = vld [vmem:[#allocation6 + $0x160] sm:$0xff]  ;;  %v1358_v21 = vpop.f32.mrf.mxu1 }
 0x27f   : > { %v4565_v43 = vpop.eup %4564  ;;  %v2738_v12 = vsel %vm6874_vm14, %v6728_v16, %v2734_v15  ;;  %4568 = vpow2.f32 %v4116_v24  ;;  %v6896_v22 = vperm.slane %v692_v18, 1  ;;  %v2708_v0 = vsel %vm6892_vm1, %v6767_v56, %v2704_v4  ;;  %v3194_v16 = vld [vmem:[#allocation6 + $0x40] sm:$0xff]  ;;  %3412 = vmatpush.msrb.mxu0 %v3230_v27  ;;  %v3191_v4 = vld [vmem:[#allocation6 + $0x28] sm:$0xff] }
 0x280   : > { %v2717_v30 = vsub.f32 1.0, %v2716_v40  ;;  %v6901_v55 = vadd.f32 1.0, %v4565_v43  ;;  %4570 = vpow2.f32 %v4117_v53  ;;  %v2981_v57 = vmul.f32 %v2578_v39, %v6555_v28  ;;  %3376 = vmatpush.msra.mxu3 %v3194_v16  ;;  %v3193_v28 = vld [vmem:[#allocation6 + $0x38] sm:$0xff]  ;;  %v3243_v39 = vld [vmem:[#allocation6 + $0x1c8] sm:$0xff]  ;;  %v3190_v16 = vld [vmem:[#allocation6 + $0x20] sm:$0xff] }
 0x281   : > { %v4567_v17 = vpop.eup %4566  ;;  %v2989_v36 = vmul.f32 %v2698_v33, %v6558_v45  ;;  %v2712_v7 = vor.u32 1.1754944e-38, %v2711_v60  ;;  %v6906_v10 = vadd.f32 %v1356_v20, %v6863_v13  ;;  %v2743_v56 = vsel %vm6825_vm9, %v6819_v8, %v2738_v12  ;;  %v3229_v45 = vld [vmem:[#allocation6 + $0x158] sm:$0xff]  ;;  %v3227_v60 = vld [vmem:[#allocation6 + $0x148] sm:$0xff]  ;;  %3435 = vmatpush.msrb.mxu1 %v3243_v39  ;;  %v3226_v27 = vld [vmem:[#allocation6 + $0x140] sm:$0xff] }
 0x282   : > { %v2718_v9 = vmul.f32 %v6856_v19, %v2717_v30  ;;  %v2724_v32 = vand.u32 2147483647, %v6765_v54  ;;  %4572 = vrcp.f32 %v6901_v55  ;;  %v2726_v58 = vand.u32 2147483648, %v6765_v54  ;;  %3377 = vmatpush.msra.mxu3 %v3193_v28  ;;  %3413 = vmatpush.msrb.mxu0 %v3229_v45  ;;  %v3223_v39 = vld [vmem:[#allocation6 + $0x128] sm:$0xff] }
 0x283   : > { %v2713_v2 = vsel %vm6878_vm15, %v2712_v7, %v2708_v0  ;;  %v6917_v20 = vadd.f32 1.0, %v4567_v17  ;;  %v6920_v8 = vadd.f32 %v1385_v1, %v6896_v22  ;;  %v3076_v51 = vadd.f32 %v6684_v5, %v2980_v62  ;;  %v1387_v5 = vpop.f32.mrf.mxu2  ;;  %3436 = vmatpush.msrb.mxu1 %v3242_v42  ;;  %v3238_v42 = vld [vmem:[#allocation6 + $0x1a0] sm:$0xff] }
 0x284   : > { %v2719_v46 = vadd.f32 %v6856_v19, %v2718_v9  ;;  %vm2720_vm2 = vweird.f32 %v6765_v54  ;;  %vm2721_vm0 = vweird.f32 %v6856_v19  ;;  %v2992_v63 = vmul.f32 %v2743_v56, %v6565_v41  ;;  %3378 = vmatpush.msra.mxu3 %v3192_v6  ;;  %3414 = vmatpush.msrb.mxu0 %v3228_v14  ;;  %v3188_v14 = vld [vmem:[#allocation6 + $0x10] sm:$0xff] }
 0x285   : > { %v4569_v52 = vpop.eup %4568  ;;  %4574 = vrcp.f32 %v6917_v20  ;;  %v4049_v29 = vmul.f32 -1.442695, %v6906_v10  ;;  %v6930_v38 = vadd.f32 %v1358_v21, %v6863_v13  ;;  %v6933_v15 = vadd.f32 %v6720_v48, %v2981_v57  ;;  %vm6945_vm3 = vmor %vm2720_vm2, %vm2721_vm0  ;;  %v3225_v21 = vld [vmem:[#allocation6 + $0x138] sm:$0xff]  ;;  %v3216_v6 = vld [vmem:[#allocation6 + $0xf0] sm:$0xff] }
 0x286   : > { %v4571_v18 = vpop.eup %4570  ;;  %v6936_v1 = vadd.f32 %v6797_v35, %v2989_v36  ;;  %v2990_v49 = vmul.f32 %v2713_v2, %v6598_v50  ;;  %v6939_v41 = vadd.f32 1.0, %v4569_v52  ;;  %vm6949_vm4 = vcmp.eq.f32.partialorder %v2724_v32, 8.507059e+37  ;;  %3379 = vmatpush.msra.mxu3 %v3191_v4  ;;  %3415 = vmatpush.msrb.mxu0 %v3227_v60  ;;  %v3189_v32 = vld [vmem:[#allocation6 + $0x18] sm:$0xff]  ;;  %v3240_v52 = vld [vmem:[#allocation6 + $0x1b0] sm:$0xff] }
 0x287   : > { %v2727_v35 = vor.u32 1.1754944e-38, %v2726_v58  ;;  %v6953_v53 = vadd.f32 1.0, %v4571_v18  ;;  %v4050_v50 = vmul.f32 -1.442695, %v6920_v8  ;;  %v2723_v54 = vsel %vm6945_vm3, %v6856_v19, %v2719_v46  ;;  %v3241_v58 = vld [vmem:[#allocation6 + $0x1b8] sm:$0xff] }
 0x288   : > { %v6956_v33 = vpop.eup %4572  ;;  %v2844_v3 = vand.u32 2147483647, %v6901_v55  ;;  %4576 = vrcp.f32 %v6939_v41  ;;  %v6964_v31 = vadd.f32 %v1387_v5, %v6896_v22  ;;  %v6967_v40 = vadd.f32 %v6859_v25, %v2992_v63  ;;  %3380 = vmatpush.msra.mxu3 %v3190_v16  ;;  %3416 = vmatpush.msrb.mxu0 %v3226_v27  ;;  %v3222_v27 = vld [vmem:[#allocation6 + $0x120] sm:$0xff] }
 0x289   : > { %v2836_v43 = vmul.f32 %v6956_v33, %v6901_v55  ;;  %4578 = vpow2.f32 %v4049_v29  ;;  %v4059_v62 = vmul.f32 -1.442695, %v6930_v38  ;;  %v6972_v12 = vadd.f32 %v3076_v51, %v2990_v49  ;;  %3437 = vmatpush.msrb.mxu1 %v3241_v58  ;;  %v3220_v29 = vld [vmem:[#allocation6 + $0x110] sm:$0xff] }
 0x28a   : > { %vm2840_vm5 = vweird.f32 %v6901_v55  ;;  %v2846_v19 = vand.u32 2147483648, %v6901_v55  ;;  %4580 = vrcp.f32 %v6953_v53  ;;  %v2728_v25 = vsel %vm6949_vm4, %v2727_v35, %v2723_v54  ;;  %3381 = vmatpush.msra.mxu3 %v3189_v32  ;;  %3417 = vmatpush.msrb.mxu0 %v3225_v21  ;;  %v7031_v35 = vpop.f32.mrf.mxu1  ;;  %v3239_v54 = vld [vmem:[#allocation6 + $0x1a8] sm:$0xff] }
 0x28b   : > { %v6977_v23 = vpop.eup %4574  ;;  %v2837_v0 = vsub.f32 1.0, %v2836_v43  ;;  %v2889_v30 = vand.u32 2147483647, %v6917_v20  ;;  %4582 = vpow2.f32 %v4050_v50  ;;  %vm6982_vm6 = vcmp.eq.f32.partialorder %v2844_v3, 8.507059e+37  ;;  %3438 = vmatpush.msrb.mxu1 %v3240_v52  ;;  %v3187_v50 = vld [vmem:[#allocation6 + $0x8] sm:$0xff]  ;;  %v7082_v52 = vpop.f32.mrf.mxu2 }
 0x28c   : > { %v2881_v57 = vmul.f32 %v6977_v23, %v6917_v20  ;;  %v2891_v36 = vand.u32 2147483648, %v6917_v20  ;;  %v6990_v7 = vmul.f32 -1.442695, %v6964_v31  ;;  %vm2841_vm7 = vweird.f32 %v6956_v33  ;;  %3382 = vmatpush.msra.mxu3 %v3188_v14  ;;  %3418 = vmatpush.msrb.mxu0 %v3224_v34 }
 0x28d   : > { %v2838_v56 = vmul.f32 %v6956_v33, %v2837_v0  ;;  %v2859_v9 = vand.u32 2147483647, %v6939_v41  ;;  %4584 = vpow2.f32 %v4059_v62  ;;  %v6998_v45 = vmul.f32 %v2728_v25, %v6647_v44  ;;  %vm7015_vm12 = vmor %vm2840_vm5, %vm2841_vm7  ;;  %3439 = vmatpush.msrb.mxu1 %v3239_v54 }
 0x28e   : > { %v6995_v28 = vpop.eup %4576  ;;  %v2847_v26 = vor.u32 1.1754944e-38, %v2846_v19  ;;  %v2882_v2 = vsub.f32 1.0, %v2881_v57  ;;  %vm2885_vm8 = vweird.f32 %v6917_v20  ;;  %vm2886_vm9 = vweird.f32 %v6977_v23  ;;  %3383 = vmatpush.msra.mxu3 %v3187_v50  ;;  %3419 = vmatpush.msrb.mxu0 %v3223_v39  ;;  %v3186_v20 = vld [vmem:[#allocation6] sm:$0xff]  ;;  %v3235_v50 = vld [vmem:[#allocation6 + $0x188] sm:$0xff] }
 0x28f   : > { %v4579_v51 = vpop.eup %4578  ;;  %v2839_v46 = vadd.f32 %v6956_v33, %v2838_v56  ;;  %vm7003_vm10 = vcmp.eq.f32.partialorder %v2889_v30, 8.507059e+37  ;;  %v2851_v44 = vmul.f32 %v6995_v28, %v6939_v41  ;;  %v2892_v18 = vor.u32 1.1754944e-38, %v2891_v36  ;;  %vm7040_vm15 = vmor %vm2885_vm8, %vm2886_vm9  ;;  %v3265_v56 = vld [vmem:[#allocation6 + $0x278] sm:$0xff]  ;;  %3440 = vmatpush.msrb.mxu1 %v3238_v42 }
 0x290   : > { %v7009_v63 = vpop.eup %4580  ;;  %v2883_v5 = vmul.f32 %v6977_v23, %v2882_v2  ;;  %vm2855_vm13 = vweird.f32 %v6939_v41  ;;  %v2861_v49 = vand.u32 2147483648, %v6939_v41  ;;  %vm7025_vm14 = vcmp.eq.f32.partialorder %v2859_v9, 8.507059e+37  ;;  %3384 = vmatpush.msra.mxu3 %v3186_v20  ;;  %3420 = vmatpush.msrb.mxu0 %v3222_v27  ;;  %v3237_v2 = vld [vmem:[#allocation6 + $0x198] sm:$0xff] }
 0x291   : > { %v4583_v4 = vpop.eup %4582  ;;  %v2843_v60 = vsel %vm7015_vm12, %v6956_v33, %v2839_v46  ;;  %v2852_v24 = vsub.f32 1.0, %v2851_v44  ;;  %v2866_v48 = vmul.f32 %v7009_v63, %v6953_v53  ;;  %v2874_v62 = vand.u32 2147483647, %v6953_v53  ;;  %3449 = vmatpush.msrb.mxu2 %v3265_v56  ;;  %v3264_v44 = vld [vmem:[#allocation6 + $0x270] sm:$0xff]  ;;  %3441 = vmatpush.msrb.mxu1 %v3237_v2 }
 0x292   : > { %v2848_v3 = vsel %vm6982_vm6, %v2847_v26, %v2843_v60  ;;  %v2884_v43 = vadd.f32 %v6977_v23, %v2883_v5  ;;  %v2876_v19 = vand.u32 2147483648, %v6953_v53  ;;  %vm2856_vm1 = vweird.f32 %v6995_v28  ;;  %v3236_v5 = vld [vmem:[#allocation6 + $0x190] sm:$0xff]  ;;  %v3215_v60 = vld [vmem:[#allocation6 + $0xe8] sm:$0xff] }
 0x293   : > { %v4585_v25 = vpop.eup %4584  ;;  %v2999_v0 = vmul.f32 %v2848_v3, %v6694_v11  ;;  %v2853_v30 = vmul.f32 %v6995_v28, %v2852_v24  ;;  %v2867_v16 = vsub.f32 1.0, %v2866_v48  ;;  %vm2871_vm2 = vweird.f32 %v7009_v63  ;;  %v3217_v11 = vld [vmem:[#allocation6 + $0xf8] sm:$0xff]  ;;  %vm7067_vm0 = vmor %vm2855_vm13, %vm2856_vm1  ;;  %3450 = vmatpush.msrb.mxu2 %v3264_v44  ;;  %v3263_v24 = vld [vmem:[#allocation6 + $0x268] sm:$0xff]  ;;  %3442 = vmatpush.msrb.mxu1 %v3236_v5  ;;  %v1392_v34 = vpop.f32.mrf.mxu2 }
 0x294   : > { %v2888_v17 = vsel %vm7040_vm15, %v6977_v23, %v2884_v43  ;;  %v7053_v57 = vadd.f32 1.0, %v4579_v51  ;;  %v7055_v36 = vadd.f32 1.0, %v4583_v4  ;;  %v3221_v23 = vld [vmem:[#allocation6 + $0x118] sm:$0xff]  ;;  %vm2870_vm3 = vweird.f32 %v6953_v53  ;;  %3389 = vmatpush.msrb.mxu3 %v3217_v11  ;;  %v3219_v53 = vld [vmem:[#allocation6 + $0x108] sm:$0xff]  ;;  %v3262_v43 = vld [vmem:[#allocation6 + $0x260] sm:$0xff] }
 0x295   : > { %v3065_v9 = vadd.f32 %v6936_v1, %v2999_v0  ;;  %v2893_v32 = vsel %vm7003_vm10, %v2892_v18, %v2888_v17  ;;  %v2854_v21 = vadd.f32 %v6995_v28, %v2853_v30  ;;  %v2868_v26 = vmul.f32 %v7009_v63, %v2867_v16  ;;  %3421 = vmatpush.msrb.mxu0 %v3221_v23  ;;  %vm7091_vm5 = vmor %vm2870_vm3, %vm2871_vm2  ;;  %v3213_v30 = vld [vmem:[#allocation6 + $0xd8] sm:$0xff]  ;;  %v3212_v11 = vld [vmem:[#allocation6 + $0xd0] sm:$0xff] }
 0x296   : > { %v3002_v58 = vmul.f32 %v2893_v32, %v6790_v37  ;;  %v2862_v1 = vor.u32 1.1754944e-38, %v2861_v49  ;;  %v7072_v46 = vadd.f32 1.0, %v4585_v25  ;;  %vm7078_vm4 = vcmp.eq.f32.partialorder %v2874_v62, 8.507059e+37  ;;  %3390 = vmatpush.msrb.mxu3 %v3216_v6  ;;  %3451 = vmatpush.msrb.mxu2 %v3263_v24  ;;  %v3261_v16 = vld [vmem:[#allocation6 + $0x258] sm:$0xff]  ;;  %v3260_v56 = vld [vmem:[#allocation6 + $0x250] sm:$0xff]  ;;  %v3259_v6 = vld [vmem:[#allocation6 + $0x248] sm:$0xff] }
 0x297   : > { %v3066_v14 = vrot.slane %v3065_v9, 4  ;;  %v2858_v37 = vsel %vm7067_vm0, %v6995_v28, %v2854_v21  ;;  %v2869_v41 = vadd.f32 %v7009_v63, %v2868_v26  ;;  %v2877_v4 = vor.u32 1.1754944e-38, %v2876_v19  ;;  %3422 = vmatpush.msrb.mxu0 %v3220_v29  ;;  %v7109_v19 = vpop.f32.mrf.mxu1  ;;  %3443 = vmatpush.msrb.mxu1 %v3235_v50  ;;  %v3312_v26 = vld [vmem:[#allocation6 + $0x3f0] sm:$0xff]  ;;  %v3295_v44 = vld [vmem:[#allocation6 + $0x368] sm:$0xff]  ;;  %v3210_v28 = vld [vmem:[#allocation6 + $0xc0] sm:$0xff] }
 0x298   : > { %v3104_v18 = vadd.f32 %v6967_v40, %v3002_v58  ;;  %v2863_v49 = vsel %vm7025_vm14, %v2862_v1, %v2858_v37  ;;  %4586 = vrcp.f32 %v7053_v57  ;;  %v3090_v39 = vadd.f32 %v6933_v15, %v6998_v45  ;;  %3391 = vmatpush.msrb.mxu3 %v3215_v60  ;;  %v3218_v15 = vld [vmem:[#allocation6 + $0x100] sm:$0xff]  ;;  %3452 = vmatpush.msrb.mxu2 %v3262_v43  ;;  %v3211_v1 = vld [vmem:[#allocation6 + $0xc8] sm:$0xff] }
 0x299   : > { %v3067_v48 = vadd.f32 %v3066_v14, %v3065_v9  ;;  %v3000_v40 = vmul.f32 %v2863_v49, %v6845_v59  ;;  %v2873_v55 = vsel %vm7091_vm5, %v7009_v63, %v2869_v41  ;;  %4588 = vrcp.f32 %v7055_v36  ;;  %v3214_v59 = vld [vmem:[#allocation6 + $0xe0] sm:$0xff]  ;;  %3423 = vmatpush.msrb.mxu0 %v3219_v53  ;;  %v3311_v29 = vld [vmem:[#allocation6 + $0x3e8] sm:$0xff] }
 0x29a   : > { %v3105_v54 = vrot.slane %v3104_v18, 4  ;;  %v2878_v3 = vsel %vm7078_vm4, %v2877_v4, %v2873_v55  ;;  %4590 = vrcp.f32 %v7072_v46  ;;  %v3234_v45 = vld [vmem:[#allocation6 + $0x180] sm:$0xff]  ;;  %v7113_v0 = vadd.f32 %v7031_v35, %v6863_v13  ;;  %3392 = vmatpush.msrb.mxu3 %v3214_v59  ;;  %3453 = vmatpush.msrb.mxu2 %v3261_v16  ;;  %v3296_v35 = vld [vmem:[#allocation6 + $0x370] sm:$0xff] }
 0x29b   : > { %v3068_v63 = vrot.slane %v3067_v48, 2  ;;  %v3078_v33 = vadd.f32 %v6972_v12, %v3000_v40  ;;  %v3001_v62 = vmul.f32 %v2878_v3, %v6848_v47  ;;  %4592 = vpow2.f32 %v6990_v7  ;;  %v3297_v12 = vld [vmem:[#allocation6 + $0x378] sm:$0xff]  ;;  %3424 = vmatpush.msrb.mxu0 %v3218_v15  ;;  %3444 = vmatpush.msrb.mxu1 %v3234_v45  ;;  %v3258_v4 = vld [vmem:[#allocation6 + $0x240] sm:$0xff] }
 0x29c   : > { %v3106_v25 = vadd.f32 %v3105_v54, %v3104_v18  ;;  %v3313_v7 = vld [vmem:[#allocation6 + $0x3f8] sm:$0xff]  ;;  %3393 = vmatpush.msrb.mxu3 %v3213_v30  ;;  %v4069_v51 = vmul.f32 -1.442695, %v7113_v0  ;;  %3454 = vmatpush.msrb.mxu2 %v3260_v56  ;;  %vm3160_vm6 = vcmask 1044484   ;;  %vm3162_vm7 = vcmask 1046534   ;;  %v3294_v60 = vld [vmem:[#allocation6 + $0x360] sm:$0xff] }
 0x29d   : > { %v3069_v20 = vadd.f32 %v3068_v63, %v3067_v48  ;;  %v3079_v47 = vrot.slane %v3078_v33, 4  ;;  %v3091_v27 = vadd.f32 %v3090_v39, %v3001_v62  ;;  %3489 = vmatpush.msra.mxu0 %v3297_v12  ;;  %3509 = vmatpush.msra.mxu1 %v3313_v7  ;;  %vm3164_vm8 = vcmask 1045508   ;;  %v3310_v55 = vld [vmem:[#allocation6 + $0x3e0] sm:$0xff]  ;;  %v3309_v56 = vld [vmem:[#allocation6 + $0x3d8] sm:$0xff] }
 0x29e   : > { %v7115_v42 = vpop.eup %4586  ;;  %v3107_v17 = vrot.slane %v3106_v25, 2  ;;  %3394 = vmatpush.msrb.mxu3 %v3212_v11  ;;  %3455 = vmatpush.msrb.mxu2 %v3259_v6  ;;  %vm3166_vm9 = vcmask 1043456   ;;  %v1854_v50 = vand.u32 2147483647, %v7053_v57  ;;  %4594 = vpow2.f32 %v4069_v51  ;;  %v3292_v51 = vld [vmem:[#allocation6 + $0x350] sm:$0xff] }
 0x29f   : > { %v7117_v9 = vpop.eup %4588  ;;  %v3080_v32 = vadd.f32 %v3079_v47, %v3078_v33  ;;  %v3092_v21 = vrot.slane %v3091_v27, 4  ;;  %v3070_v2 = vrot.slane %v3069_v20, 1  ;;  %3490 = vmatpush.msra.mxu0 %v3296_v35  ;;  %3510 = vmatpush.msra.mxu1 %v3312_v26  ;;  %v1846_v18 = vmul.f32 %v7115_v42, %v7053_v57  ;;  %v1366_v43 = vpop.f32.mrf.mxu1  ;;  %v3293_v47 = vld [vmem:[#allocation6 + $0x358] sm:$0xff] }
 0x2a0   : > { %v7119_v23 = vpop.eup %4590  ;;  %v3108_v58 = vadd.f32 %v3107_v17, %v3106_v25  ;;  %v1861_v49 = vmul.f32 %v7117_v9, %v7055_v36  ;;  %3395 = vmatpush.msrb.mxu3 %v3211_v1  ;;  %3456 = vmatpush.msrb.mxu2 %v3258_v4  ;;  %v7133_v59 = vadd.f32 %v7082_v52, %v6896_v22  ;;  %v1856_v25 = vand.u32 2147483648, %v7053_v57  ;;  %v3209_v52 = vld [vmem:[#allocation6 + $0xb8] sm:$0xff] }
 0x2a1   : > { %v4593_v14 = vpop.eup %4592  ;;  %v3081_v37 = vrot.slane %v3080_v32, 2  ;;  %v3093_v41 = vadd.f32 %v3092_v21, %v3091_v27  ;;  %v1996_v40 = vmul.f32 %v7119_v23, %v7072_v46  ;;  %3491 = vmatpush.msra.mxu0 %v3295_v44  ;;  %3511 = vmatpush.msra.mxu1 %v3311_v29  ;;  %v3071_v53 = vadd.f32 %v3070_v2, %v3069_v20  ;;  %v3257_v20 = vld [vmem:[#allocation6 + $0x238] sm:$0xff]  ;;  %v3208_v2 = vld [vmem:[#allocation6 + $0xb0] sm:$0xff] }
 0x2a2   : > { %v3109_v5 = vrot.slane %v3108_v58, 1  ;;  %v7129_v39 = vadd.f32 1.0, %v4593_v14  ;;  %3396 = vmatpush.msrb.mxu3 %v3210_v28  ;;  %v1847_v33 = vsub.f32 1.0, %v1846_v18  ;;  %v1862_v62 = vsub.f32 1.0, %v1861_v49  ;;  %3457 = vmatpush.msrb.mxu2 %v3257_v20  ;;  %v1395_v14 = vpop.f32.mrf.mxu2  ;;  %v3207_v18 = vld [vmem:[#allocation6 + $0xa8] sm:$0xff]  ;;  %v3289_v20 = vld [vmem:[#allocation6 + $0x338] sm:$0xff] }
 0x2a3   : > { %v3082_v24 = vadd.f32 %v3081_v37, %v3080_v32  ;;  %v3094_v48 = vrot.slane %v3093_v41, 2  ;;  %3492 = vmatpush.msra.mxu0 %v3294_v60  ;;  %3512 = vmatpush.msra.mxu1 %v3310_v55  ;;  %v1997_v30 = vsub.f32 1.0, %v1996_v40  ;;  %v3150_v16 = vrot.slane %v3071_v53, 4  ;;  %v3308_v37 = vld [vmem:[#allocation6 + $0x3d0] sm:$0xff]  ;;  %v3307_v40 = vld [vmem:[#allocation6 + $0x3c8] sm:$0xff] }
 0x2a4   : > { %v3110_v63 = vadd.f32 %v3109_v5, %v3108_v58  ;;  %4596 = vrcp.f32 %v7129_v39  ;;  %vm1850_vm10 = vweird.f32 %v7053_v57  ;;  %v1869_v12 = vand.u32 2147483647, %v7055_v36  ;;  %3397 = vmatpush.msrb.mxu3 %v3209_v52  ;;  %v3256_v58 = vld [vmem:[#allocation6 + $0x230] sm:$0xff]  ;;  %v4595_v1 = vpop.eup %4594  ;;  %v3253_v52 = vld [vmem:[#allocation6 + $0x218] sm:$0xff] }
 0x2a5   : > { %v3083_v54 = vrot.slane %v3082_v24, 1  ;;  %v3095_v3 = vadd.f32 %v3094_v48, %v3093_v41  ;;  %vm1865_vm12 = vweird.f32 %v7055_v36  ;;  %v4070_v17 = vmul.f32 -1.442695, %v7133_v59  ;;  %3493 = vmatpush.msra.mxu0 %v3293_v47  ;;  %3513 = vmatpush.msra.mxu1 %v3309_v56  ;;  %v3291_v48 = vld [vmem:[#allocation6 + $0x348] sm:$0xff] }
 0x2a6   : > { %v7143_v11 = vadd.f32 %v7109_v19, %v6863_v13  ;;  %v3153_v35 = vrot.slane %v3110_v63, 1  ;;  %v1848_v32 = vmul.f32 %v7115_v42, %v1847_v33  ;;  %v1863_v21 = vmul.f32 %v7117_v9, %v1862_v62  ;;  %3398 = vmatpush.msrb.mxu3 %v3208_v2  ;;  %3458 = vmatpush.msrb.mxu2 %v3256_v58 }
 0x2a7   : > { %v3084_v15 = vadd.f32 %v3083_v54, %v3082_v24  ;;  %v3096_v45 = vrot.slane %v3095_v3, 1  ;;  %v7148_v26 = vadd.f32 %v1392_v34, %v6896_v22  ;;  %v1998_v44 = vmul.f32 %v7119_v23, %v1997_v30  ;;  %3494 = vmatpush.msra.mxu0 %v3292_v51  ;;  %3514 = vmatpush.msra.mxu1 %v3308_v37  ;;  %v3255_v24 = vld [vmem:[#allocation6 + $0x228] sm:$0xff]  ;;  %v3206_v54 = vld [vmem:[#allocation6 + $0xa0] sm:$0xff]  ;;  %v1368_v62 = vpop.f32.mrf.mxu1  ;;  %v3204_v51 = vld [vmem:[#allocation6 + $0x90] sm:$0xff] }
 0x2a8   : > { %4598 = vpow2.f32 %v4070_v17  ;;  %vm1851_vm13 = vweird.f32 %v7115_v42  ;;  %v1871_v34 = vand.u32 2147483648, %v7055_v36  ;;  %v7156_v29 = vadd.f32 1.0, %v4595_v1  ;;  %3399 = vmatpush.msrb.mxu3 %v3207_v18  ;;  %3459 = vmatpush.msrb.mxu2 %v3255_v24  ;;  %v3252_v1 = vld [vmem:[#allocation6 + $0x210] sm:$0xff]  ;;  %v3251_v18 = vld [vmem:[#allocation6 + $0x208] sm:$0xff] }
 0x2a9   : > { %v3151_v27 = vrot.slane %v3084_v15, 3  ;;  %v3097_v7 = vadd.f32 %v3096_v45, %v3095_v3  ;;  %v4079_v5 = vmul.f32 -1.442695, %v7143_v11  ;;  %v4080_v4 = vmul.f32 -1.442695, %v7148_v26  ;;  %3495 = vmatpush.msra.mxu0 %v3291_v48  ;;  %v3254_v3 = vld [vmem:[#allocation6 + $0x220] sm:$0xff]  ;;  %3515 = vmatpush.msra.mxu1 %v3307_v40  ;;  %vm7191_vm1 = vmor %vm1850_vm10, %vm1851_vm13 }
 0x2aa   : > { %v7152_v41 = vpop.eup %4596  ;;  %v7166_v60 = vadd.f32 %v1366_v43, %v6863_v13  ;;  %v7170_v53 = vadd.f32 %v7115_v42, %v1848_v32  ;;  %vm1866_vm14 = vweird.f32 %v7117_v9  ;;  %4600 = vrcp.f32 %v7156_v29  ;;  %3400 = vmatpush.msrb.mxu3 %v3206_v54  ;;  %v3290_v15 = vld [vmem:[#allocation6 + $0x340] sm:$0xff]  ;;  %3460 = vmatpush.msrb.mxu2 %v3254_v3  ;;  %v3304_v37 = vld [vmem:[#allocation6 + $0x3b0] sm:$0xff]  ;;  %v3303_v24 = vld [vmem:[#allocation6 + $0x3a8] sm:$0xff] }
 0x2ab   : > { %v3161_v19 = vsel %vm3160_vm6, %v3150_v16, %v3151_v27  ;;  %v3152_v6 = vrot.slane %v3097_v7, 2  ;;  %v7162_v28 = vmul.f32 %v7152_v41, %v7129_v39  ;;  %v7177_v63 = vadd.f32 %v7117_v9, %v1863_v21  ;;  %v3306_v45 = vld [vmem:[#allocation6 + $0x3c0] sm:$0xff]  ;;  %3496 = vmatpush.msra.mxu0 %v3290_v15  ;;  %vm7202_vm2 = vmor %vm1865_vm12, %vm1866_vm14 }
 0x2ac   : > { %v7180_v33 = vadd.f32 %v7119_v23, %v1998_v44  ;;  %vm2001_vm15 = vweird.f32 %v7119_v23  ;;  %4602 = vpow2.f32 %v4079_v5  ;;  %v4089_v30 = vmul.f32 -1.442695, %v7166_v60  ;;  %3516 = vmatpush.msra.mxu1 %v3306_v45  ;;  %3461 = vmatpush.msrb.mxu2 %v3253_v52  ;;  %v3203_v5 = vld [vmem:[#allocation6 + $0x88] sm:$0xff]  ;;  %v3302_v15 = vld [vmem:[#allocation6 + $0x3a0] sm:$0xff]  ;;  %v3285_v52 = vld [vmem:[#allocation6 + $0x318] sm:$0xff] }
 0x2ad   : > { %v3163_v49 = vsel %vm3162_vm7, %v3152_v6, %v3153_v35  ;;  %v7185_v16 = vadd.f32 %v1395_v14, %v6896_v22  ;;  %v2004_v7 = vand.u32 2147483647, %v7072_v46  ;;  %v2006_v17 = vand.u32 2147483648, %v7072_v46  ;;  %v3305_v35 = vld [vmem:[#allocation6 + $0x3b8] sm:$0xff]  ;;  %3497 = vmatpush.msra.mxu0 %v3289_v20  ;;  %v3288_v14 = vld [vmem:[#allocation6 + $0x330] sm:$0xff] }
 0x2ae   : > { %v3165_v55 = vsel %vm3164_vm8, %v3161_v19, %v3163_v49  ;;  %v4599_v47 = vpop.eup %4598  ;;  %v2012_v56 = vsub.f32 1.0, %v7162_v28  ;;  %4604 = vpow2.f32 %v4080_v4  ;;  %vm2000_vm0 = vweird.f32 %v7072_v46  ;;  %3517 = vmatpush.msra.mxu1 %v3305_v35  ;;  %3462 = vmatpush.msrb.mxu2 %v3252_v1  ;;  %v3287_v49 = vld [vmem:[#allocation6 + $0x328] sm:$0xff]  ;;  %v3301_v20 = vld [vmem:[#allocation6 + $0x398] sm:$0xff] }
 0x2af   : > { %v3167_v43 = vsel %vm3166_vm9, %v6010_v61, %v3165_v55  ;;  %v3205_v61 = vld [vmem:[#allocation6 + $0x98] sm:$0xff]  ;;  %v7207_v21 = vadd.f32 1.0, %v4599_v47  ;;  %v4090_v2 = vmul.f32 -1.442695, %v7185_v16  ;;  %v7211_v58 = vadd.f32 %v1368_v62, %v6863_v13  ;;  %vm7227_vm4 = vmor %vm2000_vm0, %vm2001_vm15  ;;  %3498 = vmatpush.msra.mxu0 %v3288_v14  ;;  %v3202_v55 = vld [vmem:[#allocation6 + $0x80] sm:$0xff] }
 0x2b0   : > { %3401 = vmatpush.msrb.mxu3 %v3205_v61  ;;  %3173 = vst [vmem:[#allocation2] sm:$0xff] %v3167_v43  ;;  %v1853_v19 = vsel %vm7191_vm1, %v7115_v42, %v7170_v53  ;;  %vm7219_vm3 = vcmp.eq.f32.partialorder %v1854_v50, 8.507059e+37  ;;  %v1857_v6 = vor.u32 1.1754944e-38, %v1856_v25  ;;  %4606 = vpow2.f32 %v4089_v30  ;;  %v7231_v42 = vpop.eup %4600  ;;  %3518 = vmatpush.msra.mxu1 %v3304_v37  ;;  %v3250_v53 = vld [vmem:[#allocation6 + $0x200] sm:$0xff]  ;;  %v3283_v37 = vld [vmem:[#allocation6 + $0x308] sm:$0xff] }
 0x2b1   : > { %v1868_v50 = vsel %vm7202_vm2, %v7117_v9, %v7177_v63  ;;  %v1872_v57 = vor.u32 1.1754944e-38, %v1871_v34  ;;  %v2003_v25 = vsel %vm7227_vm4, %v7119_v23, %v7180_v33  ;;  %4608 = vrcp.f32 %v7207_v21  ;;  %v1397_v34 = vpop.f32.mrf.mxu2  ;;  %3463 = vmatpush.msrb.mxu2 %v3251_v18  ;;  %3499 = vmatpush.msra.mxu0 %v3287_v49  ;;  %v3286_v62 = vld [vmem:[#allocation6 + $0x320] sm:$0xff] }
 0x2b2   : > { %3402 = vmatpush.msrb.mxu3 %v3204_v51  ;;  %v2007_v28 = vor.u32 1.1754944e-38, %v2006_v17  ;;  %v2013_v4 = vmul.f32 %v7152_v41, %v2012_v56  ;;  %v2146_v9 = vmul.f32 %v7231_v42, %v7156_v29  ;;  %4610 = vpow2.f32 %v4090_v2  ;;  %v4603_v48 = vpop.eup %4602  ;;  %3519 = vmatpush.msra.mxu1 %v3303_v24  ;;  %v3284_v2 = vld [vmem:[#allocation6 + $0x310] sm:$0xff] }
 0x2b3   : > { %v1858_v23 = vsel %vm7219_vm3, %v1857_v6, %v1853_v19  ;;  %vm1870_vm5 = vcmp.eq.f32.partialorder %v1869_v12, 8.507059e+37  ;;  %vm2005_vm6 = vcmp.eq.f32.partialorder %v2004_v7, 8.507059e+37  ;;  %v4099_v40 = vmul.f32 -1.442695, %v7211_v58  ;;  %3464 = vmatpush.msrb.mxu2 %v3250_v53  ;;  %3500 = vmatpush.msra.mxu0 %v3286_v62  ;;  %v3300_v51 = vld [vmem:[#allocation6 + $0x390] sm:$0xff]  ;;  %v1371_v19 = vpop.f32.mrf.mxu1 }
 0x2b4   : > { %3403 = vmatpush.msrb.mxu3 %v3203_v5  ;;  %v4605_v54 = vpop.eup %4604  ;;  %v1873_v3 = vsel %vm1870_vm5, %v1872_v57, %v1868_v50  ;;  %v2008_v43 = vsel %vm2005_vm6, %v2007_v28, %v2003_v25  ;;  %v2147_v63 = vsub.f32 1.0, %v2146_v9  ;;  %v7252_v33 = vadd.f32 1.0, %v4603_v48  ;;  %3520 = vmatpush.msra.mxu1 %v3302_v15  ;;  %v3299_v50 = vld [vmem:[#allocation6 + $0x388] sm:$0xff]  ;;  %v3282_v9 = vld [vmem:[#allocation6 + $0x300] sm:$0xff] }
 0x2b5   : > { %v2019_v36 = vand.u32 2147483647, %v7129_v39  ;;  %v2021_v12 = vand.u32 2147483648, %v7129_v39  ;;  %v7256_v45 = vadd.f32 1.0, %v4605_v54  ;;  %4612 = vpow2.f32 %v4099_v40  ;;  %3501 = vmatpush.msra.mxu0 %v3285_v52 }
 0x2b6   : > { %3404 = vmatpush.msrb.mxu3 %v3202_v55  ;;  %v4607_v30 = vpop.eup %4606  ;;  %v2014_v61 = vadd.f32 %v7152_v41, %v2013_v4  ;;  %vm2016_vm7 = vweird.f32 %v7152_v41  ;;  %4614 = vrcp.f32 %v7252_v33  ;;  %v2933_v27 = vmul.f32 %v1858_v23, %v6906_v10  ;;  %3521 = vmatpush.msra.mxu1 %v3301_v20 }
 0x2b7   : > { %v7261_v47 = vpop.eup %4608  ;;  %v2943_v7 = vmul.f32 %v2008_v43, %v6930_v38  ;;  %4616 = vrcp.f32 %v7256_v45  ;;  %v7267_v56 = vmul.f32 %v1873_v3, %v6920_v8  ;;  %vm2015_vm8 = vweird.f32 %v7129_v39  ;;  %3502 = vmatpush.msra.mxu0 %v3284_v2 }
 0x2b8   : > { %v4611_v17 = vpop.eup %4610  ;;  %v2148_v35 = vmul.f32 %v7231_v42, %v2147_v63  ;;  %v2161_v32 = vmul.f32 %v7261_v47, %v7207_v21  ;;  %vm7275_vm9 = vmor %vm2015_vm8, %vm2016_vm7  ;;  %vm7279_vm10 = vcmp.eq.f32.partialorder %v2019_v36, 8.507059e+37  ;;  %v2022_v38 = vor.u32 1.1754944e-38, %v2021_v12  ;;  %3522 = vmatpush.msra.mxu1 %v3300_v51 }
 0x2b9   : > { %v7283_v39 = vadd.f32 1.0, %v4607_v30  ;;  %v7286_v1 = vadd.f32 %v1397_v34, %v6896_v22  ;;  %v2018_v46 = vsel %vm7275_vm9, %v7152_v41, %v2014_v61  ;;  %v2154_v6 = vand.u32 2147483647, %v7156_v29  ;;  %v1400_v4 = vpop.f32.mrf.mxu2  ;;  %3503 = vmatpush.msra.mxu0 %v3283_v37  ;;  %v3298_v34 = vld [vmem:[#allocation6 + $0x380] sm:$0xff] }
 0x2ba   : > { %v2156_v44 = vand.u32 2147483648, %v7156_v29  ;;  %v7293_v14 = vadd.f32 1.0, %v4611_v17  ;;  %v7295_v25 = vadd.f32 %v2943_v7, %v2933_v27  ;;  %v2162_v5 = vsub.f32 1.0, %v2161_v32  ;;  %3523 = vmatpush.msra.mxu1 %v3299_v50 }
 0x2bb   : > { %v4613_v57 = vpop.eup %4612  ;;  %v2171_v18 = vand.u32 2147483648, %v7207_v21  ;;  %4618 = vrcp.f32 %v7283_v39  ;;  %v2149_v41 = vadd.f32 %v7231_v42, %v2148_v35  ;;  %vm2150_vm12 = vweird.f32 %v7156_v29  ;;  %3504 = vmatpush.msra.mxu0 %v3282_v9 }
 0x2bc   : > { %v7299_v49 = vpop.eup %4614  ;;  %vm2151_vm13 = vweird.f32 %v7231_v42  ;;  %v7305_v28 = vadd.f32 %v1371_v19, %v6863_v13  ;;  %v2023_v48 = vsel %vm7279_vm10, %v2022_v38, %v2018_v46  ;;  %4620 = vrcp.f32 %v7293_v14  ;;  %3524 = vmatpush.msra.mxu1 %v3298_v34 }
 0x2bd   : > { %v7307_v24 = vpop.eup %4616  ;;  %v2296_v23 = vmul.f32 %v7299_v49, %v7252_v33  ;;  %v4100_v40 = vmul.f32 -1.442695, %v7286_v1  ;;  %vm7315_vm14 = vcmp.eq.f32.partialorder %v2154_v6, 8.507059e+37  ;;  %v2157_v53 = vor.u32 1.1754944e-38, %v2156_v44  ;;  %vm7326_vm15 = vmor %vm2150_vm12, %vm2151_vm13 }
 0x2be   : > { %v2169_v54 = vand.u32 2147483647, %v7207_v21  ;;  %v2311_v3 = vmul.f32 %v7307_v24, %v7256_v45  ;;  %v2163_v63 = vmul.f32 %v7261_v47, %v2162_v5  ;;  %vm2165_vm1 = vweird.f32 %v7207_v21  ;;  %v1373_v5 = vpop.f32.mrf.mxu1  ;;  %v3280_v21 = vld [vmem:[#allocation6 + $0x2f0] sm:$0xff] }
 0x2bf   : > { %v2172_v62 = vor.u32 1.1754944e-38, %v2171_v18  ;;  %v7333_v15 = vadd.f32 %v1400_v4, %v6896_v22  ;;  %v2944_v36 = vmul.f32 %v2023_v48, %v6964_v31  ;;  %v2153_v12 = vsel %vm7326_vm15, %v7231_v42, %v2149_v41 }
 0x2c0   : > { %v2297_v30 = vsub.f32 1.0, %v2296_v23  ;;  %v7339_v29 = vadd.f32 1.0, %v4613_v57  ;;  %v2304_v52 = vand.u32 2147483647, %v7252_v33  ;;  %v2312_v20 = vsub.f32 1.0, %v2311_v3 }
 0x2c1   : > { %v7341_v61 = vpop.eup %4618  ;;  %4622 = vpow2.f32 %v4100_v40  ;;  %v4109_v27 = vmul.f32 -1.442695, %v7305_v28  ;;  %vm2166_vm2 = vweird.f32 %v7261_v47  ;;  %vm7346_vm0 = vcmp.eq.f32.partialorder %v2169_v54, 8.507059e+37  ;;  %v1402_v40 = vpop.f32.mrf.mxu2 }
 0x2c2   : > { %v2306_v31 = vand.u32 2147483648, %v7252_v33  ;;  %v2319_v42 = vand.u32 2147483647, %v7256_v45  ;;  %v2446_v17 = vmul.f32 %v7341_v61, %v7283_v39  ;;  %v7354_v35 = vpop.eup %4620  ;;  %v2158_v32 = vsel %vm7315_vm14, %v2157_v53, %v2153_v12  ;;  %vm7376_vm5 = vmor %vm2165_vm1, %vm2166_vm2 }
 0x2c3   : > { %v2164_v2 = vadd.f32 %v7261_v47, %v2163_v63  ;;  %v2321_v51 = vand.u32 2147483648, %v7256_v45  ;;  %4624 = vrcp.f32 %v7339_v29  ;;  %v2298_v10 = vmul.f32 %v7299_v49, %v2297_v30 }
 0x2c4   : > { %v2447_v8 = vsub.f32 1.0, %v2446_v17  ;;  %v2461_v38 = vmul.f32 %v7354_v35, %v7293_v14  ;;  %v4110_v19 = vmul.f32 -1.442695, %v7333_v15  ;;  %v7366_v46 = vadd.f32 %v2944_v36, %v7267_v56 }
 0x2c5   : > { %vm2300_vm3 = vweird.f32 %v7252_v33  ;;  %v2313_v6 = vmul.f32 %v7307_v24, %v2312_v20  ;;  %vm2315_vm4 = vweird.f32 %v7256_v45  ;;  %v2953_v44 = vmul.f32 %v2158_v32, %v7113_v0 }
 0x2c6   : > { %vm7380_vm6 = vcmp.eq.f32.partialorder %v2304_v52, 8.507059e+37  ;;  %v2307_v56 = vor.u32 1.1754944e-38, %v2306_v31  ;;  %v2456_v57 = vand.u32 2147483648, %v7283_v39  ;;  %v2168_v0 = vsel %vm7376_vm5, %v7261_v47, %v2164_v2 }
 0x2c7   : > { %v4623_v18 = vpop.eup %4622  ;;  %vm2301_vm7 = vweird.f32 %v7299_v49  ;;  %vm7389_vm8 = vcmp.eq.f32.partialorder %v2319_v42, 8.507059e+37  ;;  %v2322_v41 = vor.u32 1.1754944e-38, %v2321_v51  ;;  %v2454_v4 = vand.u32 2147483647, %v7283_v39 }
 0x2c8   : > { %v2299_v9 = vadd.f32 %v7299_v49, %v2298_v10  ;;  %v2448_v34 = vmul.f32 %v7341_v61, %v2447_v8  ;;  %v2462_v48 = vsub.f32 1.0, %v2461_v38  ;;  %v7396_v23 = vadd.f32 1.0, %v4623_v18  ;;  %vm7417_vm12 = vmor %vm2300_vm3, %vm2301_vm7  ;;  %v3268_v18 = vld [vmem:[#allocation6 + $0x290] sm:$0xff] }
 0x2c9   : > { %v7398_v55 = vpop.eup %4624  ;;  %v2314_v47 = vadd.f32 %v7307_v24, %v2313_v6  ;;  %vm2316_vm9 = vweird.f32 %v7307_v24  ;;  %4626 = vpow2.f32 %v4109_v27  ;;  %v7403_v53 = vadd.f32 %v1373_v5, %v6863_v13 }
 0x2ca   : > { %v7406_v54 = vadd.f32 %v7295_v25, %v2953_v44  ;;  %vm2450_vm10 = vweird.f32 %v7283_v39  ;;  %v2457_v3 = vor.u32 1.1754944e-38, %v2456_v57  ;;  %v2596_v43 = vmul.f32 %v7398_v55, %v7339_v29  ;;  %vm7438_vm15 = vmor %vm2315_vm4, %vm2316_vm9  ;;  %v3281_v44 = vld [vmem:[#allocation6 + $0x2f8] sm:$0xff] }
 0x2cb   : > { %v2173_v63 = vsel %vm7346_vm0, %v2172_v62, %v2168_v0  ;;  %vm7421_vm13 = vcmp.eq.f32.partialorder %v2454_v4, 8.507059e+37  ;;  %vm2465_vm14 = vweird.f32 %v7293_v14  ;;  %v2469_v25 = vand.u32 2147483647, %v7293_v14 }
 0x2cc   : > { %4628 = vrcp.f32 %v7396_v23  ;;  %v7429_v62 = vadd.f32 %v1402_v40, %v6896_v22  ;;  %v2303_v33 = vsel %vm7417_vm12, %v7299_v49, %v2299_v9  ;;  %v2449_v30 = vadd.f32 %v7341_v61, %v2448_v34  ;;  %v3182_v22 = vld [vmem:[#allocation2] sm:$0xff] }
 0x2cd   : > { %vm2451_vm1 = vweird.f32 %v7341_v61  ;;  %v2463_v52 = vmul.f32 %v7354_v35, %v2462_v48  ;;  %v2318_v20 = vsel %vm7438_vm15, %v7307_v24, %v2314_v47  ;;  %v2471_v49 = vand.u32 2147483648, %v7293_v14  ;;  %v3279_v47 = vld [vmem:[#allocation6 + $0x2e8] sm:$0xff]  ;;  %v3325_v14 = vld [vmem:[#allocation6 + $0x458] sm:$0xff] }
 0x2ce   : > { %4630 = vpow2.f32 %v4110_v19  ;;  %v4119_v45 = vmul.f32 -1.442695, %v7403_v53  ;;  %v2954_v27 = vmul.f32 %v2173_v63, %v7133_v59  ;;  %vm2466_vm2 = vweird.f32 %v7354_v35  ;;  %vm7457_vm0 = vmor %vm2450_vm10, %vm2451_vm1 }
 0x2cf   : > { %v2597_v7 = vsub.f32 1.0, %v2596_v43  ;;  %v2604_v31 = vand.u32 2147483647, %v7339_v29  ;;  %v4627_v42 = vpop.eup %4626  ;;  %v2308_v17 = vsel %vm7380_vm6, %v2307_v56, %v2303_v33  ;;  %v4120_v32 = vmul.f32 -1.442695, %v7429_v62  ;;  %vm7494_vm4 = vmor %vm2465_vm14, %vm2466_vm2 }
 0x2d0   : > { %4632 = vpow2.f32 %v4119_v45  ;;  %v7462_v2 = vmul.f32 0.015625, %v3182_v22  ;;  %v2323_v59 = vsel %vm7389_vm8, %v2322_v41, %v2318_v20  ;;  %v2453_v51 = vsel %vm7457_vm0, %v7341_v61, %v2449_v30  ;;  %v3277_v45 = vld [vmem:[#allocation6 + $0x2d8] sm:$0xff] }
 0x2d1   : > { %v2464_v10 = vadd.f32 %v7354_v35, %v2463_v52  ;;  %v7470_v8 = vadd.f32 1.0, %v4627_v42  ;;  %4634 = vpow2.f32 %v4120_v32  ;;  %v2598_v37 = vmul.f32 %v7398_v55, %v2597_v7  ;;  %v3328_v42 = vld [vmem:[#allocation6 + $0x470] sm:$0xff] }
 0x2d2   : > { %v7472_v39 = vpop.eup %4628  ;;  %v3349_v38 = vperm.slane %v7462_v2, 0  ;;  %v3351_v19 = vperm.slane %v7462_v2, 2  ;;  %v3352_v6 = vperm.slane %v7462_v2, 3  ;;  %v2606_v50 = vand.u32 2147483648, %v7339_v29 }
 0x2d3   : > { %v2611_v61 = vmul.f32 %v7472_v39, %v7396_v23  ;;  %4636 = vrcp.f32 %v7470_v8  ;;  %v2963_v57 = vmul.f32 %v2308_v17, %v7143_v11  ;;  %v2964_v5 = vmul.f32 %v2323_v59, %v7148_v26 }
 0x2d4   : > { %v4631_v56 = vpop.eup %4630  ;;  %vm7484_vm3 = vcmp.eq.f32.partialorder %v2469_v25, 8.507059e+37  ;;  %v2472_v0 = vor.u32 1.1754944e-38, %v2471_v49  ;;  %3385 = vmatmul.f32.vlgmr.msra.gmra.mxu3 %v3349_v38  ;;  %3425 = vmatmul.f32.vlgmr.msrb.gmra.mxu0 %v3351_v19  ;;  %v2458_v41 = vsel %vm7421_vm13, %v2457_v3, %v2453_v51  ;;  %v3353_v9 = vperm.slane %v7462_v2, 4  ;;  %v3278_v25 = vld [vmem:[#allocation6 + $0x2e0] sm:$0xff]  ;;  %v3276_v51 = vld [vmem:[#allocation6 + $0x2d0] sm:$0xff]  ;;  %v3327_v19 = vld [vmem:[#allocation6 + $0x468] sm:$0xff] }
 0x2d5   : > { %v2612_v11 = vsub.f32 1.0, %v2611_v61  ;;  %v7498_v26 = vadd.f32 1.0, %v4631_v56  ;;  %3445 = vmatmul.f32.vlgmr.msrb.gmra.mxu1 %v3352_v6  ;;  %3469 = vmatpush.msra.mxu3 %v3281_v44  ;;  %v3125_v48 = vadd.f32 %v7366_v46, %v2954_v27  ;;  %v2468_v40 = vsel %vm7494_vm4, %v7354_v35, %v2464_v10 }
 0x2d6   : > { %v4633_v34 = vpop.eup %4632  ;;  %vm2600_vm5 = vweird.f32 %v7339_v29  ;;  %vm7506_vm6 = vcmp.eq.f32.partialorder %v2604_v31, 8.507059e+37  ;;  %v2599_v3 = vadd.f32 %v7398_v55, %v2598_v37  ;;  %vm2601_vm7 = vweird.f32 %v7398_v55  ;;  %3465 = vmatmul.f32.vlgmr.msrb.gmra.mxu2 %v3353_v9  ;;  %v3275_v37 = vld [vmem:[#allocation6 + $0x2c8] sm:$0xff] }
 0x2d7   : > { %v2607_v43 = vor.u32 1.1754944e-38, %v2606_v50  ;;  %4638 = vrcp.f32 %v7498_v26  ;;  %3470 = vmatpush.msra.mxu3 %v3280_v21  ;;  %v4635_v46 = vpop.eup %4634  ;;  %v3113_v63 = vadd.f32 %v7406_v54, %v2963_v57  ;;  %v7514_v35 = vadd.f32 %v3125_v48, %v2964_v5  ;;  %v3329_v54 = vld [vmem:[#allocation6 + $0x478] sm:$0xff]  ;;  %vm7531_vm9 = vmor %vm2600_vm5, %vm2601_vm7  ;;  %v3326_v5 = vld [vmem:[#allocation6 + $0x460] sm:$0xff] }
 0x2d8   : > { %v2973_v36 = vmul.f32 %v2458_v41, %v7166_v60  ;;  %v7517_v13 = vadd.f32 1.0, %v4633_v34  ;;  %v2473_v12 = vsel %vm7484_vm3, %v2472_v0, %v2468_v40  ;;  %v2613_v30 = vmul.f32 %v7472_v39, %v2612_v11  ;;  %3529 = vmatpush.msra.mxu2 %v3329_v54  ;;  %v3274_v11 = vld [vmem:[#allocation6 + $0x2c0] sm:$0xff]  ;;  %v3272_v60 = vld [vmem:[#allocation6 + $0x2b0] sm:$0xff] }
 0x2d9   : > { %v7519_v33 = vpop.eup %4636  ;;  %vm2615_vm8 = vweird.f32 %v7396_v23  ;;  %v7525_v52 = vadd.f32 1.0, %v4635_v46  ;;  %3471 = vmatpush.msra.mxu3 %v3279_v47  ;;  %v2619_v22 = vand.u32 2147483647, %v7396_v23  ;;  %v3350_v49 = vperm.slane %v7462_v2, 1 }
 0x2da   : > { %v2746_v20 = vmul.f32 %v7519_v33, %v7470_v8  ;;  %v3355_v27 = vperm.slane %v7462_v2, 6  ;;  %v2603_v7 = vsel %vm7531_vm9, %v7398_v55, %v2599_v3  ;;  %v2621_v29 = vand.u32 2147483648, %v7396_v23  ;;  %3530 = vmatpush.msra.mxu2 %v3328_v42  ;;  %v3273_v3 = vld [vmem:[#allocation6 + $0x2b8] sm:$0xff] }
 0x2db   : > { %4640 = vrcp.f32 %v7517_v13  ;;  %3472 = vmatpush.msra.mxu3 %v3278_v25  ;;  %v3356_v31 = vperm.slane %v7462_v2, 7  ;;  %v7546_v17 = vadd.f32 %v3113_v63, %v2973_v36  ;;  %v7549_v24 = vmul.f32 %v2473_v12, %v7185_v16  ;;  %v3324_v25 = vld [vmem:[#allocation6 + $0x450] sm:$0xff] }
 0x2dc   : > { %v2747_v32 = vsub.f32 1.0, %v2746_v20  ;;  %v344_v59 = vlaneseq  ;;  %3405 = vmatmul.f32.vlgmr.msrb.gmra.mxu3 %v3350_v49  ;;  %3505 = vmatmul.f32.vlgmr.msra.gmra.mxu0 %v3355_v27  ;;  %v2614_v55 = vadd.f32 %v7472_v39, %v2613_v30  ;;  %vm2616_vm10 = vweird.f32 %v7472_v39  ;;  %v3323_v49 = vld [vmem:[#allocation6 + $0x448] sm:$0xff] }
 0x2dd   : > { %v7551_v10 = vpop.eup %4638  ;;  %v2754_v38 = vand.u32 2147483647, %v7470_v8  ;;  %4642 = vrcp.f32 %v7525_v52  ;;  %3473 = vmatpush.msra.mxu3 %v3277_v45  ;;  %3525 = vmatmul.f32.vlgmr.msra.gmra.mxu1 %v3356_v31  ;;  %v2608_v16 = vsel %vm7506_vm6, %v2607_v43, %v2603_v7  ;;  %vm2751_vm12 = vweird.f32 %v7519_v33  ;;  %vm7574_vm14 = vmor %vm2615_vm8, %vm2616_vm10 }
 0x2de   : > { %v2748_v6 = vmul.f32 %v7519_v33, %v2747_v32  ;;  %v2761_v44 = vmul.f32 %v7551_v10, %v7498_v26  ;;  %v2756_v50 = vand.u32 2147483648, %v7470_v8  ;;  %v2769_v61 = vand.u32 2147483647, %v7498_v26  ;;  %3531 = vmatpush.msra.mxu2 %v3327_v19  ;;  %v3270_v19 = vld [vmem:[#allocation6 + $0x2a0] sm:$0xff] }
 0x2df   : > { %v2771_v56 = vand.u32 2147483648, %v7498_v26  ;;  %vm7566_vm13 = vcmp.lt.s32.totalorder %v344_v59, 256  ;;  %3474 = vmatpush.msra.mxu3 %v3276_v51  ;;  %vm7578_vm15 = vcmp.eq.f32.partialorder %v2619_v22, 8.507059e+37  ;;  %vm2750_vm1 = vweird.f32 %v7470_v8  ;;  %v3322_v51 = vld [vmem:[#allocation6 + $0x440] sm:$0xff] }
 0x2e0   : > { %v2749_v21 = vadd.f32 %v7519_v33, %v2748_v6  ;;  %v2762_v41 = vsub.f32 1.0, %v2761_v44  ;;  %v4799_v4 = vmov 0.0   ;;  %v2983_v9 = vmul.f32 %v2608_v16, %v7211_v58  ;;  %vm7594_vm2 = vmor %vm2750_vm1, %vm2751_vm12  ;;  %3532 = vmatpush.msra.mxu2 %v3326_v5  ;;  %v3321_v6 = vld [vmem:[#allocation6 + $0x438] sm:$0xff] }
 0x2e1   : > { %348 = vst.msk [vmem:[#allocation2 + $0x8] sm:$0x3] %vm7566_vm13, %v4799_v4  ;;  %v7586_v23 = vpop.eup %4640  ;;  %v2618_v34 = vsel %vm7574_vm14, %v7472_v39, %v2614_v55  ;;  %v2622_v48 = vor.u32 1.1754944e-38, %v2621_v29  ;;  %vm7598_vm0 = vcmp.eq.f32.partialorder %v2754_v38, 8.507059e+37  ;;  %3475 = vmatpush.msra.mxu3 %v3275_v37  ;;  %vm2766_vm3 = vweird.f32 %v7551_v10  ;;  %v3271_v29 = vld [vmem:[#allocation6 + $0x2a8] sm:$0xff] }
 0x2e2   : > { %v2753_v58 = vsel %vm7594_vm2, %v7519_v33, %v2749_v21  ;;  %v2763_v47 = vmul.f32 %v7551_v10, %v2762_v41  ;;  %v2896_v39 = vmul.f32 %v7586_v23, %v7517_v13  ;;  %v2757_v46 = vor.u32 1.1754944e-38, %v2756_v50  ;;  %3533 = vmatpush.msra.mxu2 %v3325_v14 }
 0x2e3   : > { %v7609_v43 = vpop.eup %4642  ;;  %vm2765_vm4 = vweird.f32 %v7498_v26  ;;  %vm7612_vm5 = vcmp.eq.f32.partialorder %v2769_v61, 8.507059e+37  ;;  %v2772_v36 = vor.u32 1.1754944e-38, %v2771_v56  ;;  %3476 = vmatpush.msra.mxu3 %v3274_v11  ;;  %v2623_v33 = vsel %vm7578_vm15, %v2622_v48, %v2618_v34  ;;  %v3320_v61 = vld [vmem:[#allocation6 + $0x430] sm:$0xff]  ;;  %v3267_v11 = vld [vmem:[#allocation6 + $0x288] sm:$0xff]  ;;  %v3266_v48 = vld [vmem:[#allocation6 + $0x280] sm:$0xff] }
 0x2e4   : > { %v2764_v12 = vadd.f32 %v7551_v10, %v2763_v47  ;;  %v2897_v30 = vsub.f32 1.0, %v2896_v39  ;;  %v2911_v54 = vmul.f32 %v7609_v43, %v7525_v52  ;;  %v2758_v26 = vsel %vm7598_vm0, %v2757_v46, %v2753_v58  ;;  %vm2767_vm6 = vmor %vm2765_vm4, %vm2766_vm3  ;;  %3534 = vmatpush.msra.mxu2 %v3324_v25  ;;  %v3345_v58 = vld [vmem:[#allocation6 + $0x4f8] sm:$0xff]  ;;  %v3316_v47 = vld [vmem:[#allocation6 + $0x410] sm:$0xff] }
 0x2e5   : > { %vm2900_vm7 = vweird.f32 %v7517_v13  ;;  %v2904_v22 = vand.u32 2147483647, %v7517_v13  ;;  %v2906_v20 = vand.u32 2147483648, %v7517_v13  ;;  %3477 = vmatpush.msra.mxu3 %v3273_v3  ;;  %vm2901_vm8 = vweird.f32 %v7586_v23  ;;  %v3344_v3 = vld [vmem:[#allocation6 + $0x4f0] sm:$0xff]  ;;  %v3314_v25 = vld [vmem:[#allocation6 + $0x400] sm:$0xff] }
 0x2e6   : > { %v2768_v45 = vsel %vm2767_vm6, %v7551_v10, %v2764_v12  ;;  %v2898_v27 = vmul.f32 %v7586_v23, %v2897_v30  ;;  %v2912_v7 = vsub.f32 1.0, %v2911_v54  ;;  %v2984_v31 = vmul.f32 %v2623_v33, %v7286_v1  ;;  %3535 = vmatpush.msra.mxu2 %v3323_v49  ;;  %vm2902_vm10 = vmor %vm2900_vm7, %vm2901_vm8  ;;  %v3342_v12 = vld [vmem:[#allocation6 + $0x4e0] sm:$0xff]  ;;  %v3341_v54 = vld [vmem:[#allocation6 + $0x4d8] sm:$0xff] }
 0x2e7   : > { %v2773_v42 = vsel %vm7612_vm5, %v2772_v36, %v2768_v45  ;;  %v2919_v32 = vand.u32 2147483647, %v7525_v52  ;;  %v2921_v59 = vand.u32 2147483648, %v7525_v52  ;;  %3478 = vmatpush.msra.mxu3 %v3272_v60  ;;  %v2993_v10 = vmul.f32 %v2758_v26, %v7305_v28  ;;  %v3343_v36 = vld [vmem:[#allocation6 + $0x4e8] sm:$0xff]  ;;  %v3340_v26 = vld [vmem:[#allocation6 + $0x4d0] sm:$0xff] }
 0x2e8   : > { %v2899_v55 = vadd.f32 %v7586_v23, %v2898_v27  ;;  %v2913_v38 = vmul.f32 %v7609_v43, %v2912_v7  ;;  %vm2916_vm9 = vweird.f32 %v7609_v43  ;;  %v3127_v1 = vadd.f32 %v7514_v35, %v7549_v24  ;;  %v3269_v35 = vld [vmem:[#allocation6 + $0x298] sm:$0xff]  ;;  %3536 = vmatpush.msra.mxu2 %v3322_v51  ;;  %v3339_v45 = vld [vmem:[#allocation6 + $0x4c8] sm:$0xff]  ;;  %v3338_v7 = vld [vmem:[#allocation6 + $0x4c0] sm:$0xff] }
 0x2e9   : > { %v3115_v16 = vadd.f32 %v7546_v17, %v2983_v9  ;;  %vm2905_vm12 = vcmp.eq.f32.partialorder %v2904_v22, 8.507059e+37  ;;  %v2907_v28 = vor.u32 1.1754944e-38, %v2906_v20  ;;  %3479 = vmatpush.msra.mxu3 %v3271_v29  ;;  %v2994_v44 = vmul.f32 %v2773_v42, %v7333_v15  ;;  %v3006_v20 = vld [vmem:[#allocation2 + $0x8] sm:$0x3]  ;;  %v3336_v42 = vld [vmem:[#allocation6 + $0x4b0] sm:$0xff] }
 0x2ea   : > { %v2903_v37 = vsel %vm2902_vm10, %v7586_v23, %v2899_v55  ;;  %v2914_v50 = vadd.f32 %v7609_v43, %v2913_v38  ;;  %vm2915_vm14 = vweird.f32 %v7525_v52  ;;  %v3128_v17 = vadd.f32 %v3127_v1, %v2984_v31  ;;  %3537 = vmatpush.msra.mxu2 %v3321_v6  ;;  %v3319_v52 = vld [vmem:[#allocation6 + $0x428] sm:$0xff]  ;;  %v3318_v23 = vld [vmem:[#allocation6 + $0x420] sm:$0xff]  ;;  %v3337_v31 = vld [vmem:[#allocation6 + $0x4b8] sm:$0xff] }
 0x2eb   : > { %v2908_v24 = vsel %vm2905_vm12, %v2907_v28, %v2903_v37  ;;  %vm2917_vm15 = vmor %vm2915_vm14, %vm2916_vm9  ;;  %v2922_v13 = vor.u32 1.1754944e-38, %v2921_v59  ;;  %3480 = vmatpush.msra.mxu3 %v3270_v19  ;;  %v3116_v56 = vadd.f32 %v3115_v16, %v2993_v10  ;;  %vm2920_vm1 = vcmp.eq.f32.partialorder %v2919_v32, 8.507059e+37  ;;  %v3335_v32 = vld [vmem:[#allocation6 + $0x4a8] sm:$0xff]  ;;  %v3334_v59 = vld [vmem:[#allocation6 + $0x4a0] sm:$0xff] }
 0x2ec   : > { %v3003_v5 = vmul.f32 %v2908_v24, %v7403_v53  ;;  %v2918_v15 = vsel %vm2917_vm15, %v7609_v43, %v2914_v50  ;;  %v3129_v21 = vadd.f32 %v3128_v17, %v2994_v44  ;;  %3538 = vmatpush.msra.mxu2 %v3320_v61  ;;  %v3317_v53 = vld [vmem:[#allocation6 + $0x418] sm:$0xff]  ;;  %v3354_v14 = vperm.slane %v7462_v2, 5  ;;  %v3315_v43 = vld [vmem:[#allocation6 + $0x408] sm:$0xff]  ;;  %v3332_v38 = vld [vmem:[#allocation6 + $0x490] sm:$0xff] }
 0x2ed   : > { %v2923_v0 = vsel %vm2920_vm1, %v2922_v13, %v2918_v15  ;;  %3481 = vmatpush.msra.mxu3 %v3269_v35  ;;  %v3333_v51 = vld [vmem:[#allocation6 + $0x498] sm:$0xff]  ;;  %v3331_v1 = vld [vmem:[#allocation6 + $0x488] sm:$0xff]  ;;  %v3330_v16 = vld [vmem:[#allocation6 + $0x480] sm:$0xff] }
 0x2ee   : > { %v3117_v41 = vadd.f32 %v3116_v56, %v3003_v5  ;;  %v3004_v4 = vmul.f32 %v2923_v0, %v7429_v62  ;;  %3539 = vmatpush.msra.mxu2 %v3319_v52  ;;  %v3346_v6 = vld [vmem:[%s7706_s6] sm:$0x1] }
 0x2ef   : > { %3482 = vmatpush.msra.mxu3 %v3268_v18 }
 0x2f0   : > { %v3118_v9 = vrot.slane %v3117_v41, 4  ;;  %v3130_v34 = vadd.f32 %v3129_v21, %v3004_v4  ;;  %3540 = vmatpush.msra.mxu2 %v3318_v23 }
 0x2f1   : > { %3483 = vmatpush.msra.mxu3 %v3267_v11 }
 0x2f2   : > { %v3119_v8 = vadd.f32 %v3118_v9, %v3117_v41  ;;  %v3131_v40 = vrot.slane %v3130_v34, 4  ;;  %3541 = vmatpush.msra.mxu2 %v3317_v53 }
 0x2f3   : > { %3484 = vmatpush.msra.mxu3 %v3266_v48 }
 0x2f4   : > { %v3120_v39 = vrot.slane %v3119_v8, 2  ;;  %v3132_v62 = vadd.f32 %v3131_v40, %v3130_v34  ;;  %3485 = vmatmul.f32.vlgmr.msra.gmra.mxu3 %v3354_v14  ;;  %3542 = vmatpush.msra.mxu2 %v3316_v47 }
 0x2f5   : > { %3549 = vmatpush.msrb.mxu3 %v3345_v58 }
 0x2f6   : > { %v3121_v46 = vadd.f32 %v3120_v39, %v3119_v8  ;;  %v3133_v63 = vrot.slane %v3132_v62, 2  ;;  %3543 = vmatpush.msra.mxu2 %v3315_v43 }
 0x2f7   : > { %3550 = vmatpush.msrb.mxu3 %v3344_v3 }
 0x2f8   : > { %v3134_v33 = vadd.f32 %v3133_v63, %v3132_v62  ;;  %v3122_v2 = vrot.slane %v3121_v46, 1  ;;  %3544 = vmatpush.msra.mxu2 %v3314_v25 }
 0x2f9   : > { %3551 = vmatpush.msrb.mxu3 %v3343_v36 }
 0x2fa   : > { %v3135_v30 = vrot.slane %v3134_v33, 1  ;;  %v3123_v22 = vadd.f32 %v3122_v2, %v3121_v46 }
 0x2fb   : > { %3552 = vmatpush.msrb.mxu3 %v3342_v12 }
 0x2fc   : > { %v3136_v60 = vadd.f32 %v3135_v30, %v3134_v33 }
 0x2fd   : > { %3553 = vmatpush.msrb.mxu3 %v3341_v54 }
 0x2fe   : > { %v3154_v49 = vrot.slane %v3136_v60, 7 }
 0x2ff   : > { %3554 = vmatpush.msrb.mxu3 %v3340_v26 }
 0x300   : > { %v3168_v27 = vsel %vm3155_vm11, %v3123_v22, %v3154_v49 }
 0x301   : > { %v3172_v29 = vadd.f32 %v3168_v27, %v3006_v20  ;;  %3555 = vmatpush.msrb.mxu3 %v3339_v45 }
 0x303   : > { %3178 = vst.msk [vmem:[#allocation2 + $0x8] sm:$0x3] %vm7566_vm13, %v3172_v29  ;;  %3556 = vmatpush.msrb.mxu3 %v3338_v7 }
 0x305   : > { %3557 = vmatpush.msrb.mxu3 %v3337_v31 }
 0x307   : > { %3558 = vmatpush.msrb.mxu3 %v3336_v42 }
 0x309   : > { %3559 = vmatpush.msrb.mxu3 %v3335_v32 }
 0x30a   : > { %v3183_v10 = vld [vmem:[#allocation2 + $0x8] sm:$0x3] }
 0x30b   : > { %3560 = vmatpush.msrb.mxu3 %v3334_v59  ;;  %v3185_v55 = vmul.f32 0.015625, %v3183_v10 }
 0x30d   : > { %3561 = vmatpush.msrb.mxu3 %v3333_v51  ;;  %v3357_v19 = vperm.slane %v3185_v55, 0  ;;  %v3358_v57 = vperm.slane %v3185_v55, 1 }
 0x30f   : > { %3562 = vmatpush.msrb.mxu3 %v3332_v38  ;;  %3545 = vmatmul.f32.vlgmr.msra.gmra.mxu2 %v3357_v19 }
 0x311   : > { %3563 = vmatpush.msrb.mxu3 %v3331_v1 }
 0x313   : > { %3564 = vmatpush.msrb.mxu3 %v3330_v16 }
 0x314   : > { %3565 = vmatmul.f32.vlgmr.msrb.gmra.mxu3 %v3358_v57 }
 0x351   : > { %v3426_v35 = vpop.f32.mrf.mxu0 }
 0x352   : > { %v3446_v24 = vpop.f32.mrf.mxu1 }
 0x357   : > { %v3386_v28 = vpop.f32.mrf.mxu3 }
 0x358   : > { %v3387_v37 = vadd.f32 %v3386_v28, %v3346_v6 }
 0x359   : > { %v3466_v61 = vpop.f32.mrf.mxu2  ;;  %v3506_v18 = vpop.f32.mrf.mxu0 }
 0x35a   : > { %v3526_v52 = vpop.f32.mrf.mxu1 }
 0x35f   : > { %v3406_v44 = vpop.f32.mrf.mxu3 }
 0x360   : > { %v3407_v50 = vadd.f32 %v3406_v44, %v3387_v37 }
 0x362   : > { %v3427_v17 = vadd.f32 %v3426_v35, %v3407_v50 }
 0x364   : > { %v3447_v13 = vadd.f32 %v3446_v24, %v3427_v17 }
 0x366   : > { %v3467_v5 = vadd.f32 %v3466_v61, %v3447_v13 }
 0x377   : > { %v3486_v56 = vpop.f32.mrf.mxu3 }
 0x378   : > { %v3487_v15 = vadd.f32 %v3486_v56, %v3467_v5 }
 0x37a   : > { %v3507_v0 = vadd.f32 %v3506_v18, %v3487_v15 }
 0x37c   : > { %v3527_v21 = vadd.f32 %v3526_v52, %v3507_v0 }
 0x392   : > { %v3546_v41 = vpop.f32.mrf.mxu2 }
 0x393   : > { %v3547_v4 = vadd.f32 %v3546_v41, %v3527_v21 }
 0x397   : > { %v3566_v11 = vpop.f32.mrf.mxu3 }
 0x398   : > { %v3567_v23 = vadd.f32 %v3566_v11, %v3547_v4 }
 0x39a   : > { %3569 = vst [vmem:[%s327_s12] sm:$0x1] %v3567_v23 }
 0x39b   : > { %4732 = shalt.err (!%p4729_p9)
}
 0x39c   : > { %4218 = dma.vmem_to_hbm [thread:$0]  (%p4880_p4), %s3582_s17, 16, %s3584_s18, %s3571_s19  }
 0x39d PF: > { %p4235_p10 = scmp.ge.s32.totalorder %s4791_s29, 2  ;;  %s3595_s23 = sand.u32 1, %s4771_s24  }
 0x39e   : > { %s3596_s30 = scalar_lea.sflag [#allocation5], %s3595_s23 }
 0x39f   : > { %p4228_p11 = pnand %p4235_p10, %p4887_p8 }
 0x3a1   : > { %p4229_p12 = pneg %p4228_p11 }
 0x3a3   : > { %4766 = dma.done.wait (%p4229_p12), %s3596_s30, 16  }
 0x3a4   : > { %4768 = vsyncadd (%p4229_p12), %s3596_s30, 4294967280  ;;  %s22_s29 = sadd.s32 1, %s4791_s29   ;;  %s7954_s24 = smov %s4775_s25 }
 0x3a5   : > { %p19_p13 = scmp.ge.s32.totalorder %s22_s29, 4   ;;  %s7955_s25 = smov %s4779_s26 }
 0x3a6   : > { %s7956_s26 = smov %s4893_s14  ;;  %s7957_s27 = smov %s4787_s28 }
 0x3a7   : > { %s7958_s28 = smov %s7960_s9  ;;  %21 = sbr.rel (!%p19_p13) target bundleno = 8 (0x8), region = 100 }
 0x3ac   :  { %3601 = vsyncpa [#allocation4], 1 }
 0x3ad   :  { %3603 = vsyncpa [#allocation4 + $0x1], 1 }
 0x3ae   :  { %3604 = vsyncpa [#allocation7], 1 }
 0x3af   :  { %3605 = vsyncpa [#allocation5], 1 }
 0x3b0   :  { %3607 = vsyncpa [#allocation5 + $0x1], 1 }

</bundles_post_ra>
